<compile_context>
chip_gen: v7x
topology: tpu7x:2x2x1
jax: 0.10.0
libtpu: 0.0.40
codegen_flags: <defaults>
</compile_context>

<pallas_src>
import math
import functools

import jax
import jax.numpy as jnp
from jax.experimental import pallas as pl
from jax.experimental.pallas import tpu as pltpu


# ----------------------------- in-kernel helpers -----------------------------

def _layer_norm(x, alpha, bias, eps=1e-6):
    """Reference 'Norm': alpha*(x-mean)/(std+eps)+bias with unbiased std."""
    d = x.shape[-1]
    m = jnp.mean(x, axis=-1, keepdims=True)
    xc = x - m
    var = jnp.sum(xc * xc, axis=-1, keepdims=True) * (1.0 / (d - 1))  # torch.std (unbiased)
    inv = 1.0 / (jnp.sqrt(var) + eps)
    return alpha * xc * inv + bias


def _mha(x_q, x_kv, bias, w_ref, b_ref, off, heads):
    """Multi-head attention for one batch element.

    x_q : (Sq, D) f32      x_kv : (Sk, D) f32 or bf16
    bias: (Sq, Sk) f32 additive mask (0 = attend, -1e9 = masked, matching
          the reference masked_fill(mask==0, -1e9) up to the added score)
    w_ref : (1, 8, D, D) bf16 weight ref ([q,k,v,o] x {self, cross})
    b_ref : (1, 8, D)    f32  bias ref
    off   : 0 for self-attention weights, 4 for cross-attention weights.
    """
    D = x_q.shape[-1]
    d_k = D // heads
    scale = 1.0 / math.sqrt(d_k)

    xq = x_q.astype(jnp.bfloat16)
    xkv = x_kv.astype(jnp.bfloat16)

    q = jnp.dot(xq, w_ref[0, off + 0],
                preferred_element_type=jnp.float32) + b_ref[0, off + 0:off + 1, :]
    k = jnp.dot(xkv, w_ref[0, off + 1],
                preferred_element_type=jnp.float32) + b_ref[0, off + 1:off + 2, :]
    v = jnp.dot(xkv, w_ref[0, off + 2],
                preferred_element_type=jnp.float32) + b_ref[0, off + 2:off + 3, :]

    # Fold the 1/sqrt(d_k) scale into q and cast q/k/v to bf16 ONCE (hoisted
    # out of the per-head loop).
    qb = (q * scale).astype(jnp.bfloat16)
    kb = k.astype(jnp.bfloat16)
    vb = v.astype(jnp.bfloat16)
    wo = w_ref[0, off + 3]                                  # (D, D) bf16

    acc = jnp.zeros((x_q.shape[0], D), jnp.float32)
    for h in range(heads):                                  # small static head loop
        sl = slice(h * d_k, (h + 1) * d_k)
        s = jnp.einsum('qd,kd->qk', qb[:, sl], kb[:, sl],
                       preferred_element_type=jnp.float32) + bias
        s = s - jnp.max(s, axis=-1, keepdims=True)
        p = jnp.exp(s)
        p = p / jnp.sum(p, axis=-1, keepdims=True)
        head = jnp.dot(p.astype(jnp.bfloat16), vb[:, sl],
                       preferred_element_type=jnp.float32)
        # Accumulate straight into the output projection (no concat of
        # sub-128-lane head slices, per-head intermediates freed immediately).
        acc = acc + jnp.dot(head.astype(jnp.bfloat16), wo[sl, :],
                            preferred_element_type=jnp.float32)
    return acc + b_ref[0, off + 3:off + 4, :]


# ------------------------------- fused kernel --------------------------------

def fused_decoder_kernel(x0_ref, enc_ref, tbias_ref, sbias_ref,
                         attn_w_ref, attn_b_ref, norm_ref,
                         ff_w1_ref, ff_b1_ref, ff_w2_ref, ff_b2_ref,
                         fin_ref, o_ref, *, heads, ff_chunk):
    layer = pl.program_id(1)
    last = pl.num_programs(1) - 1
    D = x0_ref.shape[-1]
    F = ff_w1_ref.shape[-1]

    # Layer 0: load the embedded+PE input into the resident residual stream
    # (the output block -- its index is constant over the layer axis, so it
    # stays in VMEM across all layers of this batch element).
    @pl.when(layer == 0)
    def _():
        o_ref[...] = x0_ref[...]

    x = o_ref[0]                     # (St, D) f32 residual stream
    enc = enc_ref[0]                 # (Ss, D) bf16 encoder memory
    tbias = tbias_ref[0]             # (St, St) f32 additive self-attn mask
    sbias = sbias_ref[0]             # (St, Ss) f32 additive cross-attn mask

    # --- self attention sub-block ---
    x2 = _layer_norm(x, norm_ref[0, 0:1, :], norm_ref[0, 1:2, :])
    x = x + _mha(x2, x2, tbias, attn_w_ref, attn_b_ref, 0, heads)

    # --- cross attention sub-block ---
    x2 = _layer_norm(x, norm_ref[0, 2:3, :], norm_ref[0, 3:4, :])
    x = x + _mha(x2, enc, sbias, attn_w_ref, attn_b_ref, 4, heads)

    # --- feed-forward sub-block (chunked over d_ff; the (St, F) f32
    #     intermediate never fully materializes) ---
    x2 = _layer_norm(x, norm_ref[0, 4:5, :], norm_ref[0, 5:6, :])
    x2b = x2.astype(jnp.bfloat16)
    ff = jnp.zeros_like(x)
    for c0 in range(0, F, ff_chunk):
        c1 = c0 + ff_chunk
        h = jnp.maximum(
            jnp.dot(x2b, ff_w1_ref[0, :, c0:c1],
                    preferred_element_type=jnp.float32) + ff_b1_ref[0, :, c0:c1],
            0.0)
        ff = ff + jnp.dot(h.astype(jnp.bfloat16), ff_w2_ref[0, c0:c1, :],
                          preferred_element_type=jnp.float32)
    x = x + ff + ff_b2_ref[0]

    # Write the residual back; on the last layer apply the fused final Norm.
    @pl.when(layer != last)
    def _():
        o_ref[0] = x

    @pl.when(layer == last)
    def _():
        o_ref[0] = _layer_norm(x, fin_ref[0:1], fin_ref[1:2])


# ------------------------------- host-side glue -------------------------------

def make_positional_encoding(max_len, d_model):
    # Reproduces the repo's (quirky) PE formula:
    #   pe[pos, i]   = sin(pos / 10000**(2i/d_model))        (even i)
    #   pe[pos, i+1] = cos(pos / 10000**(2(i+1)/d_model))    (odd  i+1)
    pos = jnp.arange(max_len, dtype=jnp.float32)[:, None]
    j = jnp.arange(d_model, dtype=jnp.float32)[None, :]
    angle = pos / jnp.power(10000.0, (2.0 * j) / d_model)
    even = (jnp.arange(d_model)[None, :] % 2) == 0
    return jnp.where(even, jnp.sin(angle), jnp.cos(angle))  # (max_len, d_model)


def decoder_forward(trg, e_outputs, src_mask, trg_mask, params, *, heads):
    B, St = trg.shape
    Ss = e_outputs.shape[1]
    D = params["embed"].shape[1]
    L = params["attn_w"].shape[0]
    F = params["ff_w1"].shape[2]
    ff_chunk = 512 if (F > 512 and F % 512 == 0) else F

    # Embedder + PositionalEncoder (gather + scale + add; dropout = identity)
    x = jnp.take(params["embed"], trg, axis=0) * math.sqrt(D)          # (B, St, D)
    x = (x + make_positional_encoding(St, D)[None, :, :]).astype(jnp.float32)
    enc = e_outputs.astype(jnp.bfloat16)                                # (B, Ss, D)

    # Per-batch additive attention biases (0 attend / -1e9 masked), replacing
    # the old (B*S)^2 block-diagonal masks and the per-head where-selects.
    tmask = jnp.broadcast_to(trg_mask, (B, St, St))
    smask = jnp.broadcast_to(src_mask, (B, St, Ss))
    tbias = jnp.where(tmask == 0, -1e9, 0.0).astype(jnp.float32)
    sbias = jnp.where(smask == 0, -1e9, 0.0).astype(jnp.float32)

    kern = functools.partial(fused_decoder_kernel, heads=heads, ff_chunk=ff_chunk)
    out = pl.pallas_call(
        kern,
        out_shape=jax.ShapeDtypeStruct((B, St, D), jnp.float32),
        grid_spec=pltpu.PrefetchScalarGridSpec(
            num_scalar_prefetch=0,
            grid=(B, L),                                   # batch (parallel), layer (inner)
            in_specs=[
                pl.BlockSpec((1, St, D), lambda b, l: (b, 0, 0)),       # embedded input
                pl.BlockSpec((1, Ss, D), lambda b, l: (b, 0, 0)),       # encoder memory
                pl.BlockSpec((1, St, St), lambda b, l: (b, 0, 0)),      # self-attn bias
                pl.BlockSpec((1, St, Ss), lambda b, l: (b, 0, 0)),      # cross-attn bias
                pl.BlockSpec((1, 8, D, D), lambda b, l: (l, 0, 0, 0)),  # attn W (bf16)
                pl.BlockSpec((1, 8, D), lambda b, l: (l, 0, 0)),        # attn b (f32)
                pl.BlockSpec((1, 6, D), lambda b, l: (l, 0, 0)),        # norm alpha/bias
                pl.BlockSpec((1, D, F), lambda b, l: (l, 0, 0)),        # FF W1 (bf16)
                pl.BlockSpec((1, 1, F), lambda b, l: (l, 0, 0)),        # FF b1 (f32)
                pl.BlockSpec((1, F, D), lambda b, l: (l, 0, 0)),        # FF W2 (bf16)
                pl.BlockSpec((1, 1, D), lambda b, l: (l, 0, 0)),        # FF b2 (f32)
                pl.BlockSpec((2, D), lambda b, l: (0, 0)),              # final norm
            ],
            out_specs=pl.BlockSpec((1, St, D), lambda b, l: (b, 0, 0)),
        ),
        compiler_params=pltpu.CompilerParams(
            dimension_semantics=("parallel", "arbitrary"),
            vmem_limit_bytes=48 * 1024 * 1024),
        input_output_aliases={0: 0},   # embedded-input buffer -> output (in place)
    )(x, enc, tbias, sbias,
      params["attn_w"], params["attn_b"], params["norm_w"],
      params["ff_w1"], params["ff_b1"], params["ff_w2"], params["ff_b2"],
      params["final_norm"])
    return out


def init_params(key, vocab_size, d_model, n_layers, d_ff):
    ks = jax.random.split(key, 7)
    s_d = 1.0 / math.sqrt(d_model)
    s_f = 1.0 / math.sqrt(d_ff)

    embed = jax.random.normal(ks[0], (vocab_size, d_model), jnp.float32)

    # Attention q/k/v/out weights for (self, cross) attention: 8 matrices/layer.
    # Weight matrices are tile-aligned bf16; biases stay f32 in separate arrays.
    attn_w = jax.random.uniform(ks[1], (n_layers, 8, d_model, d_model),
                                jnp.float32, -s_d, s_d).astype(jnp.bfloat16)
    attn_b = jax.random.uniform(ks[2], (n_layers, 8, d_model),
                                jnp.float32, -s_d, s_d)

    # Three Norms per layer: [a1, b1, a2, b2, a3, b3] with alpha=1, bias=0 (f32).
    norm_single = jnp.stack([jnp.ones((d_model,), jnp.float32),
                             jnp.zeros((d_model,), jnp.float32)] * 3)   # (6, D)
    norm_w = jnp.asarray(jnp.broadcast_to(norm_single, (n_layers, 6, d_model)),
                         jnp.float32)

    ff_w1 = jax.random.uniform(ks[3], (n_layers, d_model, d_ff),
                               jnp.float32, -s_d, s_d).astype(jnp.bfloat16)
    ff_b1 = jax.random.uniform(ks[4], (n_layers, 1, d_ff), jnp.float32, -s_d, s_d)
    ff_w2 = jax.random.uniform(ks[5], (n_layers, d_ff, d_model),
                               jnp.float32, -s_f, s_f).astype(jnp.bfloat16)
    ff_b2 = jax.random.uniform(ks[6], (n_layers, 1, d_model), jnp.float32, -s_f, s_f)

    final_norm = jnp.stack([jnp.ones((d_model,), jnp.float32),
                            jnp.zeros((d_model,), jnp.float32)])        # (2, D)

    return {"embed": embed, "attn_w": attn_w, "attn_b": attn_b, "norm_w": norm_w,
            "ff_w1": ff_w1, "ff_b1": ff_b1, "ff_w2": ff_w2, "ff_b2": ff_b2,
            "final_norm": final_norm}


# ----------------------------------- main --------------------------------------

if __name__ == "__main__":
    vocab_size = 50
    d_model = 32          # NOTE: toy size; at realistic sizes use D >= 512 (lane-dense)
    heads = 4
    n_layers = 2
    d_ff = 2048           # FeedForward default d_ff in the reference code
    B, St, Ss = 2, 8, 10

    key = jax.random.PRNGKey(0)
    k_trg, k_enc, k_params = jax.random.split(key, 3)

    trg = jax.random.randint(k_trg, (B, St), 0, vocab_size)
    e_outputs = jax.random.normal(k_enc, (B, Ss, d_model), jnp.float32)

    # src_mask: (B, 1, Ss) like the repo; trg_mask: causal no-peek (B, St, St).
    src_mask = jnp.ones((B, 1, Ss), jnp.float32)
    causal = jnp.tril(jnp.ones((St, St), jnp.float32))
    trg_mask = jnp.broadcast_to(causal[None, :, :], (B, St, St))

    params = init_params(k_params, vocab_size, d_model, n_layers, d_ff)

    fwd = jax.jit(functools.partial(decoder_forward, heads=heads))
    out = jax.block_until_ready(fwd(trg, e_outputs, src_mask, trg_mask, params))
    assert out.shape == (B, St, d_model)
    assert bool(jnp.all(jnp.isfinite(out)))
    # TODO(synk): dropout layers are treated as identity (eval-mode forward).
    print("KERNEL_OK")
</pallas_src>

<mosaic_0001>
module attributes {stable_mosaic.version = 11 : i64} {
  func.func @fused_decoder_kernel(%arg0: i32, %arg1: i32, %arg2: memref<1x8x32xf32, #tpu.memory_space<vmem>>, %arg3: memref<1x10x32xbf16, #tpu.memory_space<vmem>>, %arg4: memref<1x8x8xf32, #tpu.memory_space<vmem>>, %arg5: memref<1x8x10xf32, #tpu.memory_space<vmem>>, %arg6: memref<1x8x32x32xbf16, #tpu.memory_space<vmem>>, %arg7: memref<1x8x32xf32, #tpu.memory_space<vmem>>, %arg8: memref<1x6x32xf32, #tpu.memory_space<vmem>>, %arg9: memref<1x32x2048xbf16, #tpu.memory_space<vmem>>, %arg10: memref<1x1x2048xf32, #tpu.memory_space<vmem>>, %arg11: memref<1x2048x32xbf16, #tpu.memory_space<vmem>>, %arg12: memref<1x1x32xf32, #tpu.memory_space<vmem>>, %arg13: memref<2x32xf32, #tpu.memory_space<vmem>>, %arg14: memref<1x8x32xf32, #tpu.memory_space<vmem>>) attributes {dimension_semantics = [#tpu.dimension_semantics<parallel>, #tpu.dimension_semantics<arbitrary>], iteration_bounds = array<i64: 2, 2>, scalar_prefetch = 0 : i64, scratch_operands = 0 : i64, tpu.core_type = #tpu.core_type<tc>, window_params = [{transform_indices = @transform_0, window_bounds = array<i64: 1, 8, 32>}, {transform_indices = @transform_1, window_bounds = array<i64: 1, 10, 32>}, {transform_indices = @transform_2, window_bounds = array<i64: 1, 8, 8>}, {transform_indices = @transform_3, window_bounds = array<i64: 1, 8, 10>}, {transform_indices = @transform_4, window_bounds = array<i64: 1, 8, 32, 32>}, {transform_indices = @transform_5, window_bounds = array<i64: 1, 8, 32>}, {transform_indices = @transform_6, window_bounds = array<i64: 1, 6, 32>}, {transform_indices = @transform_7, window_bounds = array<i64: 1, 32, 2048>}, {transform_indices = @transform_8, window_bounds = array<i64: 1, 1, 2048>}, {transform_indices = @transform_9, window_bounds = array<i64: 1, 2048, 32>}, {transform_indices = @transform_10, window_bounds = array<i64: 1, 1, 32>}, {pipeline_mode = #tpu.pipeline_mode<synchronous>, transform_indices = @transform_11, window_bounds = array<i64: 2, 32>}, {transform_indices = @transform_12, window_bounds = array<i64: 1, 8, 32>}]} {
    %c0_i32 = arith.constant 0 : i32
    %0 = arith.cmpi eq, %arg1, %c0_i32 : i32
    %1 = arith.extui %0 : i1 to i32
    %c0_i32_0 = arith.constant 0 : i32
    %2 = arith.cmpi ne, %1, %c0_i32_0 : i32
    scf.if %2 {
      %c0_198 = arith.constant 0 : index
      %c0_199 = arith.constant 0 : index
      %c0_200 = arith.constant 0 : index
      %389 = vector.load %arg2[%c0_198, %c0_199, %c0_200] : memref<1x8x32xf32, #tpu.memory_space<vmem>>, vector<1x8x32xf32>
      %c0_201 = arith.constant 0 : index
      %c0_202 = arith.constant 0 : index
      %c0_203 = arith.constant 0 : index
      %390 = vector.load %arg14[%c0_201, %c0_202, %c0_203] : memref<1x8x32xf32, #tpu.memory_space<vmem>>, vector<1x8x32xf32>
      tpu.vector_store %arg14[%c0_201, %c0_202, %c0_203], %389 {strides = array<i32>} : memref<1x8x32xf32, #tpu.memory_space<vmem>>, vector<1x8x32xf32>,
    } else {
    }
    %c0 = arith.constant 0 : index
    %c0_1 = arith.constant 0 : index
    %c0_2 = arith.constant 0 : index
    %3 = vector.load %arg14[%c0, %c0_1, %c0_2] : memref<1x8x32xf32, #tpu.memory_space<vmem>>, vector<1x8x32xf32>
    %4 = vector.shape_cast %3 : vector<1x8x32xf32> to vector<8x32xf32>
    %c0_3 = arith.constant 0 : index
    %c0_4 = arith.constant 0 : index
    %c0_5 = arith.constant 0 : index
    %5 = vector.load %arg3[%c0_3, %c0_4, %c0_5] : memref<1x10x32xbf16, #tpu.memory_space<vmem>>, vector<1x10x32xbf16>
    %6 = vector.shape_cast %5 : vector<1x10x32xbf16> to vector<10x32xbf16>
    %c0_6 = arith.constant 0 : index
    %c0_7 = arith.constant 0 : index
    %c0_8 = arith.constant 0 : index
    %7 = vector.load %arg4[%c0_6, %c0_7, %c0_8] : memref<1x8x8xf32, #tpu.memory_space<vmem>>, vector<1x8x8xf32>
    %8 = vector.shape_cast %7 : vector<1x8x8xf32> to vector<8x8xf32>
    %c0_9 = arith.constant 0 : index
    %c0_10 = arith.constant 0 : index
    %c0_11 = arith.constant 0 : index
    %9 = vector.load %arg5[%c0_9, %c0_10, %c0_11] : memref<1x8x10xf32, #tpu.memory_space<vmem>>, vector<1x8x10xf32>
    %10 = vector.shape_cast %9 : vector<1x8x10xf32> to vector<8x10xf32>
    %c0_12 = arith.constant 0 : index
    %c0_13 = arith.constant 0 : index
    %c0_14 = arith.constant 0 : index
    %11 = vector.load %arg8[%c0_12, %c0_13, %c0_14] : memref<1x6x32xf32, #tpu.memory_space<vmem>>, vector<1x1x32xf32>
    %12 = vector.shape_cast %11 : vector<1x1x32xf32> to vector<1x32xf32>
    %c0_15 = arith.constant 0 : index
    %c1 = arith.constant 1 : index
    %c0_16 = arith.constant 0 : index
    %13 = vector.load %arg8[%c0_15, %c1, %c0_16] : memref<1x6x32xf32, #tpu.memory_space<vmem>>, vector<1x1x32xf32>
    %14 = vector.shape_cast %13 : vector<1x1x32xf32> to vector<1x32xf32>
    %cst = arith.constant dense<0.000000e+00> : vector<8xf32>
    %15 = vector.multi_reduction <add>, %4, %cst [1] : vector<8x32xf32> to vector<8xf32>
    %16 = vector.shape_cast %15 : vector<8xf32> to vector<8x1xf32>
    %cst_17 = arith.constant 3.200000e+01 : f32
    %17 = vector.broadcast %cst_17 : f32 to vector<8x1xf32>
    %18 = arith.divf %16, %17 : vector<8x1xf32>
    %19 = vector.broadcast %18 : vector<8x1xf32> to vector<8x32xf32>
    %20 = arith.subf %4, %19 : vector<8x32xf32>
    %21 = arith.mulf %20, %20 : vector<8x32xf32>
    %cst_18 = arith.constant dense<0.000000e+00> : vector<8xf32>
    %22 = vector.multi_reduction <add>, %21, %cst_18 [1] : vector<8x32xf32> to vector<8xf32>
    %23 = vector.shape_cast %22 : vector<8xf32> to vector<8x1xf32>
    %cst_19 = arith.constant 0.0322580636 : f32
    %24 = vector.broadcast %cst_19 : f32 to vector<8x1xf32>
    %25 = arith.mulf %23, %24 : vector<8x1xf32>
    %26 = math.sqrt %25 : vector<8x1xf32>
    %cst_20 = arith.constant 9.99999997E-7 : f32
    %27 = vector.broadcast %cst_20 : f32 to vector<8x1xf32>
    %28 = arith.addf %26, %27 : vector<8x1xf32>
    %cst_21 = arith.constant 1.000000e+00 : f32
    %29 = vector.broadcast %cst_21 : f32 to vector<8x1xf32>
    %30 = arith.divf %29, %28 : vector<8x1xf32>
    %31 = vector.broadcast %12 : vector<1x32xf32> to vector<8x32xf32>
    %32 = arith.mulf %31, %20 : vector<8x32xf32>
    %33 = vector.broadcast %30 : vector<8x1xf32> to vector<8x32xf32>
    %34 = arith.mulf %32, %33 : vector<8x32xf32>
    %35 = vector.broadcast %14 : vector<1x32xf32> to vector<8x32xf32>
    %36 = arith.addf %34, %35 : vector<8x32xf32>
    %37 = arith.truncf %36 : vector<8x32xf32> to vector<8x32xbf16>
    %38 = arith.truncf %36 : vector<8x32xf32> to vector<8x32xbf16>
    %c0_22 = arith.constant 0 : index
    %c0_23 = arith.constant 0 : index
    %c0_24 = arith.constant 0 : index
    %c0_25 = arith.constant 0 : index
    %39 = vector.load %arg6[%c0_22, %c0_23, %c0_24, %c0_25] : memref<1x8x32x32xbf16, #tpu.memory_space<vmem>>, vector<1x1x32x32xbf16>
    %40 = vector.shape_cast %39 : vector<1x1x32x32xbf16> to vector<32x32xbf16>
    %cst_26 = arith.constant dense<0.000000e+00> : vector<8x32xf32>
    %41 = tpu.matmul %37, %40, %cst_26 {dimension_numbers = #tpu.dot_dimension_numbers<[1], [0], [0], [1], [0, 0, 1, 1], [], []>} : vector<8x32xbf16>, vector<32x32xbf16>, vector<8x32xf32> -> vector<8x32xf32>
    %c0_27 = arith.constant 0 : index
    %c0_28 = arith.constant 0 : index
    %c0_29 = arith.constant 0 : index
    %42 = vector.load %arg7[%c0_27, %c0_28, %c0_29] : memref<1x8x32xf32, #tpu.memory_space<vmem>>, vector<1x1x32xf32>
    %43 = vector.shape_cast %42 : vector<1x1x32xf32> to vector<1x32xf32>
    %44 = vector.broadcast %43 : vector<1x32xf32> to vector<8x32xf32>
    %45 = arith.addf %41, %44 : vector<8x32xf32>
    %c0_30 = arith.constant 0 : index
    %c1_31 = arith.constant 1 : index
    %c0_32 = arith.constant 0 : index
    %c0_33 = arith.constant 0 : index
    %46 = vector.load %arg6[%c0_30, %c1_31, %c0_32, %c0_33] : memref<1x8x32x32xbf16, #tpu.memory_space<vmem>>, vector<1x1x32x32xbf16>
    %47 = vector.shape_cast %46 : vector<1x1x32x32xbf16> to vector<32x32xbf16>
    %cst_34 = arith.constant dense<0.000000e+00> : vector<8x32xf32>
    %48 = tpu.matmul %38, %47, %cst_34 {dimension_numbers = #tpu.dot_dimension_numbers<[1], [0], [0], [1], [0, 0, 1, 1], [], []>} : vector<8x32xbf16>, vector<32x32xbf16>, vector<8x32xf32> -> vector<8x32xf32>
    %c0_35 = arith.constant 0 : index
    %c1_36 = arith.constant 1 : index
    %c0_37 = arith.constant 0 : index
    %49 = vector.load %arg7[%c0_35, %c1_36, %c0_37] : memref<1x8x32xf32, #tpu.memory_space<vmem>>, vector<1x1x32xf32>
    %50 = vector.shape_cast %49 : vector<1x1x32xf32> to vector<1x32xf32>
    %51 = vector.broadcast %50 : vector<1x32xf32> to vector<8x32xf32>
    %52 = arith.addf %48, %51 : vector<8x32xf32>
    %c0_38 = arith.constant 0 : index
    %c2 = arith.constant 2 : index
    %c0_39 = arith.constant 0 : index
    %c0_40 = arith.constant 0 : index
    %53 = vector.load %arg6[%c0_38, %c2, %c0_39, %c0_40] : memref<1x8x32x32xbf16, #tpu.memory_space<vmem>>, vector<1x1x32x32xbf16>
    %54 = vector.shape_cast %53 : vector<1x1x32x32xbf16> to vector<32x32xbf16>
    %cst_41 = arith.constant dense<0.000000e+00> : vector<8x32xf32>
    %55 = tpu.matmul %38, %54, %cst_41 {dimension_numbers = #tpu.dot_dimension_numbers<[1], [0], [0], [1], [0, 0, 1, 1], [], []>} : vector<8x32xbf16>, vector<32x32xbf16>, vector<8x32xf32> -> vector<8x32xf32>
    %c0_42 = arith.constant 0 : index
    %c2_43 = arith.constant 2 : index
    %c0_44 = arith.constant 0 : index
    %56 = vector.load %arg7[%c0_42, %c2_43, %c0_44] : memref<1x8x32xf32, #tpu.memory_space<vmem>>, vector<1x1x32xf32>
    %57 = vector.shape_cast %56 : vector<1x1x32xf32> to vector<1x32xf32>
    %58 = vector.broadcast %57 : vector<1x32xf32> to vector<8x32xf32>
    %59 = arith.addf %55, %58 : vector<8x32xf32>
    %cst_45 = arith.constant 0.353553385 : f32
    %60 = vector.broadcast %cst_45 : f32 to vector<8x32xf32>
    %61 = arith.mulf %45, %60 : vector<8x32xf32>
    %62 = arith.truncf %61 : vector<8x32xf32> to vector<8x32xbf16>
    %63 = arith.truncf %52 : vector<8x32xf32> to vector<8x32xbf16>
    %64 = arith.truncf %59 : vector<8x32xf32> to vector<8x32xbf16>
    %c0_46 = arith.constant 0 : index
    %c3 = arith.constant 3 : index
    %c0_47 = arith.constant 0 : index
    %c0_48 = arith.constant 0 : index
    %65 = vector.load %arg6[%c0_46, %c3, %c0_47, %c0_48] : memref<1x8x32x32xbf16, #tpu.memory_space<vmem>>, vector<1x1x32x32xbf16>
    %66 = vector.shape_cast %65 : vector<1x1x32x32xbf16> to vector<32x32xbf16>
    %cst_49 = arith.constant 0.000000e+00 : f32
    %67 = vector.broadcast %cst_49 : f32 to vector<8x32xf32>
    %68 = vector.extract_strided_slice %62 {offsets = [0, 0], sizes = [8, 8], strides = [1, 1]} : vector<8x32xbf16> to vector<8x8xbf16>
    %69 = vector.extract_strided_slice %63 {offsets = [0, 0], sizes = [8, 8], strides = [1, 1]} : vector<8x32xbf16> to vector<8x8xbf16>
    "tpu.trace_start"() <{level = 10 : i32, message = "qd,kd->qk"}> : () -> ()
    %cst_50 = arith.constant dense<0.000000e+00> : vector<8x8xf32>
    %70 = tpu.matmul %68, %69, %cst_50 {dimension_numbers = #tpu.dot_dimension_numbers<[1], [1], [0], [0], [0, 0, 1, 0], [], []>} : vector<8x8xbf16>, vector<8x8xbf16>, vector<8x8xf32> -> vector<8x8xf32>
    "tpu.trace_stop"() : () -> ()
    %71 = arith.addf %70, %8 : vector<8x8xf32>
    %cst_51 = arith.constant dense<0xFF800000> : vector<8xf32>
    %72 = vector.multi_reduction <maximumf>, %71, %cst_51 [1] : vector<8x8xf32> to vector<8xf32>
    %73 = vector.shape_cast %72 : vector<8xf32> to vector<8x1xf32>
    %74 = vector.broadcast %73 : vector<8x1xf32> to vector<8x8xf32>
    %75 = arith.subf %71, %74 : vector<8x8xf32>
    %76 = math.exp %75 : vector<8x8xf32>
    %cst_52 = arith.constant dense<0.000000e+00> : vector<8xf32>
    %77 = vector.multi_reduction <add>, %76, %cst_52 [1] : vector<8x8xf32> to vector<8xf32>
    %78 = vector.shape_cast %77 : vector<8xf32> to vector<8x1xf32>
    %79 = vector.broadcast %78 : vector<8x1xf32> to vector<8x8xf32>
    %80 = arith.divf %76, %79 : vector<8x8xf32>
    %81 = arith.truncf %80 : vector<8x8xf32> to vector<8x8xbf16>
    %82 = vector.extract_strided_slice %64 {offsets = [0, 0], sizes = [8, 8], strides = [1, 1]} : vector<8x32xbf16> to vector<8x8xbf16>
    %cst_53 = arith.constant dense<0.000000e+00> : vector<8x8xf32>
    %83 = tpu.matmul %81, %82, %cst_53 {dimension_numbers = #tpu.dot_dimension_numbers<[1], [0], [0], [1], [0, 0, 1, 1], [], []>} : vector<8x8xbf16>, vector<8x8xbf16>, vector<8x8xf32> -> vector<8x8xf32>
    %84 = arith.truncf %83 : vector<8x8xf32> to vector<8x8xbf16>
    %85 = vector.extract_strided_slice %66 {offsets = [0, 0], sizes = [8, 32], strides = [1, 1]} : vector<32x32xbf16> to vector<8x32xbf16>
    %cst_54 = arith.constant dense<0.000000e+00> : vector<8x32xf32>
    %86 = tpu.matmul %84, %85, %cst_54 {dimension_numbers = #tpu.dot_dimension_numbers<[1], [0], [0], [1], [0, 0, 1, 1], [], []>} : vector<8x8xbf16>, vector<8x32xbf16>, vector<8x32xf32> -> vector<8x32xf32>
    %87 = arith.addf %67, %86 : vector<8x32xf32>
    %88 = vector.extract_strided_slice %62 {offsets = [0, 8], sizes = [8, 8], strides = [1, 1]} : vector<8x32xbf16> to vector<8x8xbf16>
    %89 = vector.extract_strided_slice %63 {offsets = [0, 8], sizes = [8, 8], strides = [1, 1]} : vector<8x32xbf16> to vector<8x8xbf16>
    "tpu.trace_start"() <{level = 10 : i32, message = "qd,kd->qk"}> : () -> ()
    %cst_55 = arith.constant dense<0.000000e+00> : vector<8x8xf32>
    %90 = tpu.matmul %88, %89, %cst_55 {dimension_numbers = #tpu.dot_dimension_numbers<[1], [1], [0], [0], [0, 0, 1, 0], [], []>} : vector<8x8xbf16>, vector<8x8xbf16>, vector<8x8xf32> -> vector<8x8xf32>
    "tpu.trace_stop"() : () -> ()
    %91 = arith.addf %90, %8 : vector<8x8xf32>
    %cst_56 = arith.constant dense<0xFF800000> : vector<8xf32>
    %92 = vector.multi_reduction <maximumf>, %91, %cst_56 [1] : vector<8x8xf32> to vector<8xf32>
    %93 = vector.shape_cast %92 : vector<8xf32> to vector<8x1xf32>
    %94 = vector.broadcast %93 : vector<8x1xf32> to vector<8x8xf32>
    %95 = arith.subf %91, %94 : vector<8x8xf32>
    %96 = math.exp %95 : vector<8x8xf32>
    %cst_57 = arith.constant dense<0.000000e+00> : vector<8xf32>
    %97 = vector.multi_reduction <add>, %96, %cst_57 [1] : vector<8x8xf32> to vector<8xf32>
    %98 = vector.shape_cast %97 : vector<8xf32> to vector<8x1xf32>
    %99 = vector.broadcast %98 : vector<8x1xf32> to vector<8x8xf32>
    %100 = arith.divf %96, %99 : vector<8x8xf32>
    %101 = arith.truncf %100 : vector<8x8xf32> to vector<8x8xbf16>
    %102 = vector.extract_strided_slice %64 {offsets = [0, 8], sizes = [8, 8], strides = [1, 1]} : vector<8x32xbf16> to vector<8x8xbf16>
    %cst_58 = arith.constant dense<0.000000e+00> : vector<8x8xf32>
    %103 = tpu.matmul %101, %102, %cst_58 {dimension_numbers = #tpu.dot_dimension_numbers<[1], [0], [0], [1], [0, 0, 1, 1], [], []>} : vector<8x8xbf16>, vector<8x8xbf16>, vector<8x8xf32> -> vector<8x8xf32>
    %104 = arith.truncf %103 : vector<8x8xf32> to vector<8x8xbf16>
    %105 = vector.extract_strided_slice %66 {offsets = [8, 0], sizes = [8, 32], strides = [1, 1]} : vector<32x32xbf16> to vector<8x32xbf16>
    %cst_59 = arith.constant dense<0.000000e+00> : vector<8x32xf32>
    %106 = tpu.matmul %104, %105, %cst_59 {dimension_numbers = #tpu.dot_dimension_numbers<[1], [0], [0], [1], [0, 0, 1, 1], [], []>} : vector<8x8xbf16>, vector<8x32xbf16>, vector<8x32xf32> -> vector<8x32xf32>
    %107 = arith.addf %87, %106 : vector<8x32xf32>
    %108 = vector.extract_strided_slice %62 {offsets = [0, 16], sizes = [8, 8], strides = [1, 1]} : vector<8x32xbf16> to vector<8x8xbf16>
    %109 = vector.extract_strided_slice %63 {offsets = [0, 16], sizes = [8, 8], strides = [1, 1]} : vector<8x32xbf16> to vector<8x8xbf16>
    "tpu.trace_start"() <{level = 10 : i32, message = "qd,kd->qk"}> : () -> ()
    %cst_60 = arith.constant dense<0.000000e+00> : vector<8x8xf32>
    %110 = tpu.matmul %108, %109, %cst_60 {dimension_numbers = #tpu.dot_dimension_numbers<[1], [1], [0], [0], [0, 0, 1, 0], [], []>} : vector<8x8xbf16>, vector<8x8xbf16>, vector<8x8xf32> -> vector<8x8xf32>
    "tpu.trace_stop"() : () -> ()
    %111 = arith.addf %110, %8 : vector<8x8xf32>
    %cst_61 = arith.constant dense<0xFF800000> : vector<8xf32>
    %112 = vector.multi_reduction <maximumf>, %111, %cst_61 [1] : vector<8x8xf32> to vector<8xf32>
    %113 = vector.shape_cast %112 : vector<8xf32> to vector<8x1xf32>
    %114 = vector.broadcast %113 : vector<8x1xf32> to vector<8x8xf32>
    %115 = arith.subf %111, %114 : vector<8x8xf32>
    %116 = math.exp %115 : vector<8x8xf32>
    %cst_62 = arith.constant dense<0.000000e+00> : vector<8xf32>
    %117 = vector.multi_reduction <add>, %116, %cst_62 [1] : vector<8x8xf32> to vector<8xf32>
    %118 = vector.shape_cast %117 : vector<8xf32> to vector<8x1xf32>
    %119 = vector.broadcast %118 : vector<8x1xf32> to vector<8x8xf32>
    %120 = arith.divf %116, %119 : vector<8x8xf32>
    %121 = arith.truncf %120 : vector<8x8xf32> to vector<8x8xbf16>
    %122 = vector.extract_strided_slice %64 {offsets = [0, 16], sizes = [8, 8], strides = [1, 1]} : vector<8x32xbf16> to vector<8x8xbf16>
    %cst_63 = arith.constant dense<0.000000e+00> : vector<8x8xf32>
    %123 = tpu.matmul %121, %122, %cst_63 {dimension_numbers = #tpu.dot_dimension_numbers<[1], [0], [0], [1], [0, 0, 1, 1], [], []>} : vector<8x8xbf16>, vector<8x8xbf16>, vector<8x8xf32> -> vector<8x8xf32>
    %124 = arith.truncf %123 : vector<8x8xf32> to vector<8x8xbf16>
    %125 = vector.extract_strided_slice %66 {offsets = [16, 0], sizes = [8, 32], strides = [1, 1]} : vector<32x32xbf16> to vector<8x32xbf16>
    %cst_64 = arith.constant dense<0.000000e+00> : vector<8x32xf32>
    %126 = tpu.matmul %124, %125, %cst_64 {dimension_numbers = #tpu.dot_dimension_numbers<[1], [0], [0], [1], [0, 0, 1, 1], [], []>} : vector<8x8xbf16>, vector<8x32xbf16>, vector<8x32xf32> -> vector<8x32xf32>
    %127 = arith.addf %107, %126 : vector<8x32xf32>
    %128 = vector.extract_strided_slice %62 {offsets = [0, 24], sizes = [8, 8], strides = [1, 1]} : vector<8x32xbf16> to vector<8x8xbf16>
    %129 = vector.extract_strided_slice %63 {offsets = [0, 24], sizes = [8, 8], strides = [1, 1]} : vector<8x32xbf16> to vector<8x8xbf16>
    "tpu.trace_start"() <{level = 10 : i32, message = "qd,kd->qk"}> : () -> ()
    %cst_65 = arith.constant dense<0.000000e+00> : vector<8x8xf32>
    %130 = tpu.matmul %128, %129, %cst_65 {dimension_numbers = #tpu.dot_dimension_numbers<[1], [1], [0], [0], [0, 0, 1, 0], [], []>} : vector<8x8xbf16>, vector<8x8xbf16>, vector<8x8xf32> -> vector<8x8xf32>
    "tpu.trace_stop"() : () -> ()
    %131 = arith.addf %130, %8 : vector<8x8xf32>
    %cst_66 = arith.constant dense<0xFF800000> : vector<8xf32>
    %132 = vector.multi_reduction <maximumf>, %131, %cst_66 [1] : vector<8x8xf32> to vector<8xf32>
    %133 = vector.shape_cast %132 : vector<8xf32> to vector<8x1xf32>
    %134 = vector.broadcast %133 : vector<8x1xf32> to vector<8x8xf32>
    %135 = arith.subf %131, %134 : vector<8x8xf32>
    %136 = math.exp %135 : vector<8x8xf32>
    %cst_67 = arith.constant dense<0.000000e+00> : vector<8xf32>
    %137 = vector.multi_reduction <add>, %136, %cst_67 [1] : vector<8x8xf32> to vector<8xf32>
    %138 = vector.shape_cast %137 : vector<8xf32> to vector<8x1xf32>
    %139 = vector.broadcast %138 : vector<8x1xf32> to vector<8x8xf32>
    %140 = arith.divf %136, %139 : vector<8x8xf32>
    %141 = arith.truncf %140 : vector<8x8xf32> to vector<8x8xbf16>
    %142 = vector.extract_strided_slice %64 {offsets = [0, 24], sizes = [8, 8], strides = [1, 1]} : vector<8x32xbf16> to vector<8x8xbf16>
    %cst_68 = arith.constant dense<0.000000e+00> : vector<8x8xf32>
    %143 = tpu.matmul %141, %142, %cst_68 {dimension_numbers = #tpu.dot_dimension_numbers<[1], [0], [0], [1], [0, 0, 1, 1], [], []>} : vector<8x8xbf16>, vector<8x8xbf16>, vector<8x8xf32> -> vector<8x8xf32>
    %144 = arith.truncf %143 : vector<8x8xf32> to vector<8x8xbf16>
    %145 = vector.extract_strided_slice %66 {offsets = [24, 0], sizes = [8, 32], strides = [1, 1]} : vector<32x32xbf16> to vector<8x32xbf16>
    %cst_69 = arith.constant dense<0.000000e+00> : vector<8x32xf32>
    %146 = tpu.matmul %144, %145, %cst_69 {dimension_numbers = #tpu.dot_dimension_numbers<[1], [0], [0], [1], [0, 0, 1, 1], [], []>} : vector<8x8xbf16>, vector<8x32xbf16>, vector<8x32xf32> -> vector<8x32xf32>
    %147 = arith.addf %127, %146 : vector<8x32xf32>
    %c0_70 = arith.constant 0 : index
    %c3_71 = arith.constant 3 : index
    %c0_72 = arith.constant 0 : index
    %148 = vector.load %arg7[%c0_70, %c3_71, %c0_72] : memref<1x8x32xf32, #tpu.memory_space<vmem>>, vector<1x1x32xf32>
    %149 = vector.shape_cast %148 : vector<1x1x32xf32> to vector<1x32xf32>
    %150 = vector.broadcast %149 : vector<1x32xf32> to vector<8x32xf32>
    %151 = arith.addf %147, %150 : vector<8x32xf32>
    %152 = arith.addf %4, %151 : vector<8x32xf32>
    %c0_73 = arith.constant 0 : index
    %c2_74 = arith.constant 2 : index
    %c0_75 = arith.constant 0 : index
    %153 = vector.load %arg8[%c0_73, %c2_74, %c0_75] : memref<1x6x32xf32, #tpu.memory_space<vmem>>, vector<1x1x32xf32>
    %154 = vector.shape_cast %153 : vector<1x1x32xf32> to vector<1x32xf32>
    %c0_76 = arith.constant 0 : index
    %c3_77 = arith.constant 3 : index
    %c0_78 = arith.constant 0 : index
    %155 = vector.load %arg8[%c0_76, %c3_77, %c0_78] : memref<1x6x32xf32, #tpu.memory_space<vmem>>, vector<1x1x32xf32>
    %156 = vector.shape_cast %155 : vector<1x1x32xf32> to vector<1x32xf32>
    %cst_79 = arith.constant dense<0.000000e+00> : vector<8xf32>
    %157 = vector.multi_reduction <add>, %152, %cst_79 [1] : vector<8x32xf32> to vector<8xf32>
    %158 = vector.shape_cast %157 : vector<8xf32> to vector<8x1xf32>
    %cst_80 = arith.constant 3.200000e+01 : f32
    %159 = vector.broadcast %cst_80 : f32 to vector<8x1xf32>
    %160 = arith.divf %158, %159 : vector<8x1xf32>
    %161 = vector.broadcast %160 : vector<8x1xf32> to vector<8x32xf32>
    %162 = arith.subf %152, %161 : vector<8x32xf32>
    %163 = arith.mulf %162, %162 : vector<8x32xf32>
    %cst_81 = arith.constant dense<0.000000e+00> : vector<8xf32>
    %164 = vector.multi_reduction <add>, %163, %cst_81 [1] : vector<8x32xf32> to vector<8xf32>
    %165 = vector.shape_cast %164 : vector<8xf32> to vector<8x1xf32>
    %cst_82 = arith.constant 0.0322580636 : f32
    %166 = vector.broadcast %cst_82 : f32 to vector<8x1xf32>
    %167 = arith.mulf %165, %166 : vector<8x1xf32>
    %168 = math.sqrt %167 : vector<8x1xf32>
    %cst_83 = arith.constant 9.99999997E-7 : f32
    %169 = vector.broadcast %cst_83 : f32 to vector<8x1xf32>
    %170 = arith.addf %168, %169 : vector<8x1xf32>
    %cst_84 = arith.constant 1.000000e+00 : f32
    %171 = vector.broadcast %cst_84 : f32 to vector<8x1xf32>
    %172 = arith.divf %171, %170 : vector<8x1xf32>
    %173 = vector.broadcast %154 : vector<1x32xf32> to vector<8x32xf32>
    %174 = arith.mulf %173, %162 : vector<8x32xf32>
    %175 = vector.broadcast %172 : vector<8x1xf32> to vector<8x32xf32>
    %176 = arith.mulf %174, %175 : vector<8x32xf32>
    %177 = vector.broadcast %156 : vector<1x32xf32> to vector<8x32xf32>
    %178 = arith.addf %176, %177 : vector<8x32xf32>
    %179 = arith.truncf %178 : vector<8x32xf32> to vector<8x32xbf16>
    %c0_85 = arith.constant 0 : index
    %c4 = arith.constant 4 : index
    %c0_86 = arith.constant 0 : index
    %c0_87 = arith.constant 0 : index
    %180 = vector.load %arg6[%c0_85, %c4, %c0_86, %c0_87] : memref<1x8x32x32xbf16, #tpu.memory_space<vmem>>, vector<1x1x32x32xbf16>
    %181 = vector.shape_cast %180 : vector<1x1x32x32xbf16> to vector<32x32xbf16>
    %cst_88 = arith.constant dense<0.000000e+00> : vector<8x32xf32>
    %182 = tpu.matmul %179, %181, %cst_88 {dimension_numbers = #tpu.dot_dimension_numbers<[1], [0], [0], [1], [0, 0, 1, 1], [], []>} : vector<8x32xbf16>, vector<32x32xbf16>, vector<8x32xf32> -> vector<8x32xf32>
    %c0_89 = arith.constant 0 : index
    %c4_90 = arith.constant 4 : index
    %c0_91 = arith.constant 0 : index
    %183 = vector.load %arg7[%c0_89, %c4_90, %c0_91] : memref<1x8x32xf32, #tpu.memory_space<vmem>>, vector<1x1x32xf32>
    %184 = vector.shape_cast %183 : vector<1x1x32xf32> to vector<1x32xf32>
    %185 = vector.broadcast %184 : vector<1x32xf32> to vector<8x32xf32>
    %186 = arith.addf %182, %185 : vector<8x32xf32>
    %c0_92 = arith.constant 0 : index
    %c5 = arith.constant 5 : index
    %c0_93 = arith.constant 0 : index
    %c0_94 = arith.constant 0 : index
    %187 = vector.load %arg6[%c0_92, %c5, %c0_93, %c0_94] : memref<1x8x32x32xbf16, #tpu.memory_space<vmem>>, vector<1x1x32x32xbf16>
    %188 = vector.shape_cast %187 : vector<1x1x32x32xbf16> to vector<32x32xbf16>
    %cst_95 = arith.constant dense<0.000000e+00> : vector<10x32xf32>
    %189 = tpu.matmul %6, %188, %cst_95 {dimension_numbers = #tpu.dot_dimension_numbers<[1], [0], [0], [1], [0, 0, 1, 1], [], []>} : vector<10x32xbf16>, vector<32x32xbf16>, vector<10x32xf32> -> vector<10x32xf32>
    %c0_96 = arith.constant 0 : index
    %c5_97 = arith.constant 5 : index
    %c0_98 = arith.constant 0 : index
    %190 = vector.load %arg7[%c0_96, %c5_97, %c0_98] : memref<1x8x32xf32, #tpu.memory_space<vmem>>, vector<1x1x32xf32>
    %191 = vector.shape_cast %190 : vector<1x1x32xf32> to vector<1x32xf32>
    %192 = vector.broadcast %191 : vector<1x32xf32> to vector<10x32xf32>
    %193 = arith.addf %189, %192 : vector<10x32xf32>
    %c0_99 = arith.constant 0 : index
    %c6 = arith.constant 6 : index
    %c0_100 = arith.constant 0 : index
    %c0_101 = arith.constant 0 : index
    %194 = vector.load %arg6[%c0_99, %c6, %c0_100, %c0_101] : memref<1x8x32x32xbf16, #tpu.memory_space<vmem>>, vector<1x1x32x32xbf16>
    %195 = vector.shape_cast %194 : vector<1x1x32x32xbf16> to vector<32x32xbf16>
    %cst_102 = arith.constant dense<0.000000e+00> : vector<10x32xf32>
    %196 = tpu.matmul %6, %195, %cst_102 {dimension_numbers = #tpu.dot_dimension_numbers<[1], [0], [0], [1], [0, 0, 1, 1], [], []>} : vector<10x32xbf16>, vector<32x32xbf16>, vector<10x32xf32> -> vector<10x32xf32>
    %c0_103 = arith.constant 0 : index
    %c6_104 = arith.constant 6 : index
    %c0_105 = arith.constant 0 : index
    %197 = vector.load %arg7[%c0_103, %c6_104, %c0_105] : memref<1x8x32xf32, #tpu.memory_space<vmem>>, vector<1x1x32xf32>
    %198 = vector.shape_cast %197 : vector<1x1x32xf32> to vector<1x32xf32>
    %199 = vector.broadcast %198 : vector<1x32xf32> to vector<10x32xf32>
    %200 = arith.addf %196, %199 : vector<10x32xf32>
    %cst_106 = arith.constant 0.353553385 : f32
    %201 = vector.broadcast %cst_106 : f32 to vector<8x32xf32>
    %202 = arith.mulf %186, %201 : vector<8x32xf32>
    %203 = arith.truncf %202 : vector<8x32xf32> to vector<8x32xbf16>
    %204 = arith.truncf %193 : vector<10x32xf32> to vector<10x32xbf16>
    %205 = arith.truncf %200 : vector<10x32xf32> to vector<10x32xbf16>
    %c0_107 = arith.constant 0 : index
    %c7 = arith.constant 7 : index
    %c0_108 = arith.constant 0 : index
    %c0_109 = arith.constant 0 : index
    %206 = vector.load %arg6[%c0_107, %c7, %c0_108, %c0_109] : memref<1x8x32x32xbf16, #tpu.memory_space<vmem>>, vector<1x1x32x32xbf16>
    %207 = vector.shape_cast %206 : vector<1x1x32x32xbf16> to vector<32x32xbf16>
    %cst_110 = arith.constant 0.000000e+00 : f32
    %208 = vector.broadcast %cst_110 : f32 to vector<8x32xf32>
    %209 = vector.extract_strided_slice %203 {offsets = [0, 0], sizes = [8, 8], strides = [1, 1]} : vector<8x32xbf16> to vector<8x8xbf16>
    %210 = vector.extract_strided_slice %204 {offsets = [0, 0], sizes = [10, 8], strides = [1, 1]} : vector<10x32xbf16> to vector<10x8xbf16>
    "tpu.trace_start"() <{level = 10 : i32, message = "qd,kd->qk"}> : () -> ()
    %cst_111 = arith.constant dense<0.000000e+00> : vector<8x10xf32>
    %211 = tpu.matmul %209, %210, %cst_111 {dimension_numbers = #tpu.dot_dimension_numbers<[1], [1], [0], [0], [0, 0, 1, 0], [], []>} : vector<8x8xbf16>, vector<10x8xbf16>, vector<8x10xf32> -> vector<8x10xf32>
    "tpu.trace_stop"() : () -> ()
    %212 = arith.addf %211, %10 : vector<8x10xf32>
    %cst_112 = arith.constant dense<0xFF800000> : vector<8xf32>
    %213 = vector.multi_reduction <maximumf>, %212, %cst_112 [1] : vector<8x10xf32> to vector<8xf32>
    %214 = vector.shape_cast %213 : vector<8xf32> to vector<8x1xf32>
    %215 = vector.broadcast %214 : vector<8x1xf32> to vector<8x10xf32>
    %216 = arith.subf %212, %215 : vector<8x10xf32>
    %217 = math.exp %216 : vector<8x10xf32>
    %cst_113 = arith.constant dense<0.000000e+00> : vector<8xf32>
    %218 = vector.multi_reduction <add>, %217, %cst_113 [1] : vector<8x10xf32> to vector<8xf32>
    %219 = vector.shape_cast %218 : vector<8xf32> to vector<8x1xf32>
    %220 = vector.broadcast %219 : vector<8x1xf32> to vector<8x10xf32>
    %221 = arith.divf %217, %220 : vector<8x10xf32>
    %222 = arith.truncf %221 : vector<8x10xf32> to vector<8x10xbf16>
    %223 = vector.extract_strided_slice %205 {offsets = [0, 0], sizes = [10, 8], strides = [1, 1]} : vector<10x32xbf16> to vector<10x8xbf16>
    %cst_114 = arith.constant dense<0.000000e+00> : vector<8x8xf32>
    %224 = tpu.matmul %222, %223, %cst_114 {dimension_numbers = #tpu.dot_dimension_numbers<[1], [0], [0], [1], [0, 0, 1, 1], [], []>} : vector<8x10xbf16>, vector<10x8xbf16>, vector<8x8xf32> -> vector<8x8xf32>
    %225 = arith.truncf %224 : vector<8x8xf32> to vector<8x8xbf16>
    %226 = vector.extract_strided_slice %207 {offsets = [0, 0], sizes = [8, 32], strides = [1, 1]} : vector<32x32xbf16> to vector<8x32xbf16>
    %cst_115 = arith.constant dense<0.000000e+00> : vector<8x32xf32>
    %227 = tpu.matmul %225, %226, %cst_115 {dimension_numbers = #tpu.dot_dimension_numbers<[1], [0], [0], [1], [0, 0, 1, 1], [], []>} : vector<8x8xbf16>, vector<8x32xbf16>, vector<8x32xf32> -> vector<8x32xf32>
    %228 = arith.addf %208, %227 : vector<8x32xf32>
    %229 = vector.extract_strided_slice %203 {offsets = [0, 8], sizes = [8, 8], strides = [1, 1]} : vector<8x32xbf16> to vector<8x8xbf16>
    %230 = vector.extract_strided_slice %204 {offsets = [0, 8], sizes = [10, 8], strides = [1, 1]} : vector<10x32xbf16> to vector<10x8xbf16>
    "tpu.trace_start"() <{level = 10 : i32, message = "qd,kd->qk"}> : () -> ()
    %cst_116 = arith.constant dense<0.000000e+00> : vector<8x10xf32>
    %231 = tpu.matmul %229, %230, %cst_116 {dimension_numbers = #tpu.dot_dimension_numbers<[1], [1], [0], [0], [0, 0, 1, 0], [], []>} : vector<8x8xbf16>, vector<10x8xbf16>, vector<8x10xf32> -> vector<8x10xf32>
    "tpu.trace_stop"() : () -> ()
    %232 = arith.addf %231, %10 : vector<8x10xf32>
    %cst_117 = arith.constant dense<0xFF800000> : vector<8xf32>
    %233 = vector.multi_reduction <maximumf>, %232, %cst_117 [1] : vector<8x10xf32> to vector<8xf32>
    %234 = vector.shape_cast %233 : vector<8xf32> to vector<8x1xf32>
    %235 = vector.broadcast %234 : vector<8x1xf32> to vector<8x10xf32>
    %236 = arith.subf %232, %235 : vector<8x10xf32>
    %237 = math.exp %236 : vector<8x10xf32>
    %cst_118 = arith.constant dense<0.000000e+00> : vector<8xf32>
    %238 = vector.multi_reduction <add>, %237, %cst_118 [1] : vector<8x10xf32> to vector<8xf32>
    %239 = vector.shape_cast %238 : vector<8xf32> to vector<8x1xf32>
    %240 = vector.broadcast %239 : vector<8x1xf32> to vector<8x10xf32>
    %241 = arith.divf %237, %240 : vector<8x10xf32>
    %242 = arith.truncf %241 : vector<8x10xf32> to vector<8x10xbf16>
    %243 = vector.extract_strided_slice %205 {offsets = [0, 8], sizes = [10, 8], strides = [1, 1]} : vector<10x32xbf16> to vector<10x8xbf16>
    %cst_119 = arith.constant dense<0.000000e+00> : vector<8x8xf32>
    %244 = tpu.matmul %242, %243, %cst_119 {dimension_numbers = #tpu.dot_dimension_numbers<[1], [0], [0], [1], [0, 0, 1, 1], [], []>} : vector<8x10xbf16>, vector<10x8xbf16>, vector<8x8xf32> -> vector<8x8xf32>
    %245 = arith.truncf %244 : vector<8x8xf32> to vector<8x8xbf16>
    %246 = vector.extract_strided_slice %207 {offsets = [8, 0], sizes = [8, 32], strides = [1, 1]} : vector<32x32xbf16> to vector<8x32xbf16>
    %cst_120 = arith.constant dense<0.000000e+00> : vector<8x32xf32>
    %247 = tpu.matmul %245, %246, %cst_120 {dimension_numbers = #tpu.dot_dimension_numbers<[1], [0], [0], [1], [0, 0, 1, 1], [], []>} : vector<8x8xbf16>, vector<8x32xbf16>, vector<8x32xf32> -> vector<8x32xf32>
    %248 = arith.addf %228, %247 : vector<8x32xf32>
    %249 = vector.extract_strided_slice %203 {offsets = [0, 16], sizes = [8, 8], strides = [1, 1]} : vector<8x32xbf16> to vector<8x8xbf16>
    %250 = vector.extract_strided_slice %204 {offsets = [0, 16], sizes = [10, 8], strides = [1, 1]} : vector<10x32xbf16> to vector<10x8xbf16>
    "tpu.trace_start"() <{level = 10 : i32, message = "qd,kd->qk"}> : () -> ()
    %cst_121 = arith.constant dense<0.000000e+00> : vector<8x10xf32>
    %251 = tpu.matmul %249, %250, %cst_121 {dimension_numbers = #tpu.dot_dimension_numbers<[1], [1], [0], [0], [0, 0, 1, 0], [], []>} : vector<8x8xbf16>, vector<10x8xbf16>, vector<8x10xf32> -> vector<8x10xf32>
    "tpu.trace_stop"() : () -> ()
    %252 = arith.addf %251, %10 : vector<8x10xf32>
    %cst_122 = arith.constant dense<0xFF800000> : vector<8xf32>
    %253 = vector.multi_reduction <maximumf>, %252, %cst_122 [1] : vector<8x10xf32> to vector<8xf32>
    %254 = vector.shape_cast %253 : vector<8xf32> to vector<8x1xf32>
    %255 = vector.broadcast %254 : vector<8x1xf32> to vector<8x10xf32>
    %256 = arith.subf %252, %255 : vector<8x10xf32>
    %257 = math.exp %256 : vector<8x10xf32>
    %cst_123 = arith.constant dense<0.000000e+00> : vector<8xf32>
    %258 = vector.multi_reduction <add>, %257, %cst_123 [1] : vector<8x10xf32> to vector<8xf32>
    %259 = vector.shape_cast %258 : vector<8xf32> to vector<8x1xf32>
    %260 = vector.broadcast %259 : vector<8x1xf32> to vector<8x10xf32>
    %261 = arith.divf %257, %260 : vector<8x10xf32>
    %262 = arith.truncf %261 : vector<8x10xf32> to vector<8x10xbf16>
    %263 = vector.extract_strided_slice %205 {offsets = [0, 16], sizes = [10, 8], strides = [1, 1]} : vector<10x32xbf16> to vector<10x8xbf16>
    %cst_124 = arith.constant dense<0.000000e+00> : vector<8x8xf32>
    %264 = tpu.matmul %262, %263, %cst_124 {dimension_numbers = #tpu.dot_dimension_numbers<[1], [0], [0], [1], [0, 0, 1, 1], [], []>} : vector<8x10xbf16>, vector<10x8xbf16>, vector<8x8xf32> -> vector<8x8xf32>
    %265 = arith.truncf %264 : vector<8x8xf32> to vector<8x8xbf16>
    %266 = vector.extract_strided_slice %207 {offsets = [16, 0], sizes = [8, 32], strides = [1, 1]} : vector<32x32xbf16> to vector<8x32xbf16>
    %cst_125 = arith.constant dense<0.000000e+00> : vector<8x32xf32>
    %267 = tpu.matmul %265, %266, %cst_125 {dimension_numbers = #tpu.dot_dimension_numbers<[1], [0], [0], [1], [0, 0, 1, 1], [], []>} : vector<8x8xbf16>, vector<8x32xbf16>, vector<8x32xf32> -> vector<8x32xf32>
    %268 = arith.addf %248, %267 : vector<8x32xf32>
    %269 = vector.extract_strided_slice %203 {offsets = [0, 24], sizes = [8, 8], strides = [1, 1]} : vector<8x32xbf16> to vector<8x8xbf16>
    %270 = vector.extract_strided_slice %204 {offsets = [0, 24], sizes = [10, 8], strides = [1, 1]} : vector<10x32xbf16> to vector<10x8xbf16>
    "tpu.trace_start"() <{level = 10 : i32, message = "qd,kd->qk"}> : () -> ()
    %cst_126 = arith.constant dense<0.000000e+00> : vector<8x10xf32>
    %271 = tpu.matmul %269, %270, %cst_126 {dimension_numbers = #tpu.dot_dimension_numbers<[1], [1], [0], [0], [0, 0, 1, 0], [], []>} : vector<8x8xbf16>, vector<10x8xbf16>, vector<8x10xf32> -> vector<8x10xf32>
    "tpu.trace_stop"() : () -> ()
    %272 = arith.addf %271, %10 : vector<8x10xf32>
    %cst_127 = arith.constant dense<0xFF800000> : vector<8xf32>
    %273 = vector.multi_reduction <maximumf>, %272, %cst_127 [1] : vector<8x10xf32> to vector<8xf32>
    %274 = vector.shape_cast %273 : vector<8xf32> to vector<8x1xf32>
    %275 = vector.broadcast %274 : vector<8x1xf32> to vector<8x10xf32>
    %276 = arith.subf %272, %275 : vector<8x10xf32>
    %277 = math.exp %276 : vector<8x10xf32>
    %cst_128 = arith.constant dense<0.000000e+00> : vector<8xf32>
    %278 = vector.multi_reduction <add>, %277, %cst_128 [1] : vector<8x10xf32> to vector<8xf32>
    %279 = vector.shape_cast %278 : vector<8xf32> to vector<8x1xf32>
    %280 = vector.broadcast %279 : vector<8x1xf32> to vector<8x10xf32>
    %281 = arith.divf %277, %280 : vector<8x10xf32>
    %282 = arith.truncf %281 : vector<8x10xf32> to vector<8x10xbf16>
    %283 = vector.extract_strided_slice %205 {offsets = [0, 24], sizes = [10, 8], strides = [1, 1]} : vector<10x32xbf16> to vector<10x8xbf16>
    %cst_129 = arith.constant dense<0.000000e+00> : vector<8x8xf32>
    %284 = tpu.matmul %282, %283, %cst_129 {dimension_numbers = #tpu.dot_dimension_numbers<[1], [0], [0], [1], [0, 0, 1, 1], [], []>} : vector<8x10xbf16>, vector<10x8xbf16>, vector<8x8xf32> -> vector<8x8xf32>
    %285 = arith.truncf %284 : vector<8x8xf32> to vector<8x8xbf16>
    %286 = vector.extract_strided_slice %207 {offsets = [24, 0], sizes = [8, 32], strides = [1, 1]} : vector<32x32xbf16> to vector<8x32xbf16>
    %cst_130 = arith.constant dense<0.000000e+00> : vector<8x32xf32>
    %287 = tpu.matmul %285, %286, %cst_130 {dimension_numbers = #tpu.dot_dimension_numbers<[1], [0], [0], [1], [0, 0, 1, 1], [], []>} : vector<8x8xbf16>, vector<8x32xbf16>, vector<8x32xf32> -> vector<8x32xf32>
    %288 = arith.addf %268, %287 : vector<8x32xf32>
    %c0_131 = arith.constant 0 : index
    %c7_132 = arith.constant 7 : index
    %c0_133 = arith.constant 0 : index
    %289 = vector.load %arg7[%c0_131, %c7_132, %c0_133] : memref<1x8x32xf32, #tpu.memory_space<vmem>>, vector<1x1x32xf32>
    %290 = vector.shape_cast %289 : vector<1x1x32xf32> to vector<1x32xf32>
    %291 = vector.broadcast %290 : vector<1x32xf32> to vector<8x32xf32>
    %292 = arith.addf %288, %291 : vector<8x32xf32>
    %293 = arith.addf %152, %292 : vector<8x32xf32>
    %c0_134 = arith.constant 0 : index
    %c4_135 = arith.constant 4 : index
    %c0_136 = arith.constant 0 : index
    %294 = vector.load %arg8[%c0_134, %c4_135, %c0_136] : memref<1x6x32xf32, #tpu.memory_space<vmem>>, vector<1x1x32xf32>
    %295 = vector.shape_cast %294 : vector<1x1x32xf32> to vector<1x32xf32>
    %c0_137 = arith.constant 0 : index
    %c5_138 = arith.constant 5 : index
    %c0_139 = arith.constant 0 : index
    %296 = vector.load %arg8[%c0_137, %c5_138, %c0_139] : memref<1x6x32xf32, #tpu.memory_space<vmem>>, vector<1x1x32xf32>
    %297 = vector.shape_cast %296 : vector<1x1x32xf32> to vector<1x32xf32>
    %cst_140 = arith.constant dense<0.000000e+00> : vector<8xf32>
    %298 = vector.multi_reduction <add>, %293, %cst_140 [1] : vector<8x32xf32> to vector<8xf32>
    %299 = vector.shape_cast %298 : vector<8xf32> to vector<8x1xf32>
    %cst_141 = arith.constant 3.200000e+01 : f32
    %300 = vector.broadcast %cst_141 : f32 to vector<8x1xf32>
    %301 = arith.divf %299, %300 : vector<8x1xf32>
    %302 = vector.broadcast %301 : vector<8x1xf32> to vector<8x32xf32>
    %303 = arith.subf %293, %302 : vector<8x32xf32>
    %304 = arith.mulf %303, %303 : vector<8x32xf32>
    %cst_142 = arith.constant dense<0.000000e+00> : vector<8xf32>
    %305 = vector.multi_reduction <add>, %304, %cst_142 [1] : vector<8x32xf32> to vector<8xf32>
    %306 = vector.shape_cast %305 : vector<8xf32> to vector<8x1xf32>
    %cst_143 = arith.constant 0.0322580636 : f32
    %307 = vector.broadcast %cst_143 : f32 to vector<8x1xf32>
    %308 = arith.mulf %306, %307 : vector<8x1xf32>
    %309 = math.sqrt %308 : vector<8x1xf32>
    %cst_144 = arith.constant 9.99999997E-7 : f32
    %310 = vector.broadcast %cst_144 : f32 to vector<8x1xf32>
    %311 = arith.addf %309, %310 : vector<8x1xf32>
    %cst_145 = arith.constant 1.000000e+00 : f32
    %312 = vector.broadcast %cst_145 : f32 to vector<8x1xf32>
    %313 = arith.divf %312, %311 : vector<8x1xf32>
    %314 = vector.broadcast %295 : vector<1x32xf32> to vector<8x32xf32>
    %315 = arith.mulf %314, %303 : vector<8x32xf32>
    %316 = vector.broadcast %313 : vector<8x1xf32> to vector<8x32xf32>
    %317 = arith.mulf %315, %316 : vector<8x32xf32>
    %318 = vector.broadcast %297 : vector<1x32xf32> to vector<8x32xf32>
    %319 = arith.addf %317, %318 : vector<8x32xf32>
    %320 = arith.truncf %319 : vector<8x32xf32> to vector<8x32xbf16>
    %cst_146 = arith.constant 0.000000e+00 : f32
    %321 = vector.broadcast %cst_146 : f32 to vector<8x32xf32>
    %c0_147 = arith.constant 0 : index
    %c0_148 = arith.constant 0 : index
    %c0_149 = arith.constant 0 : index
    %322 = vector.load %arg9[%c0_147, %c0_148, %c0_149] : memref<1x32x2048xbf16, #tpu.memory_space<vmem>>, vector<1x32x512xbf16>
    %323 = vector.shape_cast %322 : vector<1x32x512xbf16> to vector<32x512xbf16>
    %cst_150 = arith.constant dense<0.000000e+00> : vector<8x512xf32>
    %324 = tpu.matmul %320, %323, %cst_150 {dimension_numbers = #tpu.dot_dimension_numbers<[1], [0], [0], [1], [0, 0, 1, 1], [], []>} : vector<8x32xbf16>, vector<32x512xbf16>, vector<8x512xf32> -> vector<8x512xf32>
    %c0_151 = arith.constant 0 : index
    %c0_152 = arith.constant 0 : index
    %c0_153 = arith.constant 0 : index
    %325 = vector.load %arg10[%c0_151, %c0_152, %c0_153] : memref<1x1x2048xf32, #tpu.memory_space<vmem>>, vector<1x1x512xf32>
    %326 = vector.shape_cast %325 : vector<1x1x512xf32> to vector<1x512xf32>
    %327 = vector.broadcast %326 : vector<1x512xf32> to vector<8x512xf32>
    %328 = arith.addf %324, %327 : vector<8x512xf32>
    %cst_154 = arith.constant 0.000000e+00 : f32
    %329 = vector.broadcast %cst_154 : f32 to vector<8x512xf32>
    %330 = arith.maximumf %328, %329 : vector<8x512xf32>
    %331 = arith.truncf %330 : vector<8x512xf32> to vector<8x512xbf16>
    %c0_155 = arith.constant 0 : index
    %c0_156 = arith.constant 0 : index
    %c0_157 = arith.constant 0 : index
    %332 = vector.load %arg11[%c0_155, %c0_156, %c0_157] : memref<1x2048x32xbf16, #tpu.memory_space<vmem>>, vector<1x512x32xbf16>
    %333 = vector.shape_cast %332 : vector<1x512x32xbf16> to vector<512x32xbf16>
    %cst_158 = arith.constant dense<0.000000e+00> : vector<8x32xf32>
    %334 = tpu.matmul %331, %333, %cst_158 {dimension_numbers = #tpu.dot_dimension_numbers<[1], [0], [0], [1], [0, 0, 1, 1], [], []>} : vector<8x512xbf16>, vector<512x32xbf16>, vector<8x32xf32> -> vector<8x32xf32>
    %335 = arith.addf %321, %334 : vector<8x32xf32>
    %c0_159 = arith.constant 0 : index
    %c0_160 = arith.constant 0 : index
    %c512 = arith.constant 512 : index
    %336 = vector.load %arg9[%c0_159, %c0_160, %c512] : memref<1x32x2048xbf16, #tpu.memory_space<vmem>>, vector<1x32x512xbf16>
    %337 = vector.shape_cast %336 : vector<1x32x512xbf16> to vector<32x512xbf16>
    %cst_161 = arith.constant dense<0.000000e+00> : vector<8x512xf32>
    %338 = tpu.matmul %320, %337, %cst_161 {dimension_numbers = #tpu.dot_dimension_numbers<[1], [0], [0], [1], [0, 0, 1, 1], [], []>} : vector<8x32xbf16>, vector<32x512xbf16>, vector<8x512xf32> -> vector<8x512xf32>
    %c0_162 = arith.constant 0 : index
    %c0_163 = arith.constant 0 : index
    %c512_164 = arith.constant 512 : index
    %339 = vector.load %arg10[%c0_162, %c0_163, %c512_164] : memref<1x1x2048xf32, #tpu.memory_space<vmem>>, vector<1x1x512xf32>
    %340 = vector.shape_cast %339 : vector<1x1x512xf32> to vector<1x512xf32>
    %341 = vector.broadcast %340 : vector<1x512xf32> to vector<8x512xf32>
    %342 = arith.addf %338, %341 : vector<8x512xf32>
    %cst_165 = arith.constant 0.000000e+00 : f32
    %343 = vector.broadcast %cst_165 : f32 to vector<8x512xf32>
    %344 = arith.maximumf %342, %343 : vector<8x512xf32>
    %345 = arith.truncf %344 : vector<8x512xf32> to vector<8x512xbf16>
    %c0_166 = arith.constant 0 : index
    %c512_167 = arith.constant 512 : index
    %c0_168 = arith.constant 0 : index
    %346 = vector.load %arg11[%c0_166, %c512_167, %c0_168] : memref<1x2048x32xbf16, #tpu.memory_space<vmem>>, vector<1x512x32xbf16>
    %347 = vector.shape_cast %346 : vector<1x512x32xbf16> to vector<512x32xbf16>
    %cst_169 = arith.constant dense<0.000000e+00> : vector<8x32xf32>
    %348 = tpu.matmul %345, %347, %cst_169 {dimension_numbers = #tpu.dot_dimension_numbers<[1], [0], [0], [1], [0, 0, 1, 1], [], []>} : vector<8x512xbf16>, vector<512x32xbf16>, vector<8x32xf32> -> vector<8x32xf32>
    %349 = arith.addf %335, %348 : vector<8x32xf32>
    %c0_170 = arith.constant 0 : index
    %c0_171 = arith.constant 0 : index
    %c1024 = arith.constant 1024 : index
    %350 = vector.load %arg9[%c0_170, %c0_171, %c1024] : memref<1x32x2048xbf16, #tpu.memory_space<vmem>>, vector<1x32x512xbf16>
    %351 = vector.shape_cast %350 : vector<1x32x512xbf16> to vector<32x512xbf16>
    %cst_172 = arith.constant dense<0.000000e+00> : vector<8x512xf32>
    %352 = tpu.matmul %320, %351, %cst_172 {dimension_numbers = #tpu.dot_dimension_numbers<[1], [0], [0], [1], [0, 0, 1, 1], [], []>} : vector<8x32xbf16>, vector<32x512xbf16>, vector<8x512xf32> -> vector<8x512xf32>
    %c0_173 = arith.constant 0 : index
    %c0_174 = arith.constant 0 : index
    %c1024_175 = arith.constant 1024 : index
    %353 = vector.load %arg10[%c0_173, %c0_174, %c1024_175] : memref<1x1x2048xf32, #tpu.memory_space<vmem>>, vector<1x1x512xf32>
    %354 = vector.shape_cast %353 : vector<1x1x512xf32> to vector<1x512xf32>
    %355 = vector.broadcast %354 : vector<1x512xf32> to vector<8x512xf32>
    %356 = arith.addf %352, %355 : vector<8x512xf32>
    %cst_176 = arith.constant 0.000000e+00 : f32
    %357 = vector.broadcast %cst_176 : f32 to vector<8x512xf32>
    %358 = arith.maximumf %356, %357 : vector<8x512xf32>
    %359 = arith.truncf %358 : vector<8x512xf32> to vector<8x512xbf16>
    %c0_177 = arith.constant 0 : index
    %c1024_178 = arith.constant 1024 : index
    %c0_179 = arith.constant 0 : index
    %360 = vector.load %arg11[%c0_177, %c1024_178, %c0_179] : memref<1x2048x32xbf16, #tpu.memory_space<vmem>>, vector<1x512x32xbf16>
    %361 = vector.shape_cast %360 : vector<1x512x32xbf16> to vector<512x32xbf16>
    %cst_180 = arith.constant dense<0.000000e+00> : vector<8x32xf32>
    %362 = tpu.matmul %359, %361, %cst_180 {dimension_numbers = #tpu.dot_dimension_numbers<[1], [0], [0], [1], [0, 0, 1, 1], [], []>} : vector<8x512xbf16>, vector<512x32xbf16>, vector<8x32xf32> -> vector<8x32xf32>
    %363 = arith.addf %349, %362 : vector<8x32xf32>
    %c0_181 = arith.constant 0 : index
    %c0_182 = arith.constant 0 : index
    %c1536 = arith.constant 1536 : index
    %364 = vector.load %arg9[%c0_181, %c0_182, %c1536] : memref<1x32x2048xbf16, #tpu.memory_space<vmem>>, vector<1x32x512xbf16>
    %365 = vector.shape_cast %364 : vector<1x32x512xbf16> to vector<32x512xbf16>
    %cst_183 = arith.constant dense<0.000000e+00> : vector<8x512xf32>
    %366 = tpu.matmul %320, %365, %cst_183 {dimension_numbers = #tpu.dot_dimension_numbers<[1], [0], [0], [1], [0, 0, 1, 1], [], []>} : vector<8x32xbf16>, vector<32x512xbf16>, vector<8x512xf32> -> vector<8x512xf32>
    %c0_184 = arith.constant 0 : index
    %c0_185 = arith.constant 0 : index
    %c1536_186 = arith.constant 1536 : index
    %367 = vector.load %arg10[%c0_184, %c0_185, %c1536_186] : memref<1x1x2048xf32, #tpu.memory_space<vmem>>, vector<1x1x512xf32>
    %368 = vector.shape_cast %367 : vector<1x1x512xf32> to vector<1x512xf32>
    %369 = vector.broadcast %368 : vector<1x512xf32> to vector<8x512xf32>
    %370 = arith.addf %366, %369 : vector<8x512xf32>
    %cst_187 = arith.constant 0.000000e+00 : f32
    %371 = vector.broadcast %cst_187 : f32 to vector<8x512xf32>
    %372 = arith.maximumf %370, %371 : vector<8x512xf32>
    %373 = arith.truncf %372 : vector<8x512xf32> to vector<8x512xbf16>
    %c0_188 = arith.constant 0 : index
    %c1536_189 = arith.constant 1536 : index
    %c0_190 = arith.constant 0 : index
    %374 = vector.load %arg11[%c0_188, %c1536_189, %c0_190] : memref<1x2048x32xbf16, #tpu.memory_space<vmem>>, vector<1x512x32xbf16>
    %375 = vector.shape_cast %374 : vector<1x512x32xbf16> to vector<512x32xbf16>
    %cst_191 = arith.constant dense<0.000000e+00> : vector<8x32xf32>
    %376 = tpu.matmul %373, %375, %cst_191 {dimension_numbers = #tpu.dot_dimension_numbers<[1], [0], [0], [1], [0, 0, 1, 1], [], []>} : vector<8x512xbf16>, vector<512x32xbf16>, vector<8x32xf32> -> vector<8x32xf32>
    %377 = arith.addf %363, %376 : vector<8x32xf32>
    %378 = arith.addf %293, %377 : vector<8x32xf32>
    %c0_192 = arith.constant 0 : index
    %c0_193 = arith.constant 0 : index
    %c0_194 = arith.constant 0 : index
    %379 = vector.load %arg12[%c0_192, %c0_193, %c0_194] : memref<1x1x32xf32, #tpu.memory_space<vmem>>, vector<1x1x32xf32>
    %380 = vector.shape_cast %379 : vector<1x1x32xf32> to vector<1x32xf32>
    %381 = vector.broadcast %380 : vector<1x32xf32> to vector<8x32xf32>
    %382 = arith.addf %378, %381 : vector<8x32xf32>
    %c1_i32 = arith.constant 1 : i32
    %383 = arith.cmpi ne, %arg1, %c1_i32 : i32
    %384 = arith.extui %383 : i1 to i32
    %c0_i32_195 = arith.constant 0 : i32
    %385 = arith.cmpi ne, %384, %c0_i32_195 : i32
    scf.if %385 {
      %c0_198 = arith.constant 0 : index
      %c0_199 = arith.constant 0 : index
      %c0_200 = arith.constant 0 : index
      %389 = vector.load %arg14[%c0_198, %c0_199, %c0_200] : memref<1x8x32xf32, #tpu.memory_space<vmem>>, vector<1x8x32xf32>
      %390 = vector.shape_cast %389 : vector<1x8x32xf32> to vector<8x32xf32>
      %391 = vector.shape_cast %382 : vector<8x32xf32> to vector<1x8x32xf32>
      tpu.vector_store %arg14[%c0_198, %c0_199, %c0_200], %391 {strides = array<i32>} : memref<1x8x32xf32, #tpu.memory_space<vmem>>, vector<1x8x32xf32>,
    } else {
    }
    %c1_i32_196 = arith.constant 1 : i32
    %386 = arith.cmpi eq, %arg1, %c1_i32_196 : i32
    %387 = arith.extui %386 : i1 to i32
    %c0_i32_197 = arith.constant 0 : i32
    %388 = arith.cmpi ne, %387, %c0_i32_197 : i32
    scf.if %388 {
      %c0_198 = arith.constant 0 : index
      %c0_199 = arith.constant 0 : index
      %389 = vector.load %arg13[%c0_198, %c0_199] : memref<2x32xf32, #tpu.memory_space<vmem>>, vector<1x32xf32>
      %c1_200 = arith.constant 1 : index
      %c0_201 = arith.constant 0 : index
      %390 = vector.load %arg13[%c1_200, %c0_201] : memref<2x32xf32, #tpu.memory_space<vmem>>, vector<1x32xf32>
      %cst_202 = arith.constant dense<0.000000e+00> : vector<8xf32>
      %391 = vector.multi_reduction <add>, %382, %cst_202 [1] : vector<8x32xf32> to vector<8xf32>
      %392 = vector.shape_cast %391 : vector<8xf32> to vector<8x1xf32>
      %cst_203 = arith.constant 3.200000e+01 : f32
      %393 = vector.broadcast %cst_203 : f32 to vector<8x1xf32>
      %394 = arith.divf %392, %393 : vector<8x1xf32>
      %395 = vector.broadcast %394 : vector<8x1xf32> to vector<8x32xf32>
      %396 = arith.subf %382, %395 : vector<8x32xf32>
      %397 = arith.mulf %396, %396 : vector<8x32xf32>
      %cst_204 = arith.constant dense<0.000000e+00> : vector<8xf32>
      %398 = vector.multi_reduction <add>, %397, %cst_204 [1] : vector<8x32xf32> to vector<8xf32>
      %399 = vector.shape_cast %398 : vector<8xf32> to vector<8x1xf32>
      %cst_205 = arith.constant 0.0322580636 : f32
      %400 = vector.broadcast %cst_205 : f32 to vector<8x1xf32>
      %401 = arith.mulf %399, %400 : vector<8x1xf32>
      %402 = math.sqrt %401 : vector<8x1xf32>
      %cst_206 = arith.constant 9.99999997E-7 : f32
      %403 = vector.broadcast %cst_206 : f32 to vector<8x1xf32>
      %404 = arith.addf %402, %403 : vector<8x1xf32>
      %cst_207 = arith.constant 1.000000e+00 : f32
      %405 = vector.broadcast %cst_207 : f32 to vector<8x1xf32>
      %406 = arith.divf %405, %404 : vector<8x1xf32>
      %407 = vector.broadcast %389 : vector<1x32xf32> to vector<8x32xf32>
      %408 = arith.mulf %407, %396 : vector<8x32xf32>
      %409 = vector.broadcast %406 : vector<8x1xf32> to vector<8x32xf32>
      %410 = arith.mulf %408, %409 : vector<8x32xf32>
      %411 = vector.broadcast %390 : vector<1x32xf32> to vector<8x32xf32>
      %412 = arith.addf %410, %411 : vector<8x32xf32>
      %c0_208 = arith.constant 0 : index
      %c0_209 = arith.constant 0 : index
      %c0_210 = arith.constant 0 : index
      %413 = vector.load %arg14[%c0_208, %c0_209, %c0_210] : memref<1x8x32xf32, #tpu.memory_space<vmem>>, vector<1x8x32xf32>
      %414 = vector.shape_cast %413 : vector<1x8x32xf32> to vector<8x32xf32>
      %415 = vector.shape_cast %412 : vector<8x32xf32> to vector<1x8x32xf32>
      tpu.vector_store %arg14[%c0_208, %c0_209, %c0_210], %415 {strides = array<i32>} : memref<1x8x32xf32, #tpu.memory_space<vmem>>, vector<1x8x32xf32>,
    } else {
    }
    return
  }
  func.func @transform_0(%arg0: i32, %arg1: i32) -> (i32, i32, i32) {
    %c0_i32 = arith.constant 0 : i32
    %c0_i32_0 = arith.constant 0 : i32
    %c0_i32_1 = arith.constant 0 : i32
    return %arg0, %c0_i32, %c0_i32_0 : i32, i32, i32
  }
  func.func @transform_1(%arg0: i32, %arg1: i32) -> (i32, i32, i32) {
    %c0_i32 = arith.constant 0 : i32
    %c0_i32_0 = arith.constant 0 : i32
    %c0_i32_1 = arith.constant 0 : i32
    return %arg0, %c0_i32, %c0_i32_0 : i32, i32, i32
  }
  func.func @transform_2(%arg0: i32, %arg1: i32) -> (i32, i32, i32) {
    %c0_i32 = arith.constant 0 : i32
    %c0_i32_0 = arith.constant 0 : i32
    %c0_i32_1 = arith.constant 0 : i32
    return %arg0, %c0_i32, %c0_i32_0 : i32, i32, i32
  }
  func.func @transform_3(%arg0: i32, %arg1: i32) -> (i32, i32, i32) {
    %c0_i32 = arith.constant 0 : i32
    %c0_i32_0 = arith.constant 0 : i32
    %c0_i32_1 = arith.constant 0 : i32
    return %arg0, %c0_i32, %c0_i32_0 : i32, i32, i32
  }
  func.func @transform_4(%arg0: i32, %arg1: i32) -> (i32, i32, i32, i32) {
    %c0_i32 = arith.constant 0 : i32
    %c0_i32_0 = arith.constant 0 : i32
    %c0_i32_1 = arith.constant 0 : i32
    %c0_i32_2 = arith.constant 0 : i32
    return %arg1, %c0_i32, %c0_i32_0, %c0_i32_1 : i32, i32, i32, i32
  }
  func.func @transform_5(%arg0: i32, %arg1: i32) -> (i32, i32, i32) {
    %c0_i32 = arith.constant 0 : i32
    %c0_i32_0 = arith.constant 0 : i32
    %c0_i32_1 = arith.constant 0 : i32
    return %arg1, %c0_i32, %c0_i32_0 : i32, i32, i32
  }
  func.func @transform_6(%arg0: i32, %arg1: i32) -> (i32, i32, i32) {
    %c0_i32 = arith.constant 0 : i32
    %c0_i32_0 = arith.constant 0 : i32
    %c0_i32_1 = arith.constant 0 : i32
    return %arg1, %c0_i32, %c0_i32_0 : i32, i32, i32
  }
  func.func @transform_7(%arg0: i32, %arg1: i32) -> (i32, i32, i32) {
    %c0_i32 = arith.constant 0 : i32
    %c0_i32_0 = arith.constant 0 : i32
    %c0_i32_1 = arith.constant 0 : i32
    return %arg1, %c0_i32, %c0_i32_0 : i32, i32, i32
  }
  func.func @transform_8(%arg0: i32, %arg1: i32) -> (i32, i32, i32) {
    %c0_i32 = arith.constant 0 : i32
    %c0_i32_0 = arith.constant 0 : i32
    %c0_i32_1 = arith.constant 0 : i32
    return %arg1, %c0_i32, %c0_i32_0 : i32, i32, i32
  }
  func.func @transform_9(%arg0: i32, %arg1: i32) -> (i32, i32, i32) {
    %c0_i32 = arith.constant 0 : i32
    %c0_i32_0 = arith.constant 0 : i32
    %c0_i32_1 = arith.constant 0 : i32
    return %arg1, %c0_i32, %c0_i32_0 : i32, i32, i32
  }
  func.func @transform_10(%arg0: i32, %arg1: i32) -> (i32, i32, i32) {
    %c0_i32 = arith.constant 0 : i32
    %c0_i32_0 = arith.constant 0 : i32
    %c0_i32_1 = arith.constant 0 : i32
    return %arg1, %c0_i32, %c0_i32_0 : i32, i32, i32
  }
  func.func @transform_11(%arg0: i32, %arg1: i32) -> (i32, i32) {
    %c0_i32 = arith.constant 0 : i32
    %c0_i32_0 = arith.constant 0 : i32
    %c0_i32_1 = arith.constant 0 : i32
    return %c0_i32, %c0_i32_0 : i32, i32
  }
  func.func @transform_12(%arg0: i32, %arg1: i32) -> (i32, i32, i32) {
    %c0_i32 = arith.constant 0 : i32
    %c0_i32_0 = arith.constant 0 : i32
    %c0_i32_1 = arith.constant 0 : i32
    return %arg0, %c0_i32, %c0_i32_0 : i32, i32, i32
  }
}

</mosaic_0001>

<bundles_post_ra>
// kernel: decoder_forward.1
= control target key start
LH: loop header
LB: loop body
LE: loop exit
PB: predicated region body
PF: predicated region fallthrough
CT: control target
= control target key end

     0   :  { %s6684_s0 = inlined_call_operand.hbm [shape: f32[2,8,32], index: 0, kind: input, shape index: {}, may-alias: {0,12}]   ;;  %s6685_s1 = inlined_call_operand.vmem [shape: bf16[2,10,32], index: 1, kind: input, shape index: {}]   ;;  %s6686_s2 = inlined_call_operand.vmem [shape: f32[2,8,8], index: 2, kind: input, shape index: {}]   ;;  %s6687_s3 = inlined_call_operand.vmem [shape: f32[2,8,10], index: 3, kind: input, shape index: {}]   ;;  %s6688_s4 = inlined_call_operand.vmem [shape: bf16[2,8,32,32], index: 4, kind: input, shape index: {}]   ;;  %s6689_s5 = inlined_call_operand.vmem [shape: f32[2,8,32], index: 5, kind: input, shape index: {}]   ;;  %s6690_s6 = inlined_call_operand.vmem [shape: f32[2,6,32], index: 6, kind: input, shape index: {}]   ;;  %s6691_s7 = inlined_call_operand.vmem [shape: bf16[2,32,2048], index: 7, kind: input, shape index: {}]   ;;  %s6692_s8 = inlined_call_operand.vmem [shape: f32[2,1,2048], index: 8, kind: input, shape index: {}]   ;;  %s6693_s9 = inlined_call_operand.vmem [shape: bf16[2,2048,32], index: 9, kind: input, shape index: {}]   ;;  %s6694_s10 = inlined_call_operand.vmem [shape: f32[2,1,32], index: 10, kind: input, shape index: {}]   ;;  %s6695_s11 = inlined_call_operand.vmem [shape: f32[2,32], index: 11, kind: input, shape index: {}]   ;;  %s6696_s12 = inlined_call_operand.hbm [shape: f32[2,8,32], index: 12, kind: output, shape index: {}, may-alias: {0,12}]  }
   0x1   :  { %6713 = sst [smem:[#allocation21_spill]] %s6684_s0 }
   0x2   :  { %6714 = sst [smem:[#allocation22_spill]] %s6688_s4 }
   0x3   :  { %6715 = sst [smem:[#allocation23_spill]] %s6689_s5 }
   0x4   :  { %6716 = sst [smem:[#allocation24_spill]] %s6690_s6 }
   0x5   :  { %6717 = sst [smem:[#allocation25_spill]] %s6695_s11 }
   0x6   :  { %6718 = sst [smem:[#allocation26_spill]] %s6696_s12 }
   0x7   :  { %17 = vsyncpa [#allocation3], 0 }
   0x8   :  { %19 = vsyncpa [#allocation3 + $0x1], 0 }
   0x9   :  { %20 = vsyncpa [#allocation4], 0 }
   0xa   :  { %22 = vsyncpa [#allocation4 + $0x1], 0  ;;  %s5867_s21 = smov 0   ;;  %s5869_s22 = smov 0  }
   0xb   :  { %s5871_s23 = smov 0   ;;  %s5873_s24 = smov 0  }
   0xc   :  { %s5875_s25 = smov 0   ;;  %s5877_s26 = smov 0  }
   0xd   :  { %s5879_s27 = smov 0   ;;  %s5881_s28 = smov 0  }
   0xe LB: > { %6719 = sst [smem:[#allocation8_spill]] %s5764_s21  ;;  %s4667_s29 = sadd.s32 4294967295, %s5792_s28   ;;  %s5792_s28 = sphi %s5881_s28, %s28_s28   ;;  %s5788_s27 = sphi %s5879_s27, %s6762_s27   ;;  %s5784_s26 = sphi %s5877_s26, %s6761_s26   ;;  %s5780_s25 = sphi %s5875_s25, %s6760_s25   ;;  %s5776_s24 = sphi %s5873_s24, %s6759_s24   ;;  %s5772_s23 = sphi %s5871_s23, %s6758_s23   ;;  %s5768_s22 = sphi %s5869_s22, %s6757_s22   ;;  %s5764_s21 = sphi %s5867_s21, %s6756_s21  }
   0xf   : > { %6720 = sst [smem:[#allocation9_spill]] %s5768_s22  ;;  %s4668_s30 = sadd.s32 4294967294, %s5792_s28  }
  0x10   : > { %6721 = sst [smem:[#allocation10_spill]] %s5772_s23  ;;  %s37_s13 = sadd.s32 1, %s5784_s26 }
  0x11   : > { %6722 = sst [smem:[#allocation11_spill]] %s5780_s25  ;;  %s40_s14 = sadd.s32 1, %s5788_s27 }
  0x12   : > { %6723 = sst [smem:[#allocation12_spill]] %s5784_s26  ;;  %p38_p0 = scmp.ge.s32.totalorder %s37_s13, 2 }
  0x13   : > { %6724 = sst [smem:[#allocation13_spill]] %s5788_s27  ;;  %s47_s15 = sadd.s32 1, %s5772_s23 }
  0x14   : > { %6725 = sst [smem:[#allocation14_spill]] %s5792_s28  ;;  %p54_p1 = scmp.ne.s32.totalorder %s5772_s23, %s5768_s22 }
  0x15   : > { %p55_p2 = scmp.eq.s32.totalorder %s5792_s28, 0  ;;  %s6764_s13 = smov (%p38_p0, %s37_s13), 0 }
  0x16   : > { %6726 = sst [smem:[#allocation15_spill]] %s6764_s13  ;;  %s6766_s14 = smov (!%p38_p0, %s40_s14), %s5788_s27 }
  0x17   : > { %p5918_p3 = por %p55_p2, %p54_p1  ;;  %p60_p4 = scmp.ne.s32.totalorder %s5768_s22, %s5764_s21 }
  0x18   : > { %p42_p5 = scmp.ge.s32.totalorder %s6766_s14, 2  ;;  %p61_p6 = scmp.eq.s32.totalorder %s4667_s29, 0 }
  0x19   : > { %p365_p7 = scmp.eq.s32.totalorder %s4667_s29, 3  ;;  %p371_p8 = scmp.eq.s32.totalorder %s4668_s30, 3 }
  0x1a   : > { %s6768_s14 = smov (%p42_p5, %s6766_s14), 0  ;;  %p5926_p9 = por %p61_p6, %p60_p4 }
  0x1b   : > { %6728 = sst [smem:[#allocation16_spill]] %s6768_s14  ;;  %p5930_p10 = por %p365_p7, %p54_p1 }
  0x1c   : > { %s44_s19 = ssub.s32 %s5788_s27, %s6768_s14  ;;  %p5936_p11 = por %p371_p8, %p60_p4 }
  0x1d   : > { %s6730_s18 = scalar_select %p5930_p10, 1, 0 }
  0x1e   : > { %s6732_s20 = scalar_select %p5936_p11, 1, 0 }
  0x1f   : > { %6731 = sst [smem:[#allocation17_spill]] %s6730_s18  ;;  %p45_p12 = scmp.eq.s32.totalorder %s44_s19, 0 }
  0x20   : > { %6733 = sst [smem:[#allocation18_spill]] %s6732_s20  ;;  %p5402_p13 = scmp.lt.s32.totalorder %s5792_s28, 4 }
  0x21   : > { %s394_s29 = sand.u32 1, %s5772_s23   ;;  %s4672_s26 = sshll.u32 %s5788_s27, 7 }
  0x22   : > { %s5943_s30 = scalar_select %p45_p12, %s5772_s23, %s47_s15  }
  0x23   : > { %s4671_s13 = sshll.u32 %s394_s29, 3  ;;  %s6735_s0 = sld [smem:[#allocation21_spill]] }
  0x24   : > { %6734 = sst [smem:[#allocation19_spill]] %s5943_s30  ;;  %s398_s14 = scalar_lea.vmem [#allocation2], %s4671_s13 }
  0x25   : > { %s405_s18 = sshll.u32 %s398_s14, 4  ;;  %p5955_p0 = pnand %p5402_p13, %p5918_p3  ;;  %s5951_s18 = int_to_ptr.vmem [resolvable:$true] %s405_s18 }
  0x26   : > { %s395_s12 = scalar_lea.sflag [#allocation3], %s394_s29 }
  0x27   : > { %p5666_p5 = pneg %p5955_p0 }
  0x29   : > { %s5949_s11 = scalar_lea.hbm %s6735_s0, %s4672_s26  ;;  %s5669_s14 = scalar_lea.hbm %s6735_s0, 256 }
  0x2a   : > { %s5664_s21 = scalar_lea.hbm %s5949_s11, 128  ;;  %p5670_p3 = scmp.lt.u32.totalorder %s5949_s11, %s6735_s0 }
  0x2b   : > { %p5665_p4 = scmp.ne.s32.totalorder %s5949_s11, %s5664_s21  ;;  %p5671_p8 = scmp.lt.u32.totalorder %s5669_s14, %s5664_s21 }
  0x2c   : > { %p5673_p13 = scmp.lt.u32.totalorder %s5664_s21, %s5949_s11 }
  0x2d   : > { %p5667_p6 = pnand %p5666_p5, %p5665_p4  ;;  %p5672_p12 = por %p5671_p8, %p5670_p3 }
  0x2f   : > { %p5668_p7 = pneg %p5667_p6  ;;  %p5674_p1 = por %p5673_p13, %p5672_p12 }
  0x31   : > { %p5675_p2 = pnand %p5674_p1, %p5668_p7 }
  0x33   : > { %5678 = shalt.err (!%p5675_p2)
}
  0x34   : > { %s5679_s29 = scalar_lea.vmem %s5951_s18, 128  ;;  %s5794_s26 = smov [#allocation2]  }
  0x35   : > { %p5680_p4 = scmp.ne.s32.totalorder %s5951_s18, %s5679_s29  ;;  %s5684_s13 = sshll.u32 %s5794_s26, 4  ;;  %s5685_s13 = int_to_ptr.vmem [resolvable:$false] %s5684_s13 }
  0x36   : > { %s5686_s15 = scalar_lea.vmem %s5685_s13, 256  ;;  %p5687_p10 = scmp.lt.s32.totalorder %s5951_s18, %s5685_s13 }
  0x37   : > { %p5682_p6 = pnand %p5680_p4, %p5666_p5  ;;  %p5688_p3 = scmp.lt.s32.totalorder %s5686_s15, %s5679_s29 }
  0x39   : > { %p5683_p11 = pneg %p5682_p6  ;;  %p5689_p8 = por %p5688_p3, %p5687_p10 }
  0x3b   : > { %p5690_p12 = pnand %p5689_p8, %p5683_p11 }
  0x3d   : > { %5693 = shalt.err (!%p5690_p12)
}
  0x3e   : > { %5397 = dma.hbm_to_vmem [thread:$0]  (!%p5955_p0), %s5949_s11, 128, %s5951_s18, %s395_s12  }
  0x3f   : > { %p6737_p1 = scmp.lt.s32.totalorder %s5792_s28, 5  ;;  %p6738_p2 = scmp.ge.s32.totalorder %s5792_s28, 1 }
  0x41   : > { %p484_p5 = pnand %p6738_p2, %p6737_p1 }
  0x43   : > { %487 = sbr.rel (%p484_p5) target bundleno = 7555 (0x1d83), region = 68 }
  0x4a   : > { %s5991_s21 = sand.u32 1, %s5768_s22  }
  0x4b   : > { %6739 = sst [smem:[#allocation20_spill]] %s5991_s21  ;;  %s4674_s14 = sshll.u32 %s5991_s21, 3 }
  0x4c   : > { %s490_s16 = scalar_lea.sflag [#allocation3], %s5991_s21  ;;  %s493_s29 = scalar_lea.vmem [#allocation2], %s4674_s14 }
  0x4d   : > { %5755 = dma.done.wait (%p5926_p9), %s490_s16, 128  }
  0x4e   : > { %5757 = vsyncadd (%p5926_p9), %s490_s16, 4294967168  ;;  %p577_p10 = scmp.lt.s32.totalorder %s5780_s25, 1  ;;  %p590_p11 = scmp.lt.s32.totalorder %s5776_s24, 1 }
  0x4f   : > { %s6740_s4 = sld [smem:[#allocation22_spill]]  ;;  %s6741_s5 = sld [smem:[#allocation23_spill]] }
  0x50   : > { %s578_s11 = scalar_select %p577_p10, %s5780_s25, 1 }
  0x51   : > { %s6003_s18 = scalar_select %p590_p11, %s5776_s24, 1 }
  0x52   : > { %s6005_s19 = sshll.u32 %s578_s11, 3  ;;  %s6742_s6 = sld [smem:[#allocation24_spill]] }
  0x53   : > { %s4953_s23 = sshll.u32 %s6003_s18, 7  ;;  %s4682_s28 = sshll.u32 %s6003_s18, 3 }
  0x54   : > { %s4954_s15 = sshll.u32 %s6003_s18, 8  ;;  %s4686_s0 = sshll.u32 %s6003_s18, 4 }
  0x55   : > { %s6023_s11 = scalar_lea.vmem %s6740_s4, %s4953_s23  ;;  %s6029_s12 = scalar_lea.vmem %s6741_s5, %s4682_s28 }
  0x56   : > { %s6041_s16 = scalar_lea.vmem %s6691_s7, %s4954_s15  ;;  %s6046_s20 = scalar_lea.vmem %s6692_s8, %s4686_s0 }
  0x57   : > { %s4955_s21 = sshll.u32 %s6003_s18, 10  ;;  %s619_s5 = scalar_lea.vmem %s6694_s10, %s6003_s18 }
  0x58   : > { %s6034_s13 = scalar_lea.vmem %s6742_s6, %s4682_s28  ;;  %s6056_s26 = scalar_lea.vmem %s6693_s9, %s4955_s21 }
  0x59   : > { %s6058_s6 = scalar_lea.vmem [#allocation5], %s4674_s14  ;;  %p4689_p9 = scmp.ne.s32.totalorder %s5776_s24, 0 }
  0x5a   : > { %v625_v0 = vld [vmem:[%s493_s29] sm:$0xff] (!%p4689_p9)  ;;  %vm626_vm0 = vcmask (!%p4689_p9), 261120  }
  0x5b   : > { %624 = sbr.rel (%p4689_p9) target bundleno = 98 (0x62), region = 76  ;;  %627 = vst.msk [vmem:[%s6058_s6] sm:$0xff] (!%p4689_p9), %vm626_vm0, %v625_v0 }
  0x62 PF: > { %v628_v1 = vld [vmem:[%s6058_s6] sm:$0xff]  ;;  %vm635_vm1 = vcmask 261120   ;;  %v5474_v8 = vld [vmem:[%s6023_s11] sm:$0xff]   ;;  %v5795_v10 = vmov 0.0   ;;  %v5476_v11 = vld [vmem:[%s6023_s11 + $0x8] sm:$0xff]   ;;  %vm5796_vm2 = vmmov 0   ;;  %s6743_s29 = scalar_lea.vmem %s6686_s2, %s6005_s19  ;;  %s6744_s23 = scalar_lea.vmem %s6685_s1, %s6005_s19 }
  0x63   : > { %v636_v2 = vsel %vm635_vm1, %v628_v1, 0.0  ;;  %v5475_v9 = vld [vmem:[%s6023_s11 + $0x10] sm:$0xff]   ;;  %5198 = vmatprep.subr.bf16.mxu0 %v5795_v10  ;;  %5206 = vmatprep.subr.bf16.mxu1 %v5795_v10  ;;  %v5477_v12 = vld [vmem:[%s6023_s11 + $0x18] sm:$0xff]   ;;  %v4690_v21 = vld [vmem:[%s6034_s13] ss:$0 sm:$0xff]  ;;  %vm866_vm5 = vcmask 64512   ;;  %s6745_s25 = scalar_lea.vmem %s6687_s3, %s6005_s19 }
  0x64   : > { %637 = vadd.xlane.f32.xlu0 %v636_v2  ;;  %5199 = vmatpush3.bf16.msra.mxu0 %v5474_v8  ;;  %v4691_v24 = vld [vmem:[%s6034_s13 + $0x1] ss:$0 sm:$0xff]  ;;  %v5479_v29 = vld [vmem:[%s6023_s11 + $0x28] sm:$0xff]   ;;  %v4692_v30 = vld [vmem:[%s6029_s12] ss:$0 sm:$0xff]  ;;  %s5797_s4 = smov 120  }
  0x65   : > { %5207 = vmatpush3.bf16.msra.mxu1 %v5475_v9  ;;  %5200 = vmatprep.subr.bf16.mxu0 %v5795_v10  ;;  %v5478_v27 = vld [vmem:[%s6023_s11 + $0x20] sm:$0xff]   ;;  %vm928_vm6 = vcmask 1043456   ;;  %s5798_s15 = smov 112   ;;  %s5799_s0 = smov 104   ;;  %vm1790_vm9 = vcmask 80896   ;;  %vm1806_vm10 = vcmask 1044480  }
  0x66   : > { %5208 = vmatprep.subr.bf16.mxu1 %v5795_v10  ;;  %5202 = vmatprep.mubr.msk.bf16.mxu0 %vm5796_vm2, %v5795_v10  ;;  %v4700_v31 = vld [vmem:[%s6029_s12 + $0x1] ss:$0 sm:$0xff]  ;;  %v4708_v45 = vld [vmem:[%s6029_s12 + $0x2] ss:$0 sm:$0xff]  ;;  %p4944_p0 = scmp.eq.s32.totalorder %s5776_s24, 1 }
  0x67   : > { %5210 = vmatprep.mubr.msk.bf16.mxu1 %vm5796_vm2, %v5795_v10  ;;  %v6127_v57 = vld [vmem:[%s6743_s29] sm:$0xff] }
  0x68   : > { %5201 = vmatpush3.bf16.msra.mxu0 %v5476_v11 }
  0x69   : > { %5209 = vmatpush3.bf16.msra.mxu1 %v5477_v12  ;;  %5214 = vmatprep.subr.bf16.mxu0 %v5795_v10 }
  0x6a   : > { %5222 = vmatprep.subr.bf16.mxu1 %v5795_v10 }
  0xf1   : > { %v638_v3 = vpop.xlane.xlu0 %637 }
  0xf2   : > { %v640_v4 = vmul.f32 0.03125, %v638_v3 }
  0xf4   : > { %v641_v5 = vsub.f32 %v628_v1, %v640_v4 }
  0xf6   : > { %v642_v6 = vmul.f32 %v641_v5, %v641_v5  ;;  %v661_v22 = vmul.f32 %v4690_v21, %v641_v5  ;;  %v4713_v21 = vld [vmem:[%s6023_s11 + $0x34] sm:$0xf] }
  0xf8   : > { %v643_v7 = vsel %vm635_vm1, %v642_v6, 0.0 }
  0xf9   : > { %644 = vadd.xlane.f32.xlu0 %v643_v7 }
 0x186   : > { %v645_v13 = vpop.xlane.xlu0 %644 }
 0x187   : > { %v646_v14 = vmul.f32 0.032258064, %v645_v13 }
 0x189   : > { %5615 = vrsqrt.f32 %v646_v14  ;;  %vm649_vm3 = vcmp.eq.f32.partialorder %v646_v14, inf  ;;  %v652_v17 = vand.u32 2147483648, %v646_v14  ;;  %vm651_vm4 = vcmp.eq.f32.partialorder %v646_v14, 0.0 }
 0x193   : > { %v5616_v15 = vpop.eup %5615 }
 0x194   : > { %v648_v16 = vmul.f32 %v5616_v15, %v646_v14 }
 0x196   : > { %v650_v18 = vsel %vm649_vm3, %v646_v14, %v648_v16 }
 0x197   : > { %v653_v19 = vsel %vm651_vm4, %v652_v17, %v650_v18 }
 0x198   : > { %v654_v20 = vadd.f32 1e-06, %v653_v19 }
 0x19a   : > { %5617 = vrcp.f32 %v654_v20 }
 0x1a4   : > { %v5618_v23 = vpop.eup %5617 }
 0x1a5   : > { %v662_v25 = vmul.f32 %v5618_v23, %v661_v22  ;;  %v1091_v22 = vsel %vm928_vm6, %v4713_v21, 0 }
 0x1a7   : > { %v667_v26 = vadd.f32 %v4691_v24, %v662_v25 }
 0x1a9   : > { %v668_v28 = vpack.c.bf16 %v667_v26, %v667_v26 }
 0x1ab   : > { %5203 = vmatmul.mubr.msk.bf16.vlgmr.msra.gmra.mrb[0].mxu0 %vm635_vm1, %v668_v28  ;;  %5211 = vmatmul.mubr.msk.bf16.vlgmr.msra.gmra.mrb[0].mxu1 %vm635_vm1, %v668_v28 }
 0x1ac   : > { %5215 = vmatpush3.bf16.msra.mxu0 %v5478_v27  ;;  %5218 = vmatprep.mubr.msk.bf16.mxu0 %vm5796_vm2, %v5795_v10  ;;  %v4712_v27 = vld [vmem:[%s6023_s11 + $0x30] sm:$0xf] }
 0x1ad   : > { %5216 = vmatprep.subr.bf16.mxu0 %v5795_v10  ;;  %5224 = vmatprep.mubr.msk.bf16.mxu1 %vm5796_vm2, %v5795_v10 }
 0x1b0   : > { %5217 = vmatpush3.bf16.msra.mxu0 %v5479_v29 }
 0x1b1   : > { %5228 = vmatprep.subr.bf16.mxu0 %v5795_v10 }
 0x1b3   : > { %5219 = vmatmul.mubr.msk.bf16.vlgmr.msra.gmra.mrb[4].mxu0 %vm635_vm1, %v668_v28 }
 0x1b4   : > { %5230 = vmatprep.mubr.msk.bf16.mxu0 %vm5796_vm2, %v5795_v10 }
 0x27e   : > { %v727_v32 = vpop.f32.mrb[0].mxu0  ;;  %v789_v33 = vpop.f32.mrb[0].mxu1 }
 0x27f   : > { %v728_v34 = vadd.f32 %v4692_v30, %v727_v32  ;;  %v790_v35 = vadd.f32 %v4700_v31, %v789_v33  ;;  %v5204_v36 = vpop.f32.mrb[1].mxu0  ;;  %v5212_v37 = vpop.f32.mrb[1].mxu1  ;;  %v1137_v30 = vsel %vm928_vm6, %v4712_v27, 0 }
 0x280   : > { %v730_v38 = vpop.f32.mrb[2].mxu0  ;;  %v792_v39 = vpop.f32.mrb[2].mxu1 }
 0x281   : > { %v857_v40 = vmul.f32 0.35355338, %v728_v34  ;;  %v6096_v41 = vpack.c.bf16 %v790_v35, %v790_v35  ;;  %v5205_v42 = vpop.f32.mrb[3].mxu0  ;;  %v5213_v43 = vpop.f32.mrb[3].mxu1 }
 0x283   : > { %977 = vrot.lane.b32.xlu1 %v6096_v41, %s5797_s4  ;;  %v871_v44 = vsel %vm866_vm5, %v6096_v41, 0  ;;  %v6103_v46 = vpack.c.bf16 %v857_v40, %v857_v40 }
 0x284   : > { %5223 = vmatpush3.bf16.xpose.msra.mxu1 %v871_v44 }
 0x285   : > { %5234 = vmatprep.subr.bf16.mxu1 %v5795_v10 }
 0x286   : > { %v851_v47 = vpop.f32.mrb[4].mxu0 }
 0x287   : > { %v852_v48 = vadd.f32 %v4708_v45, %v851_v47  ;;  %974 = vrot.lane.b32.xlu1 %v6103_v46, %s5797_s4  ;;  %v5220_v49 = vpop.f32.mrb[5].mxu0 }
 0x288   : > { %v854_v50 = vpop.f32.mrb[6].mxu0 }
 0x289   : > { %v6108_v51 = vpack.c.bf16 %v852_v48, %v852_v48  ;;  %v5221_v52 = vpop.f32.mrb[7].mxu0 }
 0x28b   : > { %5225 = vmatmul.mubr.msk.bf16.vlgmr.msra.gmra.mrb[4].mxu1 %vm866_vm5, %v6103_v46  ;;  %v930_v53 = vsel %vm928_vm6, %v6108_v51, 0 }
 0x28c   : > { %5229 = vmatpush3.bf16.msra.mxu0 %v930_v53  ;;  %5236 = vmatprep.mubr.msk.bf16.mxu1 %vm5796_vm2, %v5795_v10 }
 0x28d   : > { %5240 = vmatprep.subr.bf16.mxu0 %v5795_v10 }
 0x2f5   : > { %v978_v54 = vpop.permute.xlu1 %977 }
 0x2f6   : > { %v983_v55 = vsel %vm866_vm5, %v978_v54, 0 }
 0x2f7   : > { %5235 = vmatpush3.bf16.xpose.msra.mxu1 %v983_v55 }
 0x2f8   : > { %5246 = vmatprep.subr.bf16.mxu1 %v5795_v10 }
 0x2f9   : > { %v975_v56 = vpop.permute.xlu1 %974 }
 0x2fe   : > { %5237 = vmatmul.mubr.msk.bf16.vlgmr.msra.gmra.mrb[8].mxu1 %vm866_vm5, %v975_v56 }
 0x2ff   : > { %5248 = vmatprep.mubr.msk.bf16.mxu1 %vm5796_vm2, %v5795_v10  ;;  %5247 = vmatpush3.bf16.msra.mxu1 %v1091_v22 }
 0x300   : > { %5258 = vmatprep.subr.bf16.mxu1 %v5795_v10 }
 0x35e   : > { %v907_v58 = vpop.f32.mrb[4].mxu1 }
 0x35f   : > { %v908_v59 = vadd.f32 %v907_v58, %v6127_v57  ;;  %v5226_v60 = vpop.f32.mrb[5].mxu1 }
 0x360   : > { %v910_v61 = vpop.f32.mrb[6].mxu1 }
 0x361   : > { %v5227_v62 = vpop.f32.mrb[7].mxu1  ;;  %v913_v63 = vsel %vm866_vm5, %v908_v59, -inf }
 0x362   : > { %914 = vmax.xlane.f32.xlu0 %v913_v63 }
 0x3d1   : > { %v1019_v0 = vpop.f32.mrb[8].mxu1 }
 0x3d2   : > { %v1020_v1 = vadd.f32 %v1019_v0, %v6127_v57  ;;  %v5238_v2 = vpop.f32.mrb[9].mxu1 }
 0x3d3   : > { %v1022_v3 = vpop.f32.mrb[10].mxu1 }
 0x3d4   : > { %v5239_v4 = vpop.f32.mrb[11].mxu1  ;;  %v1025_v5 = vsel %vm866_vm5, %v1020_v1, -inf }
 0x3d5   : > { %1026 = vmax.xlane.f32.xlu1 %v1025_v5 }
 0x3e6   : > { %1179 = vrot.lane.b32.xlu1 %v6103_v46, %s5798_s15 }
 0x3ef   : > { %v915_v6 = vpop.xlane.xlu0 %914 }
 0x3f0   : > { %v916_v7 = vsub.f32 %v908_v59, %v915_v6 }
 0x3f2   : > { %v917_v8 = vmul.f32 1.442695, %v916_v7 }
 0x3f4   : > { %5619 = vpow2.f32 %v917_v8 }
 0x3fe   : > { %v5620_v9 = vpop.eup %5619 }
 0x3ff   : > { %v919_v11 = vsel %vm866_vm5, %v5620_v9, 0.0 }
 0x400   : > { %920 = vadd.xlane.f32.xlu0 %v919_v11 }
 0x462   : > { %v1027_v12 = vpop.xlane.xlu1 %1026 }
 0x463   : > { %v1028_v13 = vsub.f32 %v1020_v1, %v1027_v12 }
 0x465   : > { %v1029_v14 = vmul.f32 1.442695, %v1028_v13 }
 0x466   : > { %v1180_v44 = vpop.permute.xlu1 %1179 }
 0x467   : > { %5621 = vpow2.f32 %v1029_v14 }
 0x471   : > { %v5622_v15 = vpop.eup %5621 }
 0x472   : > { %v1031_v16 = vsel %vm866_vm5, %v5622_v15, 0.0 }
 0x473   : > { %1032 = vadd.xlane.f32.xlu0 %v1031_v16 }
 0x489   : > { %1038 = vrot.lane.b32.xlu0 %v6108_v51, %s5797_s4 }
 0x48d   : > { %v921_v17 = vpop.xlane.xlu0 %920  ;;  %1181 = vrot.lane.b32.xlu0 %v6096_v41, %s5798_s15 }
 0x48e   : > { %5623 = vrcp.f32 %v921_v17 }
 0x498   : > { %v5624_v18 = vpop.eup %5623 }
 0x499   : > { %v923_v19 = vmul.f32 %v5624_v18, %v5620_v9 }
 0x49b   : > { %v924_v20 = vpack.c.bf16 %v923_v19, %v923_v19 }
 0x49d   : > { %5231 = vmatmul.mubr.msk.bf16.vlgmr.msra.gmra.mrb[8].mxu0 %vm866_vm5, %v924_v20 }
 0x49e   : > { %5242 = vmatprep.mubr.msk.bf16.mxu0 %vm5796_vm2, %v5795_v10 }
 0x500   : > { %v1033_v23 = vpop.xlane.xlu0 %1032 }
 0x501   : > { %5625 = vrcp.f32 %v1033_v23 }
 0x504   : > { %v1039_v24 = vpop.permute.xlu0 %1038 }
 0x505   : > { %v1044_v25 = vsel %vm928_vm6, %v1039_v24, 0 }
 0x506   : > { %5241 = vmatpush3.bf16.msra.mxu0 %v1044_v25 }
 0x507   : > { %5252 = vmatprep.subr.bf16.mxu0 %v5795_v10 }
 0x508   : > { %v1182_v36 = vpop.permute.xlu0 %1181 }
 0x509   : > { %v1187_v42 = vsel %vm866_vm5, %v1182_v36, 0 }
 0x50b   : > { %v5626_v26 = vpop.eup %5625 }
 0x50c   : > { %v1035_v28 = vmul.f32 %v5626_v26, %v5622_v15 }
 0x50e   : > { %v1036_v29 = vpack.c.bf16 %v1035_v28, %v1035_v28 }
 0x510   : > { %5243 = vmatmul.mubr.msk.bf16.vlgmr.msra.gmra.mrb[12].mxu0 %vm866_vm5, %v1036_v29 }
 0x511   : > { %5253 = vmatpush3.bf16.msra.mxu0 %v1137_v30  ;;  %5254 = vmatprep.mubr.msk.bf16.mxu0 %vm5796_vm2, %v5795_v10 }
 0x512   : > { %5264 = vmatprep.subr.bf16.mxu0 %v5795_v10 }
 0x570   : > { %v966_v31 = vpop.f32.mrb[8].mxu0 }
 0x571   : > { %v972_v32 = vpack.c.bf16 %v966_v31, %v966_v31  ;;  %v5232_v33 = vpop.f32.mrb[9].mxu0  ;;  %v4715_v31 = vld [vmem:[%s6023_s11 + $0x3c] sm:$0xf] }
 0x572   : > { %v969_v34 = vpop.f32.mrb[10].mxu0 }
 0x573   : > { %v5233_v35 = vpop.f32.mrb[11].mxu0  ;;  %5255 = vmatmul.mubr.msk.bf16.vlgmr.msra.gmra.mrb[16].mxu0 %vm866_vm5, %v972_v32  ;;  %v1452_v32 = vsel %vm928_vm6, %v4715_v31, 0 }
 0x574   : > { %5266 = vmatprep.mubr.msk.bf16.mxu0 %vm5796_vm2, %v5795_v10 }
 0x5e3   : > { %v1080_v37 = vpop.f32.mrb[12].mxu0 }
 0x5e4   : > { %v1086_v38 = vpack.c.bf16 %v1080_v37, %v1080_v37  ;;  %v5244_v39 = vpop.f32.mrb[13].mxu0 }
 0x5e5   : > { %v1083_v40 = vpop.f32.mrb[14].mxu0 }
 0x5e6   : > { %v5245_v43 = vpop.f32.mrb[15].mxu0  ;;  %5249 = vmatmul.mubr.msk.bf16.vlgmr.msra.gmra.mrb[12].mxu1 %vm866_vm5, %v1086_v38 }
 0x5e7   : > { %5259 = vmatpush3.bf16.xpose.msra.mxu1 %v1187_v42  ;;  %5260 = vmatprep.mubr.msk.bf16.mxu1 %vm5796_vm2, %v5795_v10 }
 0x5e8   : > { %5270 = vmatprep.subr.bf16.mxu1 %v5795_v10 }
 0x5ee   : > { %5261 = vmatmul.mubr.msk.bf16.vlgmr.msra.gmra.mrb[16].mxu1 %vm866_vm5, %v1180_v44 }
 0x5ef   : > { %5272 = vmatprep.mubr.msk.bf16.mxu1 %vm5796_vm2, %v5795_v10 }
 0x646   : > { %v1173_v45 = vpop.f32.mrb[16].mxu0 }
 0x647   : > { %v5256_v47 = vpop.f32.mrb[17].mxu0 }
 0x648   : > { %v1176_v48 = vpop.f32.mrb[18].mxu0 }
 0x649   : > { %v5257_v49 = vpop.f32.mrb[19].mxu0 }
 0x64a   : > { %v4728_v49 = vld [vmem:[%s6029_s12 + $0x3] ss:$0 sm:$0xff] }
 0x6b9   : > { %v1127_v50 = vpop.f32.mrb[12].mxu1 }
 0x6ba   : > { %v6166_v52 = vadd.f32 %v1173_v45, %v1127_v50  ;;  %v5250_v53 = vpop.f32.mrb[13].mxu1 }
 0x6bb   : > { %v1130_v54 = vpop.f32.mrb[14].mxu1 }
 0x6bc   : > { %v5251_v55 = vpop.f32.mrb[15].mxu1 }
 0x6c1   : > { %v1223_v56 = vpop.f32.mrb[16].mxu1 }
 0x6c2   : > { %v1224_v58 = vadd.f32 %v1223_v56, %v6127_v57  ;;  %v5262_v59 = vpop.f32.mrb[17].mxu1  ;;  %v5659_v56 = vld [vmem:[%s6058_s6] sm:$0xff] }
 0x6c3   : > { %v1226_v60 = vpop.f32.mrb[18].mxu1 }
 0x6c4   : > { %v5263_v61 = vpop.f32.mrb[19].mxu1  ;;  %v1229_v62 = vsel %vm866_vm5, %v1224_v58, -inf }
 0x6c5   : > { %1230 = vmax.xlane.f32.xlu0 %v1229_v62 }
 0x6db   : > { %1241 = vrot.lane.b32.xlu0 %v6108_v51, %s5798_s15 }
 0x6df   : > { %1337 = vrot.lane.b32.xlu0 %v6103_v46, %s5799_s0 }
 0x752   : > { %v1231_v63 = vpop.xlane.xlu0 %1230 }
 0x753   : > { %v1232_v0 = vsub.f32 %v1224_v58, %v1231_v63 }
 0x755   : > { %v1233_v1 = vmul.f32 1.442695, %v1232_v0 }
 0x756   : > { %v1242_v2 = vpop.permute.xlu0 %1241 }
 0x757   : > { %5627 = vpow2.f32 %v1233_v1  ;;  %v1247_v3 = vsel %vm928_vm6, %v1242_v2, 0  ;;  %v5480_v1 = vld [vmem:[%s6023_s11 + $0x50] sm:$0xff]   ;;  %v5481_v2 = vld [vmem:[%s6023_s11 + $0x58] sm:$0xff]  }
 0x758   : > { %5265 = vmatpush3.bf16.msra.mxu0 %v1247_v3  ;;  %v5483_v3 = vld [vmem:[%s6023_s11 + $0x40] sm:$0xff]  }
 0x759   : > { %5276 = vmatprep.subr.bf16.mxu0 %v5795_v10 }
 0x75a   : > { %v1338_v12 = vpop.permute.xlu0 %1337 }
 0x761   : > { %v5628_v4 = vpop.eup %5627 }
 0x762   : > { %v1235_v5 = vsel %vm866_vm5, %v5628_v4, 0.0 }
 0x763   : > { %1236 = vadd.xlane.f32.xlu1 %v1235_v5  ;;  %v5482_v5 = vld [vmem:[%s6744_s23] sm:$0x1f]  }
 0x774   : > { %1339 = vrot.lane.b32.xlu1 %v6096_v41, %s5799_s0  ;;  %v4714_v41 = vld [vmem:[%s6023_s11 + $0x38] sm:$0xf] }
 0x775   : > { %v1294_v13 = vsel %vm928_vm6, %v4714_v41, 0 }
 0x776   : > { %5271 = vmatpush3.bf16.msra.mxu1 %v1294_v13  ;;  %v4729_v13 = vld [vmem:[%s6034_s13 + $0x2] ss:$0 sm:$0xff] }
 0x777   : > { %5282 = vmatprep.subr.bf16.mxu1 %v5795_v10 }
 0x7f0   : > { %v1237_v6 = vpop.xlane.xlu1 %1236 }
 0x7f1   : > { %5629 = vrcp.f32 %v1237_v6 }
 0x7f4   : > { %v1340_v8 = vpop.permute.xlu1 %1339 }
 0x7f5   : > { %v1345_v11 = vsel %vm866_vm5, %v1340_v8, 0 }
 0x7fb   : > { %v5630_v46 = vpop.eup %5629 }
 0x7fc   : > { %v1239_v7 = vmul.f32 %v5630_v46, %v5628_v4  ;;  %v5484_v4 = vld [vmem:[%s6023_s11 + $0x48] sm:$0xff]  }
 0x7fe   : > { %v1240_v9 = vpack.c.bf16 %v1239_v7, %v1239_v7 }
 0x800   : > { %5267 = vmatmul.mubr.msk.bf16.vlgmr.msra.gmra.mrb[20].mxu0 %vm866_vm5, %v1240_v9 }
 0x801   : > { %5277 = vmatpush3.bf16.xpose.msra.mxu0 %v1345_v11  ;;  %5278 = vmatprep.mubr.msk.bf16.mxu0 %vm5796_vm2, %v5795_v10 }
 0x802   : > { %5288 = vmatprep.subr.bf16.mxu0 %v5795_v10 }
 0x808   : > { %5279 = vmatmul.mubr.msk.bf16.vlgmr.msra.gmra.mrb[24].mxu0 %vm866_vm5, %v1338_v12 }
 0x809   : > { %5290 = vmatprep.mubr.msk.bf16.mxu0 %vm5796_vm2, %v5795_v10  ;;  %5289 = vmatpush3.bf16.msra.mxu0 %v1452_v32 }
 0x80a   : > { %5302 = vmatprep.subr.bf16.mxu0 %v5795_v10 }
 0x8d3   : > { %v1283_v14 = vpop.f32.mrb[20].mxu0 }
 0x8d4   : > { %v1289_v15 = vpack.c.bf16 %v1283_v14, %v1283_v14  ;;  %v5268_v16 = vpop.f32.mrb[21].mxu0 }
 0x8d5   : > { %v1286_v17 = vpop.f32.mrb[22].mxu0  ;;  %v4730_v16 = vld [vmem:[%s6034_s13 + $0x3] ss:$0 sm:$0xff] }
 0x8d6   : > { %v5269_v18 = vpop.f32.mrb[23].mxu0  ;;  %5273 = vmatmul.mubr.msk.bf16.vlgmr.msra.gmra.mrb[20].mxu1 %vm866_vm5, %v1289_v15 }
 0x8d7   : > { %5284 = vmatprep.mubr.msk.bf16.mxu1 %vm5796_vm2, %v5795_v10 }
 0x8db   : > { %v1381_v19 = vpop.f32.mrb[24].mxu0 }
 0x8dc   : > { %v1382_v20 = vadd.f32 %v1381_v19, %v6127_v57  ;;  %v5280_v21 = vpop.f32.mrb[25].mxu0 }
 0x8dd   : > { %v1384_v22 = vpop.f32.mrb[26].mxu0 }
 0x8de   : > { %v5281_v23 = vpop.f32.mrb[27].mxu0  ;;  %v1387_v24 = vsel %vm866_vm5, %v1382_v20, -inf }
 0x8df   : > { %1388 = vmax.xlane.f32.xlu0 %v1387_v24 }
 0x8f5   : > { %1399 = vrot.lane.b32.xlu0 %v6108_v51, %s5799_s0 }
 0x96c   : > { %v1389_v25 = vpop.xlane.xlu0 %1388 }
 0x96d   : > { %v1390_v26 = vsub.f32 %v1382_v20, %v1389_v25  ;;  %v4743_v20 = vld [vmem:[%s6029_s12 + $0x5] ss:$0 sm:$0xff] }
 0x96f   : > { %v1391_v27 = vmul.f32 1.442695, %v1390_v26 }
 0x970   : > { %v1400_v28 = vpop.permute.xlu0 %1399 }
 0x971   : > { %5631 = vpow2.f32 %v1391_v27  ;;  %v1405_v29 = vsel %vm928_vm6, %v1400_v28, 0 }
 0x972   : > { %5283 = vmatpush3.bf16.msra.mxu1 %v1405_v29  ;;  %v4735_v29 = vld [vmem:[%s6029_s12 + $0x4] ss:$0 sm:$0xff] }
 0x973   : > { %5294 = vmatprep.subr.bf16.mxu1 %v5795_v10 }
 0x97b   : > { %v5632_v57 = vpop.eup %5631 }
 0x97c   : > { %v1393_v30 = vsel %vm866_vm5, %v5632_v57, 0.0 }
 0x97d   : > { %1394 = vadd.xlane.f32.xlu1 %v1393_v30 }
 0x9a9   : > { %v1330_v51 = vpop.f32.mrb[20].mxu1 }
 0x9aa   : > { %v1336_v33 = vadd.f32 %v1330_v51, %v6166_v52  ;;  %v5274_v34 = vpop.f32.mrb[21].mxu1 }
 0x9ab   : > { %v1333_v35 = vpop.f32.mrb[22].mxu1 }
 0x9ac   : > { %v5275_v36 = vpop.f32.mrb[23].mxu1 }
 0xa0a   : > { %v1395_v37 = vpop.xlane.xlu1 %1394 }
 0xa0b   : > { %5633 = vrcp.f32 %v1395_v37  ;;  %v5485_v37 = vld [vmem:[%s6023_s11 + $0x60] sm:$0xff]  }
 0xa15   : > { %v5634_v38 = vpop.eup %5633 }
 0xa16   : > { %v1397_v39 = vmul.f32 %v5634_v38, %v5632_v57  ;;  %v5486_v38 = vld [vmem:[%s6023_s11 + $0x68] sm:$0xff]  }
 0xa18   : > { %v1398_v40 = vpack.c.bf16 %v1397_v39, %v1397_v39 }
 0xa1a   : > { %5285 = vmatmul.mubr.msk.bf16.vlgmr.msra.gmra.mrb[24].mxu1 %vm866_vm5, %v1398_v40  ;;  %v6273_v40 = vld [vmem:[%s6745_s25] sm:$0xff] }
 0xa1b   : > { %5298 = vmatprep.mubr.msk.bf16.mxu1 %vm5796_vm2, %v5795_v10  ;;  %5295 = vmatpush3.bf16.msra.mxu1 %v5483_v3 }
 0xa1c   : > { %5296 = vmatprep.subr.bf16.mxu1 %v5795_v10 }
 0xa1f   : > { %5297 = vmatpush3.bf16.msra.mxu1 %v5484_v4 }
 0xa20   : > { %5310 = vmatprep.subr.bf16.mxu1 %v5795_v10 }
 0xaed   : > { %v1441_v42 = vpop.f32.mrb[24].mxu1 }
 0xaee   : > { %v1447_v43 = vpack.c.bf16 %v1441_v42, %v1441_v42  ;;  %v5286_v44 = vpop.f32.mrb[25].mxu1 }
 0xaef   : > { %v1444_v45 = vpop.f32.mrb[26].mxu1 }
 0xaf0   : > { %v5287_v47 = vpop.f32.mrb[27].mxu1  ;;  %5291 = vmatmul.mubr.msk.bf16.vlgmr.msra.gmra.mrb[28].mxu0 %vm866_vm5, %v1447_v43 }
 0xaf1   : > { %5306 = vmatprep.mubr.msk.bf16.mxu0 %vm5796_vm2, %v5795_v10  ;;  %5303 = vmatpush3.bf16.msra.mxu0 %v5480_v1 }
 0xaf2   : > { %5304 = vmatprep.subr.bf16.mxu0 %v5795_v10 }
 0xaf5   : > { %5305 = vmatpush3.bf16.msra.mxu0 %v5481_v2 }
 0xaf6   : > { %5318 = vmatprep.subr.bf16.mxu0 %v5795_v10 }
 0xaf8   : > { %5307 = vmatmul.mubr.msk.bf16.vlgmr.msra.gmra.mrb[32].mxu0 %vm635_vm1, %v5482_v5 }
 0xaf9   : > { %5320 = vmatprep.mubr.msk.bf16.mxu0 %vm5796_vm2, %v5795_v10 }
 0xbc3   : > { %v1488_v48 = vpop.f32.mrb[28].mxu0 }
 0xbc4   : > { %v1494_v50 = vadd.f32 %v1488_v48, %v1336_v33  ;;  %v5292_v52 = vpop.f32.mrb[29].mxu0 }
 0xbc5   : > { %v1491_v53 = vpop.f32.mrb[30].mxu0 }
 0xbc6   : > { %v1500_v54 = vadd.f32 %v4728_v49, %v1494_v50  ;;  %v5293_v55 = vpop.f32.mrb[31].mxu0 }
 0xbc8   : > { %v6212_v58 = vadd.f32 %v5659_v56, %v1500_v54 }
 0xbca   : > { %v1504_v59 = vsel %vm635_vm1, %v6212_v58, 0.0 }
 0xbcb   : > { %1505 = vadd.xlane.f32.xlu1 %v1504_v59  ;;  %v1665_v21 = vpop.f32.mrb[32].mxu0 }
 0xbcc   : > { %v1666_v22 = vadd.f32 %v4743_v20, %v1665_v21  ;;  %v5308_v23 = vpop.f32.mrb[33].mxu0 }
 0xbcd   : > { %v1668_v24 = vpop.f32.mrb[34].mxu0 }
 0xbce   : > { %v1669_v25 = vadd.f32 %v4743_v20, %v1668_v24  ;;  %v5309_v26 = vpop.f32.mrb[35].mxu0 }
 0xbd0   : > { %v6240_v27 = vpack.c.bf16 %v1669_v25, %v1666_v22  ;;  %v4756_v22 = vld [vmem:[%s6023_s11 + $0x70] sm:$0xf] }
 0xbd1   : > { %v2015_v25 = vsel %vm928_vm6, %v4756_v22, 0 }
 0xbd2   : > { %1855 = vrot.lane.b32.xlu0 %v6240_v27, %s5797_s4  ;;  %v1748_v28 = vsel %vm866_vm5, %v6240_v27, 0 }
 0xbd3   : > { %5319 = vmatpush3.bf16.xpose.msra.mxu0 %v1748_v28 }
 0xbd4   : > { %5330 = vmatprep.subr.bf16.mxu0 %v5795_v10 }
 0xc44   : > { %v1856_v51 = vpop.permute.xlu0 %1855 }
 0xc45   : > { %v1861_v36 = vsel %vm866_vm5, %v1856_v51, 0 }
 0xc58   : > { %v1506_v60 = vpop.xlane.xlu1 %1505 }
 0xc59   : > { %v1507_v61 = vmul.f32 0.03125, %v1506_v60 }
 0xc5b   : > { %v1508_v62 = vsub.f32 %v6212_v58, %v1507_v61  ;;  %v4752_v61 = vld [vmem:[%s6029_s12 + $0x6] ss:$0 sm:$0xff] }
 0xc5d   : > { %v1509_v63 = vmul.f32 %v1508_v62, %v1508_v62  ;;  %v1528_v14 = vmul.f32 %v4729_v13, %v1508_v62 }
 0xc5f   : > { %v1510_v0 = vsel %vm635_vm1, %v1509_v63, 0.0 }
 0xc60   : > { %1511 = vadd.xlane.f32.xlu1 %v1510_v0 }
 0xced   : > { %v1512_v6 = vpop.xlane.xlu1 %1511 }
 0xcee   : > { %v1513_v46 = vmul.f32 0.032258064, %v1512_v6 }
 0xcf0   : > { %5635 = vrsqrt.f32 %v1513_v46  ;;  %vm1516_vm7 = vcmp.eq.f32.partialorder %v1513_v46, inf  ;;  %v1519_v9 = vand.u32 2147483648, %v1513_v46  ;;  %vm1518_vm8 = vcmp.eq.f32.partialorder %v1513_v46, 0.0 }
 0xcfa   : > { %v5636_v7 = vpop.eup %5635 }
 0xcfb   : > { %v1515_v8 = vmul.f32 %v5636_v7, %v1513_v46 }
 0xcfd   : > { %v1517_v11 = vsel %vm1516_vm7, %v1513_v46, %v1515_v8 }
 0xcfe   : > { %v1520_v12 = vsel %vm1518_vm8, %v1519_v9, %v1517_v11 }
 0xcff   : > { %v1521_v41 = vadd.f32 1e-06, %v1520_v12 }
 0xd01   : > { %5637 = vrcp.f32 %v1521_v41 }
 0xd0b   : > { %v5638_v15 = vpop.eup %5637 }
 0xd0c   : > { %v1529_v17 = vmul.f32 %v5638_v15, %v1528_v14 }
 0xd0e   : > { %v1534_v18 = vadd.f32 %v4730_v16, %v1529_v17  ;;  %v4757_v16 = vld [vmem:[%s6023_s11 + $0x74] sm:$0xf] }
 0xd0f   : > { %v1969_v17 = vsel %vm928_vm6, %v4757_v16, 0 }
 0xd10   : > { %v1535_v19 = vpack.c.bf16 %v1534_v18, %v1534_v18 }
 0xd12   : > { %5299 = vmatmul.mubr.msk.bf16.vlgmr.msra.gmra.mrb[28].mxu1 %vm635_vm1, %v1535_v19 }
 0xd13   : > { %5314 = vmatprep.mubr.msk.bf16.mxu1 %vm5796_vm2, %v5795_v10  ;;  %5311 = vmatpush3.bf16.msra.mxu1 %v5485_v37 }
 0xd14   : > { %5312 = vmatprep.subr.bf16.mxu1 %v5795_v10 }
 0xd17   : > { %5313 = vmatpush3.bf16.msra.mxu1 %v5486_v38 }
 0xd18   : > { %5324 = vmatprep.subr.bf16.mxu1 %v5795_v10 }
 0xd1a   : > { %5315 = vmatmul.mubr.msk.bf16.vlgmr.msra.gmra.mrb[32].mxu1 %vm635_vm1, %v5482_v5 }
 0xd1b   : > { %5326 = vmatprep.mubr.msk.bf16.mxu1 %vm5796_vm2, %v5795_v10 }
 0xde5   : > { %v1595_v57 = vpop.f32.mrb[28].mxu1 }
 0xde6   : > { %v1596_v30 = vadd.f32 %v4735_v29, %v1595_v57  ;;  %v5300_v31 = vpop.f32.mrb[29].mxu1 }
 0xde7   : > { %v1598_v32 = vpop.f32.mrb[30].mxu1 }
 0xde8   : > { %v1735_v33 = vmul.f32 0.35355338, %v1596_v30  ;;  %v5301_v34 = vpop.f32.mrb[31].mxu1 }
 0xdea   : > { %v6248_v35 = vpack.c.bf16 %v1735_v33, %v1735_v33 }
 0xdec   : > { %1852 = vrot.lane.b32.xlu1 %v6248_v35, %s5797_s4  ;;  %5321 = vmatmul.mubr.msk.bf16.vlgmr.msra.gmra.mrb[36].mxu0 %vm866_vm5, %v6248_v35 }
 0xded   : > { %5331 = vmatpush3.bf16.xpose.msra.mxu0 %v1861_v36  ;;  %5332 = vmatprep.mubr.msk.bf16.mxu0 %vm5796_vm2, %v5795_v10  ;;  %v1728_v62 = vpop.f32.mrb[32].mxu1 }
 0xdee   : > { %5342 = vmatprep.subr.bf16.mxu0 %v5795_v10  ;;  %v1729_v63 = vadd.f32 %v4752_v61, %v1728_v62  ;;  %v5316_v0 = vpop.f32.mrb[33].mxu1 }
 0xdef   : > { %v1731_v1 = vpop.f32.mrb[34].mxu1 }
 0xdf0   : > { %v1732_v2 = vadd.f32 %v4752_v61, %v1731_v1  ;;  %v5317_v3 = vpop.f32.mrb[35].mxu1 }
 0xdf2   : > { %v6282_v4 = vpack.c.bf16 %v1732_v2, %v1729_v63 }
 0xdf4   : > { %v1808_v46 = vsel %vm1806_vm10, %v6282_v4, 0 }
 0xdf5   : > { %5325 = vmatpush3.bf16.msra.mxu1 %v1808_v46 }
 0xdf6   : > { %5336 = vmatprep.subr.bf16.mxu1 %v5795_v10 }
 0xe5e   : > { %v1853_v39 = vpop.permute.xlu1 %1852 }
 0xe5f   : > { %5333 = vmatmul.mubr.msk.bf16.vlgmr.msra.gmra.mrb[40].mxu0 %vm866_vm5, %v1853_v39 }
 0xe60   : > { %5344 = vmatprep.mubr.msk.bf16.mxu0 %vm5796_vm2, %v5795_v10  ;;  %5343 = vmatpush3.bf16.msra.mxu0 %v1969_v17 }
 0xe61   : > { %5354 = vmatprep.subr.bf16.mxu0 %v5795_v10 }
 0xebf   : > { %v1784_v42 = vpop.f32.mrb[36].mxu0 }
 0xec0   : > { %v1785_v43 = vadd.f32 %v1784_v42, %v6273_v40  ;;  %v5322_v44 = vpop.f32.mrb[37].mxu0 }
 0xec1   : > { %v1787_v45 = vpop.f32.mrb[38].mxu0 }
 0xec2   : > { %v5323_v47 = vpop.f32.mrb[39].mxu0  ;;  %v1791_v48 = vsel %vm1790_vm9, %v1785_v43, -inf }
 0xec3   : > { %1792 = vmax.xlane.f32.xlu0 %v1791_v48 }
 0xf32   : > { %v1897_v49 = vpop.f32.mrb[40].mxu0 }
 0xf33   : > { %v1898_v50 = vadd.f32 %v1897_v49, %v6273_v40  ;;  %v5334_v52 = vpop.f32.mrb[41].mxu0 }
 0xf34   : > { %v1900_v53 = vpop.f32.mrb[42].mxu0 }
 0xf35   : > { %v5335_v54 = vpop.f32.mrb[43].mxu0  ;;  %v1903_v55 = vsel %vm1790_vm9, %v1898_v50, -inf }
 0xf36   : > { %1904 = vmax.xlane.f32.xlu1 %v1903_v55 }
 0xf47   : > { %2059 = vrot.lane.b32.xlu1 %v6240_v27, %s5798_s15 }
 0xf50   : > { %v1793_v56 = vpop.xlane.xlu0 %1792 }
 0xf51   : > { %v1794_v59 = vsub.f32 %v1785_v43, %v1793_v56 }
 0xf53   : > { %v1795_v60 = vmul.f32 1.442695, %v1794_v59 }
 0xf55   : > { %5639 = vpow2.f32 %v1795_v60 }
 0xf5f   : > { %v5640_v5 = vpop.eup %5639 }
 0xf60   : > { %v1797_v6 = vsel %vm1790_vm9, %v5640_v5, 0.0 }
 0xf61   : > { %1798 = vadd.xlane.f32.xlu0 %v1797_v6 }
 0xfc3   : > { %v1905_v7 = vpop.xlane.xlu1 %1904 }
 0xfc4   : > { %v1906_v8 = vsub.f32 %v1898_v50, %v1905_v7 }
 0xfc6   : > { %v1907_v9 = vmul.f32 1.442695, %v1906_v8 }
 0xfc7   : > { %v2060_v31 = vpop.permute.xlu1 %2059 }
 0xfc8   : > { %5641 = vpow2.f32 %v1907_v9  ;;  %v2065_v36 = vsel %vm866_vm5, %v2060_v31, 0 }
 0xfd2   : > { %v5642_v11 = vpop.eup %5641 }
 0xfd3   : > { %v1909_v12 = vsel %vm1790_vm9, %v5642_v11, 0.0 }
 0xfd4   : > { %1910 = vadd.xlane.f32.xlu0 %v1909_v12 }
 0xfea   : > { %1916 = vrot.lane.b32.xlu0 %v6282_v4, %s5797_s4 }
 0xfee   : > { %v1799_v41 = vpop.xlane.xlu0 %1798  ;;  %2057 = vrot.lane.b32.xlu0 %v6248_v35, %s5798_s15 }
 0xfef   : > { %5643 = vrcp.f32 %v1799_v41 }
 0xff9   : > { %v5644_v13 = vpop.eup %5643 }
 0xffa   : > { %v1801_v14 = vmul.f32 %v5644_v13, %v5640_v5 }
 0xffc   : > { %v1802_v15 = vpack.c.bf16 %v1801_v14, %v1801_v14 }
 0xffe   : > { %5327 = vmatmul.mubr.msk.bf16.vlgmr.msra.gmra.mrb[36].mxu1 %vm1790_vm9, %v1802_v15 }
 0xfff   : > { %5338 = vmatprep.mubr.msk.bf16.mxu1 %vm5796_vm2, %v5795_v10 }
0x1061   : > { %v1911_v18 = vpop.xlane.xlu0 %1910 }
0x1062   : > { %5645 = vrcp.f32 %v1911_v18 }
0x1065   : > { %v1917_v19 = vpop.permute.xlu0 %1916 }
0x1066   : > { %v1922_v20 = vsel %vm1806_vm10, %v1917_v19, 0 }
0x1067   : > { %5337 = vmatpush3.bf16.msra.mxu1 %v1922_v20 }
0x1068   : > { %5348 = vmatprep.subr.bf16.mxu1 %v5795_v10 }
0x1069   : > { %v2058_v38 = vpop.permute.xlu0 %2057 }
0x106c   : > { %v5646_v21 = vpop.eup %5645 }
0x106d   : > { %v1913_v23 = vmul.f32 %v5646_v21, %v5642_v11 }
0x106f   : > { %v1914_v24 = vpack.c.bf16 %v1913_v23, %v1913_v23 }
0x1071   : > { %5339 = vmatmul.mubr.msk.bf16.vlgmr.msra.gmra.mrb[40].mxu1 %vm1790_vm9, %v1914_v24 }
0x1072   : > { %5349 = vmatpush3.bf16.msra.mxu1 %v2015_v25  ;;  %5350 = vmatprep.mubr.msk.bf16.mxu1 %vm5796_vm2, %v5795_v10 }
0x1073   : > { %5360 = vmatprep.subr.bf16.mxu1 %v5795_v10 }
0x10d1   : > { %v1844_v26 = vpop.f32.mrb[36].mxu1 }
0x10d2   : > { %v1850_v28 = vpack.c.bf16 %v1844_v26, %v1844_v26  ;;  %v5328_v29 = vpop.f32.mrb[37].mxu1 }
0x10d3   : > { %v1847_v57 = vpop.f32.mrb[38].mxu1 }
0x10d4   : > { %v5329_v30 = vpop.f32.mrb[39].mxu1  ;;  %5351 = vmatmul.mubr.msk.bf16.vlgmr.msra.gmra.mrb[44].mxu1 %vm866_vm5, %v1850_v28 }
0x10d5   : > { %5362 = vmatprep.mubr.msk.bf16.mxu1 %vm5796_vm2, %v5795_v10 }
0x1144   : > { %v1958_v32 = vpop.f32.mrb[40].mxu1 }
0x1145   : > { %v1964_v51 = vpack.c.bf16 %v1958_v32, %v1958_v32  ;;  %v5340_v33 = vpop.f32.mrb[41].mxu1 }
0x1146   : > { %v1961_v34 = vpop.f32.mrb[42].mxu1 }
0x1147   : > { %v5341_v37 = vpop.f32.mrb[43].mxu1  ;;  %5345 = vmatmul.mubr.msk.bf16.vlgmr.msra.gmra.mrb[44].mxu0 %vm866_vm5, %v1964_v51 }
0x1148   : > { %5355 = vmatpush3.bf16.xpose.msra.mxu0 %v2065_v36  ;;  %5356 = vmatprep.mubr.msk.bf16.mxu0 %vm5796_vm2, %v5795_v10 }
0x1149   : > { %5366 = vmatprep.subr.bf16.mxu0 %v5795_v10 }
0x114f   : > { %5357 = vmatmul.mubr.msk.bf16.vlgmr.msra.gmra.mrb[48].mxu0 %vm866_vm5, %v2058_v38 }
0x1150   : > { %5368 = vmatprep.mubr.msk.bf16.mxu0 %vm5796_vm2, %v5795_v10 }
0x11a7   : > { %v2051_v39 = vpop.f32.mrb[44].mxu1 }
0x11a8   : > { %v5352_v42 = vpop.f32.mrb[45].mxu1 }
0x11a9   : > { %v2054_v43 = vpop.f32.mrb[46].mxu1 }
0x11aa   : > { %v5353_v44 = vpop.f32.mrb[47].mxu1 }
0x11ab   : > { %v4772_v44 = vld [vmem:[%s6029_s12 + $0x7] ss:$0 sm:$0xff] }
0x121a   : > { %v2005_v45 = vpop.f32.mrb[44].mxu0 }
0x121b   : > { %v6318_v47 = vadd.f32 %v2051_v39, %v2005_v45  ;;  %v5346_v48 = vpop.f32.mrb[45].mxu0 }
0x121c   : > { %v2008_v49 = vpop.f32.mrb[46].mxu0 }
0x121d   : > { %v5347_v50 = vpop.f32.mrb[47].mxu0 }
0x1222   : > { %v2101_v52 = vpop.f32.mrb[48].mxu0 }
0x1223   : > { %v2102_v53 = vadd.f32 %v2101_v52, %v6273_v40  ;;  %v5358_v54 = vpop.f32.mrb[49].mxu0 }
0x1224   : > { %v2104_v55 = vpop.f32.mrb[50].mxu0 }
0x1225   : > { %v5359_v56 = vpop.f32.mrb[51].mxu0  ;;  %v2107_v59 = vsel %vm1790_vm9, %v2102_v53, -inf }
0x1226   : > { %2108 = vmax.xlane.f32.xlu0 %v2107_v59 }
0x123c   : > { %2119 = vrot.lane.b32.xlu0 %v6282_v4, %s5798_s15 }
0x1240   : > { %2215 = vrot.lane.b32.xlu0 %v6248_v35, %s5799_s0 }
0x12b3   : > { %v2109_v60 = vpop.xlane.xlu0 %2108 }
0x12b4   : > { %v2110_v61 = vsub.f32 %v2102_v53, %v2109_v60 }
0x12b6   : > { %v2111_v62 = vmul.f32 1.442695, %v2110_v61  ;;  %v2414_v61 = vld [vmem:[%s6041_s16] sm:$0xff] }
0x12b7   : > { %v2120_v63 = vpop.permute.xlu0 %2119 }
0x12b8   : > { %5647 = vpow2.f32 %v2111_v62  ;;  %v2125_v0 = vsel %vm1806_vm10, %v2120_v63, 0  ;;  %v2416_v62 = vld [vmem:[%s6041_s16 + $0x40] sm:$0xff] }
0x12b9   : > { %5361 = vmatpush3.bf16.msra.mxu1 %v2125_v0  ;;  %v4776_v63 = vcombine.high %v2414_v61, %v2416_v62  ;;  %v2417_v0 = vld [vmem:[%s6041_s16 + $0x48] sm:$0xff] }
0x12ba   : > { %5372 = vmatprep.subr.bf16.mxu1 %v5795_v10 }
0x12bb   : > { %v2216_v8 = vpop.permute.xlu0 %2215 }
0x12c2   : > { %v5648_v1 = vpop.eup %5647 }
0x12c3   : > { %v2113_v2 = vsel %vm1790_vm9, %v5648_v1, 0.0 }
0x12c4   : > { %2114 = vadd.xlane.f32.xlu1 %v2113_v2 }
0x12d5   : > { %2217 = vrot.lane.b32.xlu1 %v6240_v27, %s5799_s0  ;;  %v4758_v27 = vld [vmem:[%s6023_s11 + $0x78] sm:$0xf] }
0x12d6   : > { %v2172_v9 = vsel %vm928_vm6, %v4758_v27, 0  ;;  %v5800_v27 = vmov 0  }
0x12d7   : > { %5367 = vmatpush3.bf16.msra.mxu0 %v2172_v9 }
0x12d8   : > { %5378 = vmatprep.subr.bf16.mxu0 %v5795_v10 }
0x1351   : > { %v2115_v3 = vpop.xlane.xlu1 %2114 }
0x1352   : > { %5649 = vrcp.f32 %v2115_v3 }
0x1355   : > { %v2218_v6 = vpop.permute.xlu1 %2217 }
0x1356   : > { %v2223_v7 = vsel %vm866_vm5, %v2218_v6, 0  ;;  %v2419_v6 = vld [vmem:[%s6041_s16 + $0x88] sm:$0xff] }
0x135c   : > { %v5650_v35 = vpop.eup %5649 }
0x135d   : > { %v2117_v5 = vmul.f32 %v5650_v35, %v5648_v1  ;;  %v4775_v1 = vcombine.low %v2414_v61, %v2416_v62  ;;  %v2418_v35 = vld [vmem:[%s6041_s16 + $0x80] sm:$0xff]  ;;  %v5502_v61 = vld [vmem:[%s6056_s26 + $0x198] sm:$0xff]  }
0x135e   : > { %v5503_v62 = vld [vmem:[%s6056_s26 + $0x160] sm:$0xff]  }
0x135f   : > { %v2118_v46 = vpack.c.bf16 %v2117_v5, %v2117_v5  ;;  %v2420_v5 = vld [vmem:[%s6041_s16 + $0xc0] sm:$0xff] }
0x1361   : > { %5363 = vmatmul.mubr.msk.bf16.vlgmr.msra.gmra.mrb[48].mxu1 %vm1790_vm9, %v2118_v46  ;;  %v4779_v46 = vcombine.low %v2418_v35, %v2420_v5 }
0x1362   : > { %5373 = vmatpush3.bf16.xpose.msra.mxu1 %v2223_v7  ;;  %5374 = vmatprep.mubr.msk.bf16.mxu1 %vm5796_vm2, %v5795_v10  ;;  %v4780_v7 = vcombine.high %v2418_v35, %v2420_v5  ;;  %v5510_v35 = vld [vmem:[%s6056_s26 + $0x1a8] sm:$0xff]   ;;  %v5511_v5 = vld [vmem:[%s6056_s26 + $0x170] sm:$0xff]  }
0x1363   : > { %5384 = vmatprep.subr.bf16.mxu1 %v5795_v10 }
0x1369   : > { %5375 = vmatmul.mubr.msk.bf16.vlgmr.msra.gmra.mrb[52].mxu1 %vm866_vm5, %v2216_v8  ;;  %v2421_v8 = vld [vmem:[%s6041_s16 + $0xc8] sm:$0xff] }
0x136a   : > { %5386 = vmatprep.mubr.msk.bf16.mxu1 %vm5796_vm2, %v5795_v10  ;;  %v4781_v9 = vcombine.low %v2419_v6, %v2421_v8 }
0x1434   : > { %v2161_v11 = vpop.f32.mrb[48].mxu1 }
0x1435   : > { %v2167_v12 = vpack.c.bf16 %v2161_v11, %v2161_v11  ;;  %v5364_v41 = vpop.f32.mrb[49].mxu1  ;;  %v4782_v11 = vcombine.high %v2419_v6, %v2421_v8  ;;  %v5512_v6 = vld [vmem:[%s6056_s26 + $0x1f0] sm:$0xff]   ;;  %v5515_v8 = vld [vmem:[%s6056_s26 + $0x178] sm:$0xff]  }
0x1436   : > { %v2164_v13 = vpop.f32.mrb[50].mxu1  ;;  %v2643_v41 = vld [vmem:[%s6041_s16 + $0x50] sm:$0xff] }
0x1437   : > { %v5365_v14 = vpop.f32.mrb[51].mxu1  ;;  %5369 = vmatmul.mubr.msk.bf16.vlgmr.msra.gmra.mrb[52].mxu0 %vm866_vm5, %v2167_v12  ;;  %v2641_v12 = vld [vmem:[%s6041_s16 + $0x10] sm:$0xff]  ;;  %v2642_v13 = vld [vmem:[%s6041_s16 + $0x18] sm:$0xff] }
0x1438   : > { %5380 = vmatprep.mubr.msk.bf16.mxu0 %vm5796_vm2, %v5795_v10  ;;  %v4759_v10 = vld [vmem:[%s6023_s11 + $0x7c] sm:$0xf]  ;;  %v4786_v14 = vcombine.high %v2641_v12, %v2643_v41 }
0x143c   : > { %v2259_v15 = vpop.f32.mrb[52].mxu1 }
0x143d   : > { %v2260_v16 = vadd.f32 %v2259_v15, %v6273_v40  ;;  %v5376_v17 = vpop.f32.mrb[53].mxu1  ;;  %v2330_v40 = vsel %vm928_vm6, %v4759_v10, 0  ;;  %v2644_v15 = vld [vmem:[%s6041_s16 + $0x58] sm:$0xff] }
0x143e   : > { %v2262_v18 = vpop.f32.mrb[54].mxu1  ;;  %5385 = vmatpush3.bf16.msra.mxu1 %v2330_v40  ;;  %v4787_v17 = vcombine.low %v2642_v13, %v2644_v15  ;;  %v4773_v40 = vld [vmem:[%s6034_s13 + $0x4] ss:$0 sm:$0xff] }
0x143f   : > { %v5377_v19 = vpop.f32.mrb[55].mxu1  ;;  %v2265_v20 = vsel %vm1790_vm9, %v2260_v16, -inf  ;;  %v4788_v18 = vcombine.high %v2642_v13, %v2644_v15  ;;  %v5520_v13 = vld [vmem:[%s6056_s26 + $0xc0] sm:$0xff]  }
0x1440   : > { %2266 = vmax.xlane.f32.xlu1 %v2265_v20 }
0x14cd   : > { %v2267_v21 = vpop.xlane.xlu1 %2266 }
0x14ce   : > { %v2268_v22 = vsub.f32 %v2260_v16, %v2267_v21  ;;  %v4785_v16 = vcombine.low %v2641_v12, %v2643_v41  ;;  %v5518_v12 = vld [vmem:[%s6056_s26 + $0x1b8] sm:$0xff]   ;;  %v5519_v41 = vld [vmem:[%s6056_s26 + $0x40] sm:$0xff]  }
0x14d0   : > { %v2269_v23 = vmul.f32 1.442695, %v2268_v22 }
0x14d2   : > { %5651 = vpow2.f32 %v2269_v23 }
0x14dc   : > { %v5652_v24 = vpop.eup %5651 }
0x14dd   : > { %v2271_v25 = vsel %vm1790_vm9, %v5652_v24, 0.0 }
0x14de   : > { %2272 = vadd.xlane.f32.xlu0 %v2271_v25 }
0x14f4   : > { %2277 = vrot.lane.b32.xlu0 %v6282_v4, %s5799_s0 }
0x150a   : > { %v2208_v26 = vpop.f32.mrb[52].mxu0 }
0x150b   : > { %v2214_v28 = vadd.f32 %v2208_v26, %v6318_v47  ;;  %v5370_v29 = vpop.f32.mrb[53].mxu0 }
0x150c   : > { %v2211_v57 = vpop.f32.mrb[54].mxu0  ;;  %v4774_v29 = vld [vmem:[%s6034_s13 + $0x5] ss:$0 sm:$0xff] }
0x150d   : > { %v5371_v30 = vpop.f32.mrb[55].mxu0 }
0x150e   : > { %v2645_v30 = vld [vmem:[%s6041_s16 + $0x90] sm:$0xff] }
0x156b   : > { %v2273_v31 = vpop.xlane.xlu0 %2272 }
0x156c   : > { %5653 = vrcp.f32 %v2273_v31  ;;  %v2647_v31 = vld [vmem:[%s6041_s16 + $0xd0] sm:$0xff] }
0x156f   : > { %v2278_v32 = vpop.permute.xlu0 %2277 }
0x1570   : > { %v2283_v51 = vsel %vm1806_vm10, %v2278_v32, 0  ;;  %v2646_v32 = vld [vmem:[%s6041_s16 + $0x98] sm:$0xff] }
0x1571   : > { %5379 = vmatpush3.bf16.msra.mxu0 %v2283_v51  ;;  %v2648_v51 = vld [vmem:[%s6041_s16 + $0xd8] sm:$0xff] }
0x1572   : > { %2487 = vmatprep.subr.bf16.mxu0 %v4776_v63  ;;  %v5505_v63 = vld [vmem:[%s6056_s26 + $0x120] sm:$0xff]  }
0x1576   : > { %v5654_v33 = vpop.eup %5653 }
0x1577   : > { %v2275_v34 = vmul.f32 %v5654_v33, %v5652_v24 }
0x1579   : > { %v2276_v4 = vpack.c.bf16 %v2275_v34, %v2275_v34 }
0x157b   : > { %5381 = vmatmul.mubr.msk.bf16.vlgmr.msra.gmra.mrb[56].mxu0 %vm1790_vm9, %v2276_v4  ;;  %v4790_v4 = vcombine.high %v2645_v30, %v2647_v31 }
0x157c   : > { %2488 = vmatpush1.bf16.msra.mxu0 %v4775_v1  ;;  %2519 = vmatprep.mubr.bf16.mxu0 %v5800_v27  ;;  %v5507_v1 = vld [vmem:[%s6056_s26 + $0x168] sm:$0xff]  }
0x157d   : > { %2489 = vmatprep.subr.bf16.mxu0 %v4780_v7  ;;  %v5514_v7 = vld [vmem:[%s6056_s26 + $0x1b0] sm:$0xff]  }
0x1580   : > { %2490 = vmatpush1.bf16.msra.mxu0 %v4779_v46  ;;  %v5513_v46 = vld [vmem:[%s6056_s26 + $0x130] sm:$0xff]  }
0x1581   : > { %2711 = vmatprep.subr.bf16.mxu0 %v4786_v14  ;;  %v2424_v14 = vlaneseq }
0x1583   : > { %v2425_v15 = vshrl.u32 %v2424_v14, 7  ;;  %v5534_v14 = vld [vmem:[%s6056_s26 + $0x98] sm:$0xff]  }
0x164e   : > { %v2319_v36 = vpop.f32.mrb[56].mxu0 }
0x164f   : > { %v2325_v37 = vpack.c.bf16 %v2319_v36, %v2319_v36  ;;  %v5382_v38 = vpop.f32.mrb[57].mxu0  ;;  %v4792_v36 = vcombine.high %v2646_v32, %v2648_v51 }
0x1650   : > { %v2322_v39 = vpop.f32.mrb[58].mxu0  ;;  %v4791_v38 = vcombine.low %v2646_v32, %v2648_v51 }
0x1651   : > { %v5383_v42 = vpop.f32.mrb[59].mxu0  ;;  %5387 = vmatmul.mubr.msk.bf16.vlgmr.msra.gmra.mrb[56].mxu1 %vm866_vm5, %v2325_v37  ;;  %v4789_v37 = vcombine.low %v2645_v30, %v2647_v31  ;;  %v5487_v39 = vld [vmem:[%s6056_s26 + $0x140] sm:$0xff]  }
0x1652   : > { %2560 = vmatprep.mubr.bf16.mxu1 %v5800_v27  ;;  %v5488_v42 = vld [vmem:[%s6056_s26 + $0x1c0] sm:$0xff]  }
0x1724   : > { %v2366_v43 = vpop.f32.mrb[56].mxu1 }
0x1725   : > { %v2372_v45 = vadd.f32 %v2366_v43, %v2214_v28  ;;  %v5388_v47 = vpop.f32.mrb[57].mxu1  ;;  %v5489_v43 = vld [vmem:[%s6056_s26 + $0x100] sm:$0xff]  }
0x1726   : > { %v2369_v48 = vpop.f32.mrb[58].mxu1  ;;  %v5492_v47 = vld [vmem:[%s6056_s26 + $0x1c8] sm:$0xff]  }
0x1727   : > { %v2378_v49 = vadd.f32 %v4772_v44, %v2372_v45  ;;  %v5389_v50 = vpop.f32.mrb[59].mxu1  ;;  %v5490_v44 = vld [vmem:[%s6056_s26 + $0x180] sm:$0xff]   ;;  %v5491_v45 = vld [vmem:[%s6056_s26 + $0x148] sm:$0xff]  }
0x1728   : > { %v5493_v48 = vld [vmem:[%s6056_s26 + $0x108] sm:$0xff]   ;;  %v5495_v50 = vld [vmem:[%s6056_s26 + $0x150] sm:$0xff]  }
0x1729   : > { %v6358_v52 = vadd.f32 %v2378_v49, %v6212_v58  ;;  %v2415_v58 = vld [vmem:[%s6041_s16 + $0x8] sm:$0xff] }
0x172a   : > { %v4777_v2 = vcombine.low %v2415_v58, %v2417_v0  ;;  %v4778_v3 = vcombine.high %v2415_v58, %v2417_v0  ;;  %v5494_v49 = vld [vmem:[%s6056_s26 + $0x188] sm:$0xff]   ;;  %v5504_v58 = vld [vmem:[%s6056_s26 + $0x1e0] sm:$0xff]  }
0x172b   : > { %v2382_v53 = vsel %vm635_vm1, %v6358_v52, 0.0  ;;  %v5506_v0 = vld [vmem:[%s6056_s26 + $0x1a0] sm:$0xff]  }
0x172c   : > { %2383 = vadd.xlane.f32.xlu1 %v2382_v53  ;;  %2528 = vmatprep.subr.bf16.mxu1 %v4778_v3  ;;  %v5496_v53 = vld [vmem:[%s6056_s26 + $0x1d0] sm:$0xff]   ;;  %v5509_v3 = vld [vmem:[%s6056_s26 + $0x128] sm:$0xff]  }
0x172d   : > { %2529 = vmatpush1.bf16.msra.mxu1 %v4777_v2  ;;  %v5508_v2 = vld [vmem:[%s6056_s26 + $0x1e8] sm:$0xff]  }
0x172e   : > { %2530 = vmatprep.subr.bf16.mxu1 %v4782_v11  ;;  %v5517_v11 = vld [vmem:[%s6056_s26 + $0x138] sm:$0xff]  }
0x1731   : > { %2531 = vmatpush1.bf16.msra.mxu1 %v4781_v9  ;;  %v5516_v9 = vld [vmem:[%s6056_s26 + $0x1f8] sm:$0xff]  }
0x1732   : > { %2752 = vmatprep.subr.bf16.mxu1 %v4788_v18  ;;  %v6434_v18 = vsub.s32 1, %v2425_v15 }
0x17b9   : > { %v2384_v54 = vpop.xlane.xlu1 %2383 }
0x17ba   : > { %v2385_v55 = vmul.f32 0.03125, %v2384_v54  ;;  %v5497_v54 = vld [vmem:[%s6056_s26 + $0x110] sm:$0xff]  }
0x17bc   : > { %v2386_v56 = vsub.f32 %v6358_v52, %v2385_v55  ;;  %v5498_v55 = vld [vmem:[%s6056_s26 + $0x190] sm:$0xff]  }
0x17be   : > { %v2387_v59 = vmul.f32 %v2386_v56, %v2386_v56  ;;  %v2406_v26 = vmul.f32 %v4773_v40, %v2386_v56  ;;  %v5499_v56 = vld [vmem:[%s6056_s26 + $0x158] sm:$0xff]   ;;  %v6444_v40 = vsub.s32 2, %v2425_v15 }
0x17c0   : > { %v2388_v60 = vsel %vm635_vm1, %v2387_v59, 0.0  ;;  %v5500_v59 = vld [vmem:[%s6056_s26 + $0x1d8] sm:$0xff]  }
0x17c1   : > { %2389 = vadd.xlane.f32.xlu1 %v2388_v60  ;;  %v5501_v60 = vld [vmem:[%s6056_s26 + $0x118] sm:$0xff]  }
0x184e   : > { %v2390_v19 = vpop.xlane.xlu1 %2389 }
0x184f   : > { %v2391_v20 = vmul.f32 0.032258064, %v2390_v19 }
0x1851   : > { %5655 = vrsqrt.f32 %v2391_v20  ;;  %vm2394_vm11 = vcmp.eq.f32.partialorder %v2391_v20, inf  ;;  %v2397_v23 = vand.u32 2147483648, %v2391_v20  ;;  %vm2396_vm12 = vcmp.eq.f32.partialorder %v2391_v20, 0.0 }
0x185b   : > { %v5656_v21 = vpop.eup %5655 }
0x185c   : > { %v2393_v22 = vmul.f32 %v5656_v21, %v2391_v20 }
0x185e   : > { %v2395_v24 = vsel %vm2394_vm11, %v2391_v20, %v2393_v22  ;;  %v6436_v20 = vsub.s32 3, %v2425_v15  ;;  %v6439_v22 = vld [vmem:[%s6046_s20] sm:$0xf] }
0x185f   : > { %v2398_v25 = vsel %vm2396_vm12, %v2397_v23, %v2395_v24 }
0x1860   : > { %v2399_v10 = vadd.f32 1e-06, %v2398_v25  ;;  %v2649_v25 = vld [vmem:[%s6046_s20 + $0x4] sm:$0xf] }
0x1861   : > { %v2662_v31 = vrot.slane %v2649_v25, %v6444_v40  ;;  %v2658_v32 = vrot.slane %v2649_v25, %v6434_v18  ;;  %v2666_v51 = vrot.slane %v2649_v25, %v6436_v20 }
0x1862   : > { %5657 = vrcp.f32 %v2399_v10  ;;  %v6442_v10 = vsub.s32 0, %v2425_v15  ;;  %v5535_v15 = vld [vmem:[%s6056_s26 + $0x60] sm:$0xff]  }
0x1864   : > { %v2654_v30 = vrot.slane %v2649_v25, %v6442_v10  ;;  %v5540_v25 = vld [vmem:[%s6056_s26 + $0xe8] sm:$0xff]  }
0x186c   : > { %v5658_v28 = vpop.eup %5657 }
0x186d   : > { %v2407_v57 = vmul.f32 %v5658_v28, %v2406_v26 }
0x186f   : > { %v2412_v33 = vadd.f32 %v4774_v29, %v2407_v57  ;;  %v2431_v29 = vrot.slane %v6439_v22, %v6434_v18  ;;  %v2439_v57 = vrot.slane %v6439_v22, %v6436_v20 }
0x1871   : > { %v6384_v34 = vpack.c.bf16 %v2412_v33, %v2412_v33 }
0x1873   : > { %4783 = vmatmul.mubr.msk.bf16.vlgmr.msra.gmra.mrb[60].mxu0 %vm635_vm1, %v6384_v34  ;;  %4784 = vmatmul.mubr.msk.bf16.vlgmr.msra.gmra.mrb[60].mxu1 %vm635_vm1, %v6384_v34 }
0x1874   : > { %2712 = vmatpush1.bf16.msra.mxu0 %v4785_v16  ;;  %2753 = vmatpush1.bf16.msra.mxu1 %v4787_v17 }
0x1875   : > { %2713 = vmatprep.subr.bf16.mxu0 %v4790_v4  ;;  %2754 = vmatprep.subr.bf16.mxu1 %v4792_v36 }
0x1876   : > { %2743 = vmatprep.mubr.bf16.mxu0 %v5800_v27  ;;  %2784 = vmatprep.mubr.bf16.mxu1 %v5800_v27 }
0x1878   : > { %2714 = vmatpush1.bf16.msra.mxu0 %v4789_v37  ;;  %2755 = vmatpush1.bf16.msra.mxu1 %v4791_v38 }
0x1879   : > { %5022 = vmatprep.subr.bf16.mxu0 %v5487_v39  ;;  %5044 = vmatprep.subr.bf16.mxu1 %v5488_v42 }
0x187b   : > { %4793 = vmatmul.mubr.msk.bf16.vlgmr.msra.gmra.mrb[64].mxu0 %vm635_vm1, %v6384_v34  ;;  %4794 = vmatmul.mubr.msk.bf16.vlgmr.msra.gmra.mrb[64].mxu1 %vm635_vm1, %v6384_v34 }
0x187c   : > { %5023 = vmatpush3.bf16.msra.mxu0 %v5489_v43  ;;  %5045 = vmatpush3.bf16.msra.mxu1 %v5490_v44 }
0x187d   : > { %5024 = vmatprep.subr.bf16.mxu0 %v5491_v45  ;;  %5046 = vmatprep.subr.bf16.mxu1 %v5492_v47 }
0x1880   : > { %5025 = vmatpush3.bf16.msra.mxu0 %v5493_v48  ;;  %5047 = vmatpush3.bf16.msra.mxu1 %v5494_v49 }
0x1881   : > { %5026 = vmatprep.subr.bf16.mxu0 %v5495_v50  ;;  %5048 = vmatprep.subr.bf16.mxu1 %v5496_v53 }
0x1884   : > { %5027 = vmatpush3.bf16.msra.mxu0 %v5497_v54  ;;  %5049 = vmatpush3.bf16.msra.mxu1 %v5498_v55 }
0x1885   : > { %5028 = vmatprep.subr.bf16.mxu0 %v5499_v56  ;;  %5050 = vmatprep.subr.bf16.mxu1 %v5500_v59 }
0x1888   : > { %5029 = vmatpush3.bf16.msra.mxu0 %v5501_v60  ;;  %5051 = vmatpush3.bf16.msra.mxu1 %v5502_v61 }
0x1889   : > { %5030 = vmatprep.subr.bf16.mxu0 %v5503_v62  ;;  %5052 = vmatprep.subr.bf16.mxu1 %v5504_v58  ;;  %v5521_v58 = vld [vmem:[%s6056_s26] sm:$0xff]  }
0x188c   : > { %5031 = vmatpush3.bf16.msra.mxu0 %v5505_v63  ;;  %5053 = vmatpush3.bf16.msra.mxu1 %v5506_v0  ;;  %v5522_v63 = vld [vmem:[%s6056_s26 + $0x80] sm:$0xff]  }
0x188d   : > { %5032 = vmatprep.subr.bf16.mxu0 %v5507_v1  ;;  %5054 = vmatprep.subr.bf16.mxu1 %v5508_v2  ;;  %v5523_v2 = vld [vmem:[%s6056_s26 + $0x48] sm:$0xff]  }
0x1890   : > { %5033 = vmatpush3.bf16.msra.mxu0 %v5509_v3  ;;  %5055 = vmatpush3.bf16.msra.mxu1 %v5510_v35  ;;  %v5524_v3 = vld [vmem:[%s6056_s26 + $0xc8] sm:$0xff]  }
0x1891   : > { %5034 = vmatprep.subr.bf16.mxu0 %v5511_v5  ;;  %5056 = vmatprep.subr.bf16.mxu1 %v5512_v6  ;;  %v5525_v6 = vld [vmem:[%s6056_s26 + $0x8] sm:$0xff]  }
0x1894   : > { %5035 = vmatpush3.bf16.msra.mxu0 %v5513_v46  ;;  %5057 = vmatpush3.bf16.msra.mxu1 %v5514_v7  ;;  %v5526_v46 = vld [vmem:[%s6056_s26 + $0x88] sm:$0xff]   ;;  %v5527_v7 = vld [vmem:[%s6056_s26 + $0x50] sm:$0xff]  }
0x1895   : > { %5036 = vmatprep.subr.bf16.mxu0 %v5515_v8  ;;  %5058 = vmatprep.subr.bf16.mxu1 %v5516_v9  ;;  %v5528_v8 = vld [vmem:[%s6056_s26 + $0xd0] sm:$0xff]  }
0x1896   : > { %v5529_v9 = vld [vmem:[%s6056_s26 + $0x10] sm:$0xff]  }
0x1898   : > { %5037 = vmatpush3.bf16.msra.mxu0 %v5517_v11  ;;  %5059 = vmatpush3.bf16.msra.mxu1 %v5518_v12  ;;  %v5530_v11 = vld [vmem:[%s6056_s26 + $0x90] sm:$0xff]   ;;  %v5531_v12 = vld [vmem:[%s6056_s26 + $0x58] sm:$0xff]  }
0x1899   : > { %5066 = vmatprep.subr.bf16.mxu0 %v5519_v41  ;;  %5088 = vmatprep.subr.bf16.mxu1 %v5520_v13  ;;  %v5532_v41 = vld [vmem:[%s6056_s26 + $0xd8] sm:$0xff]  }
0x189a   : > { %v5533_v13 = vld [vmem:[%s6056_s26 + $0x18] sm:$0xff]  }
0x1946   : > { %v6430_v16 = vpop.f32.mrb[60].mxu0  ;;  %v6432_v17 = vpop.f32.mrb[60].mxu1 }
0x1947   : > { %v2523_v19 = vpop.f32.mrb[61].mxu0  ;;  %v2564_v21 = vpop.f32.mrb[61].mxu1 }
0x1948   : > { %v2525_v23 = vpop.f32.mrb[62].mxu0  ;;  %v2566_v24 = vpop.f32.mrb[62].mxu1  ;;  %v2524_v36 = vadd.f32 %v2523_v19, %v2431_v29  ;;  %v2565_v37 = vadd.f32 %v2564_v21, %v2439_v57  ;;  %v5536_v19 = vld [vmem:[%s6056_s26 + $0xe0] sm:$0xff]   ;;  %v2427_v29 = vrot.slane %v6439_v22, %v6442_v10  ;;  %v2435_v57 = vrot.slane %v6439_v22, %v6444_v40  ;;  %v5547_v22 = vld [vmem:[%s6056_s26 + $0x78] sm:$0xff]  }
0x1949   : > { %v2526_v26 = vpop.f32.mrb[63].mxu0  ;;  %v2567_v28 = vpop.f32.mrb[63].mxu1  ;;  %v5537_v21 = vld [vmem:[%s6056_s26 + $0x20] sm:$0xff]   ;;  %v5539_v24 = vld [vmem:[%s6056_s26 + $0x68] sm:$0xff]  }
0x194a   : > { %v2570_v59 = vmax.f32 %v2524_v36, 0.0  ;;  %v2572_v60 = vmax.f32 %v2565_v37, 0.0  ;;  %v5538_v23 = vld [vmem:[%s6056_s26 + $0xa0] sm:$0xff]   ;;  %v5541_v26 = vld [vmem:[%s6056_s26 + $0x28] sm:$0xff]   ;;  %v5548_v36 = vld [vmem:[%s6056_s26 + $0xf8] sm:$0xff]  }
0x194b   : > { %v5542_v28 = vld [vmem:[%s6056_s26 + $0xa8] sm:$0xff]   ;;  %v3409_v37 = vld [vmem:[%s6041_s16 + $0x20] sm:$0xff] }
0x194c   : > { %v2574_v35 = vpack.c.bf16 %v2570_v59, %v2570_v59  ;;  %v2576_v5 = vpack.c.bf16 %v2572_v60, %v2572_v60 }
0x194e   : > { %v2745_v33 = vpop.f32.mrb[64].mxu0  ;;  %v2786_v4 = vpop.f32.mrb[64].mxu1 }
0x194f   : > { %v2746_v38 = vadd.f32 %v2745_v33, %v2654_v30  ;;  %v2787_v39 = vadd.f32 %v2786_v4, %v2662_v31  ;;  %v2747_v42 = vpop.f32.mrb[65].mxu0  ;;  %v2788_v43 = vpop.f32.mrb[65].mxu1  ;;  %v5543_v30 = vld [vmem:[%s6056_s26 + $0x70] sm:$0xff]   ;;  %v2522_v33 = vadd.f32 %v6430_v16, %v2427_v29  ;;  %v2563_v4 = vadd.f32 %v6432_v17, %v2435_v57 }
0x1950   : > { %v2748_v44 = vadd.f32 %v2747_v42, %v2658_v32  ;;  %v2789_v45 = vadd.f32 %v2788_v43, %v2666_v51  ;;  %v2749_v47 = vpop.f32.mrb[66].mxu0  ;;  %v2790_v48 = vpop.f32.mrb[66].mxu1  ;;  %v5544_v31 = vld [vmem:[%s6056_s26 + $0xf0] sm:$0xff]   ;;  %v3412_v42 = vld [vmem:[%s6041_s16 + $0x68] sm:$0xff]  ;;  %v5549_v43 = vld [vmem:[%s6056_s26 + $0x38] sm:$0xff]  }
0x1951   : > { %v2793_v49 = vmax.f32 %v2746_v38, 0.0  ;;  %v2795_v50 = vmax.f32 %v2787_v39, 0.0  ;;  %v2750_v53 = vpop.f32.mrb[67].mxu0  ;;  %v2791_v54 = vpop.f32.mrb[67].mxu1  ;;  %v5545_v32 = vld [vmem:[%s6056_s26 + $0x30] sm:$0xff]   ;;  %v3411_v38 = vld [vmem:[%s6041_s16 + $0x60] sm:$0xff] }
0x1952   : > { %v2794_v55 = vmax.f32 %v2748_v44, 0.0  ;;  %v2796_v56 = vmax.f32 %v2789_v45, 0.0  ;;  %v5546_v51 = vld [vmem:[%s6056_s26 + $0xb0] sm:$0xff]   ;;  %v3410_v39 = vld [vmem:[%s6041_s16 + $0x28] sm:$0xff]  ;;  %v5550_v44 = vld [vmem:[%s6056_s26 + $0xb8] sm:$0xff]   ;;  %v2569_v45 = vmax.f32 %v2522_v33, 0.0  ;;  %v4860_v17 = vcombine.high %v3409_v37, %v3411_v38 }
0x1953   : > { %v2797_v0 = vpack.c.bf16 %v2793_v49, %v2793_v49  ;;  %v2799_v1 = vpack.c.bf16 %v2795_v50, %v2795_v50  ;;  %v2571_v16 = vmax.f32 %v2563_v4, 0.0  ;;  %v4862_v47 = vcombine.high %v3410_v39, %v3412_v42  ;;  %v3413_v48 = vld [vmem:[%s6041_s16 + $0xa0] sm:$0xff]  ;;  %v3414_v50 = vld [vmem:[%s6041_s16 + $0xa8] sm:$0xff]  ;;  %v5576_v29 = vld [vmem:[%s6056_s26 + $0x2f0] sm:$0xff]  }
0x1954   : > { %v2798_v61 = vpack.c.bf16 %v2794_v55, %v2794_v55  ;;  %v2800_v62 = vpack.c.bf16 %v2796_v56, %v2796_v56  ;;  %v3415_v49 = vld [vmem:[%s6041_s16 + $0xe0] sm:$0xff]  ;;  %v3416_v53 = vld [vmem:[%s6041_s16 + $0xe8] sm:$0xff]  ;;  %v4859_v54 = vcombine.low %v3409_v37, %v3411_v38  ;;  %v4861_v55 = vcombine.low %v3410_v39, %v3412_v42  ;;  %v5577_v57 = vld [vmem:[%s6056_s26 + $0x230] sm:$0xff]  }
0x1955   : > { %v4864_v56 = vcombine.high %v3413_v48, %v3415_v49  ;;  %v2573_v59 = vpack.c.bf16 %v2569_v45, %v2569_v45  ;;  %v2575_v60 = vpack.c.bf16 %v2571_v16, %v2571_v16  ;;  %v5582_v33 = vld [vmem:[%s6056_s26 + $0x2b8] sm:$0xff]   ;;  %v6537_v4 = vld [vmem:[%s6041_s16 + $0x30] sm:$0xff] }
0x1956   : > { %3089 = vmatprep.mubr.bf16.mxu0 %v2798_v61  ;;  %3129 = vmatprep.mubr.bf16.mxu1 %v2800_v62  ;;  %v4866_v61 = vcombine.high %v3414_v50, %v3416_v53  ;;  %v4863_v62 = vcombine.low %v3413_v48, %v3415_v49  ;;  %v6548_v38 = vld [vmem:[%s6041_s16 + $0x78] sm:$0xff] }
0x1957   : > { %3090 = vmatmul.mubr.bf16.vlgmr.msra.gmra.mrb[68].mxu0 %v2797_v0  ;;  %3130 = vmatmul.mubr.bf16.vlgmr.msra.gmra.mrb[68].mxu1 %v2799_v1  ;;  %v5552_v0 = vld [vmem:[%s6056_s26 + $0x2c0] sm:$0xff]  }
0x1958   : > { %5067 = vmatpush3.bf16.msra.mxu0 %v5521_v58  ;;  %5089 = vmatpush3.bf16.msra.mxu1 %v5522_v63  ;;  %v4865_v58 = vcombine.low %v3414_v50, %v3416_v53  ;;  %v5551_v63 = vld [vmem:[%s6056_s26 + $0x240] sm:$0xff]  }
0x1959   : > { %3361 = vmatprep.mubr.bf16.mxu0 %v2574_v35  ;;  %3401 = vmatprep.mubr.bf16.mxu1 %v2576_v5  ;;  %v5553_v1 = vld [vmem:[%s6056_s26 + $0x200] sm:$0xff]   ;;  %v5556_v35 = vld [vmem:[%s6056_s26 + $0x2c8] sm:$0xff]  }
0x195a   : > { %5068 = vmatprep.subr.bf16.mxu0 %v5523_v2  ;;  %5090 = vmatprep.subr.bf16.mxu1 %v5524_v3  ;;  %v5554_v2 = vld [vmem:[%s6056_s26 + $0x280] sm:$0xff]   ;;  %v5555_v3 = vld [vmem:[%s6056_s26 + $0x248] sm:$0xff]  }
0x195b   : > { %v5557_v5 = vld [vmem:[%s6056_s26 + $0x208] sm:$0xff]  }
0x195c   : > { %5069 = vmatpush3.bf16.msra.mxu0 %v5525_v6  ;;  %5091 = vmatpush3.bf16.msra.mxu1 %v5526_v46  ;;  %v5558_v6 = vld [vmem:[%s6056_s26 + $0x288] sm:$0xff]   ;;  %v5559_v46 = vld [vmem:[%s6056_s26 + $0x250] sm:$0xff]  }
0x195d   : > { %5070 = vmatprep.subr.bf16.mxu0 %v5527_v7  ;;  %5092 = vmatprep.subr.bf16.mxu1 %v5528_v8  ;;  %v5560_v7 = vld [vmem:[%s6056_s26 + $0x2d0] sm:$0xff]  }
0x195e   : > { %v5561_v8 = vld [vmem:[%s6056_s26 + $0x210] sm:$0xff]  }
0x1960   : > { %5071 = vmatpush3.bf16.msra.mxu0 %v5529_v9  ;;  %5093 = vmatpush3.bf16.msra.mxu1 %v5530_v11  ;;  %v5562_v9 = vld [vmem:[%s6056_s26 + $0x290] sm:$0xff]   ;;  %v5563_v11 = vld [vmem:[%s6056_s26 + $0x258] sm:$0xff]  }
0x1961   : > { %5072 = vmatprep.subr.bf16.mxu0 %v5531_v12  ;;  %5094 = vmatprep.subr.bf16.mxu1 %v5532_v41  ;;  %v5564_v12 = vld [vmem:[%s6056_s26 + $0x2d8] sm:$0xff]  }
0x1962   : > { %v5565_v41 = vld [vmem:[%s6056_s26 + $0x218] sm:$0xff]  }
0x1964   : > { %5073 = vmatpush3.bf16.msra.mxu0 %v5533_v13  ;;  %5095 = vmatpush3.bf16.msra.mxu1 %v5534_v14  ;;  %v5566_v13 = vld [vmem:[%s6056_s26 + $0x298] sm:$0xff]   ;;  %v5567_v14 = vld [vmem:[%s6056_s26 + $0x260] sm:$0xff]  }
0x1965   : > { %5074 = vmatprep.subr.bf16.mxu0 %v5535_v15  ;;  %5096 = vmatprep.subr.bf16.mxu1 %v5536_v19  ;;  %v5568_v15 = vld [vmem:[%s6056_s26 + $0x2e0] sm:$0xff]  }
0x1966   : > { %v5569_v19 = vld [vmem:[%s6056_s26 + $0x220] sm:$0xff]  }
0x1968   : > { %5075 = vmatpush3.bf16.msra.mxu0 %v5537_v21  ;;  %5097 = vmatpush3.bf16.msra.mxu1 %v5538_v23  ;;  %v5570_v21 = vld [vmem:[%s6056_s26 + $0x2a0] sm:$0xff]   ;;  %v5571_v23 = vld [vmem:[%s6056_s26 + $0x268] sm:$0xff]  }
0x1969   : > { %5076 = vmatprep.subr.bf16.mxu0 %v5539_v24  ;;  %5098 = vmatprep.subr.bf16.mxu1 %v5540_v25  ;;  %v5572_v24 = vld [vmem:[%s6056_s26 + $0x2e8] sm:$0xff]  }
0x196a   : > { %v5573_v25 = vld [vmem:[%s6056_s26 + $0x228] sm:$0xff]  }
0x196c   : > { %5077 = vmatpush3.bf16.msra.mxu0 %v5541_v26  ;;  %5099 = vmatpush3.bf16.msra.mxu1 %v5542_v28  ;;  %v5574_v26 = vld [vmem:[%s6056_s26 + $0x2a8] sm:$0xff]   ;;  %v5575_v28 = vld [vmem:[%s6056_s26 + $0x270] sm:$0xff]  }
0x196d   : > { %5078 = vmatprep.subr.bf16.mxu0 %v5543_v30  ;;  %5100 = vmatprep.subr.bf16.mxu1 %v5544_v31  ;;  %v5578_v30 = vld [vmem:[%s6056_s26 + $0x2b0] sm:$0xff]   ;;  %v5579_v31 = vld [vmem:[%s6056_s26 + $0x278] sm:$0xff]  }
0x1970   : > { %5079 = vmatpush3.bf16.msra.mxu0 %v5545_v32  ;;  %5101 = vmatpush3.bf16.msra.mxu1 %v5546_v51  ;;  %v5580_v32 = vld [vmem:[%s6056_s26 + $0x2f8] sm:$0xff]  }
0x1971   : > { %5080 = vmatprep.subr.bf16.mxu0 %v5547_v22  ;;  %5102 = vmatprep.subr.bf16.mxu1 %v5548_v36  ;;  %v5581_v51 = vld [vmem:[%s6056_s26 + $0x238] sm:$0xff]   ;;  %v6540_v22 = vld [vmem:[%s6041_s16 + $0x70] sm:$0xff] }
0x1972   : > { %v6543_v36 = vld [vmem:[%s6041_s16 + $0x38] sm:$0xff]  ;;  %v4902_v37 = vcombine.high %v6537_v4, %v6540_v22  ;;  %v4901_v39 = vcombine.low %v6537_v4, %v6540_v22 }
0x1973   : > { %v4903_v42 = vcombine.low %v6543_v36, %v6548_v38 }
0x1974   : > { %5081 = vmatpush3.bf16.msra.mxu0 %v5549_v43  ;;  %5103 = vmatpush3.bf16.msra.mxu1 %v5550_v44  ;;  %v4904_v43 = vcombine.high %v6543_v36, %v6548_v38 }
0x1975   : > { %3479 = vmatprep.subr.bf16.mxu0 %v4860_v17  ;;  %3520 = vmatprep.subr.bf16.mxu1 %v4862_v47 }
0x1977   : > { %3362 = vmatmul.mubr.bf16.vlgmr.msra.gmra.mrb[72].mxu0 %v2573_v59  ;;  %3402 = vmatmul.mubr.bf16.vlgmr.msra.gmra.mrb[72].mxu1 %v2575_v60 }
0x1978   : > { %3480 = vmatpush1.bf16.msra.mxu0 %v4859_v54  ;;  %3521 = vmatpush1.bf16.msra.mxu1 %v4861_v55 }
0x1979   : > { %3481 = vmatprep.subr.bf16.mxu0 %v4864_v56  ;;  %3522 = vmatprep.subr.bf16.mxu1 %v4866_v61 }
0x197a   : > { %3511 = vmatprep.mubr.bf16.mxu0 %v5800_v27  ;;  %3552 = vmatprep.mubr.bf16.mxu1 %v5800_v27 }
0x197c   : > { %3482 = vmatpush1.bf16.msra.mxu0 %v4863_v62  ;;  %3523 = vmatpush1.bf16.msra.mxu1 %v4865_v58 }
0x197d   : > { %5110 = vmatprep.subr.bf16.mxu0 %v5551_v63  ;;  %5132 = vmatprep.subr.bf16.mxu1 %v5552_v0 }
0x197f   : > { %4867 = vmatmul.mubr.msk.bf16.vlgmr.msra.gmra.mrb[76].mxu0 %vm635_vm1, %v6384_v34  ;;  %4868 = vmatmul.mubr.msk.bf16.vlgmr.msra.gmra.mrb[76].mxu1 %vm635_vm1, %v6384_v34 }
0x1980   : > { %5111 = vmatpush3.bf16.msra.mxu0 %v5553_v1  ;;  %5133 = vmatpush3.bf16.msra.mxu1 %v5554_v2  ;;  %v3417_v1 = vld [vmem:[%s6046_s20 + $0x8] sm:$0xf] }
0x1981   : > { %5112 = vmatprep.subr.bf16.mxu0 %v5555_v3  ;;  %5134 = vmatprep.subr.bf16.mxu1 %v5556_v35 }
0x1984   : > { %5113 = vmatpush3.bf16.msra.mxu0 %v5557_v5  ;;  %5135 = vmatpush3.bf16.msra.mxu1 %v5558_v6  ;;  %v3422_v5 = vrot.slane %v3417_v1, %v6442_v10  ;;  %v3430_v6 = vrot.slane %v3417_v1, %v6444_v40 }
0x1985   : > { %5114 = vmatprep.subr.bf16.mxu0 %v5559_v46  ;;  %5136 = vmatprep.subr.bf16.mxu1 %v5560_v7  ;;  %v3426_v7 = vrot.slane %v3417_v1, %v6434_v18 }
0x1988   : > { %5115 = vmatpush3.bf16.msra.mxu0 %v5561_v8  ;;  %5137 = vmatpush3.bf16.msra.mxu1 %v5562_v9  ;;  %v3434_v8 = vrot.slane %v3417_v1, %v6436_v20  ;;  %v5605_v1 = vld [vmem:[%s6056_s26 + $0x328] sm:$0xff]  }
0x1989   : > { %5116 = vmatprep.subr.bf16.mxu0 %v5563_v11  ;;  %5138 = vmatprep.subr.bf16.mxu1 %v5564_v12 }
0x198c   : > { %5117 = vmatpush3.bf16.msra.mxu0 %v5565_v41  ;;  %5139 = vmatpush3.bf16.msra.mxu1 %v5566_v13 }
0x198d   : > { %5118 = vmatprep.subr.bf16.mxu0 %v5567_v14  ;;  %5140 = vmatprep.subr.bf16.mxu1 %v5568_v15 }
0x1990   : > { %5119 = vmatpush3.bf16.msra.mxu0 %v5569_v19  ;;  %5141 = vmatpush3.bf16.msra.mxu1 %v5570_v21 }
0x1991   : > { %5120 = vmatprep.subr.bf16.mxu0 %v5571_v23  ;;  %5142 = vmatprep.subr.bf16.mxu1 %v5572_v24 }
0x1994   : > { %5121 = vmatpush3.bf16.msra.mxu0 %v5573_v25  ;;  %5143 = vmatpush3.bf16.msra.mxu1 %v5574_v26 }
0x1995   : > { %5122 = vmatprep.subr.bf16.mxu0 %v5575_v28  ;;  %5144 = vmatprep.subr.bf16.mxu1 %v5576_v29  ;;  %v3910_v29 = vld [vmem:[%s6041_s16 + $0xb0] sm:$0xff] }
0x1998   : > { %5123 = vmatpush3.bf16.msra.mxu0 %v5577_v57  ;;  %5145 = vmatpush3.bf16.msra.mxu1 %v5578_v30 }
0x1999   : > { %5124 = vmatprep.subr.bf16.mxu0 %v5579_v31  ;;  %5146 = vmatprep.subr.bf16.mxu1 %v5580_v32  ;;  %v3912_v31 = vld [vmem:[%s6041_s16 + $0xf0] sm:$0xff]  ;;  %v3911_v32 = vld [vmem:[%s6041_s16 + $0xb8] sm:$0xff] }
0x199c   : > { %5125 = vmatpush3.bf16.msra.mxu0 %v5581_v51  ;;  %5147 = vmatpush3.bf16.msra.mxu1 %v5582_v33  ;;  %v3913_v51 = vld [vmem:[%s6041_s16 + $0xf8] sm:$0xff] }
0x199d   : > { %3976 = vmatprep.subr.bf16.mxu0 %v4902_v37  ;;  %4017 = vmatprep.subr.bf16.mxu1 %v4904_v43  ;;  %v4906_v37 = vcombine.high %v3910_v29, %v3912_v31  ;;  %v4908_v38 = vcombine.high %v3911_v32, %v3913_v51  ;;  %v4905_v43 = vcombine.low %v3910_v29, %v3912_v31 }
0x1a2a   : > { %v5038_v44 = vpop.f32.mrb[68].mxu0  ;;  %v5060_v45 = vpop.f32.mrb[68].mxu1 }
0x1a2b   : > { %v5039_v16 = vpop.f32.mrb[69].mxu0  ;;  %v5061_v17 = vpop.f32.mrb[69].mxu1 }
0x1a2c   : > { %v5040_v47 = vadd.f32 %v5039_v16, %v5038_v44  ;;  %v5062_v48 = vadd.f32 %v5061_v17, %v5060_v45  ;;  %v5041_v49 = vpop.f32.mrb[70].mxu0  ;;  %v5063_v50 = vpop.f32.mrb[70].mxu1  ;;  %v4907_v44 = vcombine.low %v3911_v32, %v3913_v51  ;;  %v5583_v45 = vld [vmem:[%s6056_s26 + $0x340] sm:$0xff]  }
0x1a2d   : > { %v5042_v53 = vpop.f32.mrb[71].mxu0  ;;  %v5064_v54 = vpop.f32.mrb[71].mxu1  ;;  %v5584_v16 = vld [vmem:[%s6056_s26 + $0x3c0] sm:$0xff]   ;;  %v5591_v49 = vld [vmem:[%s6056_s26 + $0x350] sm:$0xff]  }
0x1a2e   : > { %v3132_v55 = vadd.f32 %v5062_v48, %v5040_v47  ;;  %v5586_v17 = vld [vmem:[%s6056_s26 + $0x380] sm:$0xff]   ;;  %v5588_v47 = vld [vmem:[%s6056_s26 + $0x3c8] sm:$0xff]   ;;  %v5592_v50 = vld [vmem:[%s6056_s26 + $0x3d0] sm:$0xff]  }
0x1a2f   : > { %v5590_v48 = vld [vmem:[%s6056_s26 + $0x388] sm:$0xff]   ;;  %v5593_v53 = vld [vmem:[%s6056_s26 + $0x310] sm:$0xff]  }
0x1a30   : > { %v5594_v54 = vld [vmem:[%s6056_s26 + $0x390] sm:$0xff]  }
0x1a4a   : > { %v5082_v56 = vpop.f32.mrb[72].mxu0  ;;  %v5104_v59 = vpop.f32.mrb[72].mxu1 }
0x1a4b   : > { %v5083_v60 = vpop.f32.mrb[73].mxu0  ;;  %v5105_v61 = vpop.f32.mrb[73].mxu1 }
0x1a4c   : > { %v5084_v62 = vadd.f32 %v5083_v60, %v5082_v56  ;;  %v5106_v58 = vadd.f32 %v5105_v61, %v5104_v59  ;;  %v5085_v63 = vpop.f32.mrb[74].mxu0  ;;  %v5107_v0 = vpop.f32.mrb[74].mxu1  ;;  %v5597_v56 = vld [vmem:[%s6056_s26 + $0x318] sm:$0xff]   ;;  %v5599_v60 = vld [vmem:[%s6056_s26 + $0x360] sm:$0xff]  }
0x1a4d   : > { %v5086_v2 = vpop.f32.mrb[75].mxu0  ;;  %v5108_v3 = vpop.f32.mrb[75].mxu1  ;;  %v5598_v59 = vld [vmem:[%s6056_s26 + $0x398] sm:$0xff]   ;;  %v5600_v61 = vld [vmem:[%s6056_s26 + $0x3e0] sm:$0xff]   ;;  %v5603_v63 = vld [vmem:[%s6056_s26 + $0x368] sm:$0xff]  }
0x1a4e   : > { %v3364_v35 = vadd.f32 %v5084_v62, %v3132_v55  ;;  %v5596_v55 = vld [vmem:[%s6056_s26 + $0x3d8] sm:$0xff]   ;;  %v5601_v62 = vld [vmem:[%s6056_s26 + $0x320] sm:$0xff]   ;;  %v5604_v0 = vld [vmem:[%s6056_s26 + $0x3e8] sm:$0xff]  }
0x1a4f   : > { %v5606_v2 = vld [vmem:[%s6056_s26 + $0x3a8] sm:$0xff]   ;;  %v5607_v3 = vld [vmem:[%s6056_s26 + $0x370] sm:$0xff]  }
0x1a50   : > { %v6559_v46 = vadd.f32 %v5106_v58, %v3364_v35  ;;  %v5602_v58 = vld [vmem:[%s6056_s26 + $0x3a0] sm:$0xff]   ;;  %v5608_v35 = vld [vmem:[%s6056_s26 + $0x3f0] sm:$0xff]  }
0x1a52   : > { %v3513_v9 = vpop.f32.mrb[76].mxu0  ;;  %v3554_v11 = vpop.f32.mrb[76].mxu1 }
0x1a53   : > { %v3514_v12 = vadd.f32 %v3513_v9, %v3422_v5  ;;  %v3555_v41 = vadd.f32 %v3554_v11, %v3430_v6  ;;  %v3515_v13 = vpop.f32.mrb[77].mxu0  ;;  %v3556_v14 = vpop.f32.mrb[77].mxu1  ;;  %v5609_v5 = vld [vmem:[%s6056_s26 + $0x330] sm:$0xff]   ;;  %v5613_v9 = vld [vmem:[%s6056_s26 + $0x338] sm:$0xff]  }
0x1a54   : > { %v3516_v15 = vadd.f32 %v3515_v13, %v3426_v7  ;;  %v3557_v19 = vadd.f32 %v3556_v14, %v3434_v8  ;;  %v3517_v21 = vpop.f32.mrb[78].mxu0  ;;  %v3558_v23 = vpop.f32.mrb[78].mxu1  ;;  %v5610_v6 = vld [vmem:[%s6056_s26 + $0x3b0] sm:$0xff]   ;;  %v5611_v7 = vld [vmem:[%s6056_s26 + $0x378] sm:$0xff]  }
0x1a55   : > { %v3561_v24 = vmax.f32 %v3514_v12, 0.0  ;;  %v3563_v25 = vmax.f32 %v3555_v41, 0.0  ;;  %v3518_v26 = vpop.f32.mrb[79].mxu0  ;;  %v3559_v28 = vpop.f32.mrb[79].mxu1  ;;  %v5612_v8 = vld [vmem:[%s6056_s26 + $0x3f8] sm:$0xff]  }
0x1a56   : > { %v3562_v57 = vmax.f32 %v3516_v15, 0.0  ;;  %v3564_v30 = vmax.f32 %v3557_v19, 0.0  ;;  %v5614_v11 = vld [vmem:[%s6056_s26 + $0x3b8] sm:$0xff]  }
0x1a57   : > { %v3565_v22 = vpack.c.bf16 %v3561_v24, %v3561_v24  ;;  %v3567_v36 = vpack.c.bf16 %v3563_v25, %v3563_v25  ;;  %v3914_v24 = vld [vmem:[%s6046_s20 + $0xc] sm:$0xf] }
0x1a58   : > { %v3566_v33 = vpack.c.bf16 %v3562_v57, %v3562_v57  ;;  %v3568_v4 = vpack.c.bf16 %v3564_v30, %v3564_v30  ;;  %v3919_v29 = vrot.slane %v3914_v24, %v6442_v10  ;;  %v3927_v57 = vrot.slane %v3914_v24, %v6444_v40 }
0x1a59   : > { %v3923_v31 = vrot.slane %v3914_v24, %v6434_v18  ;;  %v3931_v32 = vrot.slane %v3914_v24, %v6436_v20 }
0x1a5a   : > { %3857 = vmatprep.mubr.bf16.mxu0 %v3566_v33  ;;  %3897 = vmatprep.mubr.bf16.mxu1 %v3568_v4 }
0x1a5b   : > { %3858 = vmatmul.mubr.bf16.vlgmr.msra.gmra.mrb[80].mxu0 %v3565_v22  ;;  %3898 = vmatmul.mubr.bf16.vlgmr.msra.gmra.mrb[80].mxu1 %v3567_v36 }
0x1a5c   : > { %3977 = vmatpush1.bf16.msra.mxu0 %v4901_v39  ;;  %4018 = vmatpush1.bf16.msra.mxu1 %v4903_v42  ;;  %v5585_v39 = vld [vmem:[%s6056_s26 + $0x300] sm:$0xff]   ;;  %v5587_v42 = vld [vmem:[%s6056_s26 + $0x348] sm:$0xff]  }
0x1a5d   : > { %3978 = vmatprep.subr.bf16.mxu0 %v4906_v37  ;;  %4019 = vmatprep.subr.bf16.mxu1 %v4908_v38 }
0x1a5e   : > { %4008 = vmatprep.mubr.bf16.mxu0 %v5800_v27  ;;  %4049 = vmatprep.mubr.bf16.mxu1 %v5800_v27  ;;  %v5589_v27 = vld [vmem:[%s6056_s26 + $0x308] sm:$0xff]  }
0x1a60   : > { %3979 = vmatpush1.bf16.msra.mxu0 %v4905_v43  ;;  %4020 = vmatpush1.bf16.msra.mxu1 %v4907_v44 }
0x1a61   : > { %5154 = vmatprep.subr.bf16.mxu0 %v5583_v45  ;;  %5176 = vmatprep.subr.bf16.mxu1 %v5584_v16 }
0x1a63   : > { %4909 = vmatmul.mubr.msk.bf16.vlgmr.msra.gmra.mrb[84].mxu0 %vm635_vm1, %v6384_v34  ;;  %4910 = vmatmul.mubr.msk.bf16.vlgmr.msra.gmra.mrb[84].mxu1 %vm635_vm1, %v6384_v34  ;;  %v5595_v34 = vld [vmem:[%s6056_s26 + $0x358] sm:$0xff]  }
0x1a64   : > { %5155 = vmatpush3.bf16.msra.mxu0 %v5585_v39  ;;  %5177 = vmatpush3.bf16.msra.mxu1 %v5586_v17 }
0x1a65   : > { %5156 = vmatprep.subr.bf16.mxu0 %v5587_v42  ;;  %5178 = vmatprep.subr.bf16.mxu1 %v5588_v47 }
0x1a68   : > { %5157 = vmatpush3.bf16.msra.mxu0 %v5589_v27  ;;  %5179 = vmatpush3.bf16.msra.mxu1 %v5590_v48 }
0x1a69   : > { %5158 = vmatprep.subr.bf16.mxu0 %v5591_v49  ;;  %5180 = vmatprep.subr.bf16.mxu1 %v5592_v50 }
0x1a6c   : > { %5159 = vmatpush3.bf16.msra.mxu0 %v5593_v53  ;;  %5181 = vmatpush3.bf16.msra.mxu1 %v5594_v54 }
0x1a6d   : > { %5160 = vmatprep.subr.bf16.mxu0 %v5595_v34  ;;  %5182 = vmatprep.subr.bf16.mxu1 %v5596_v55 }
0x1a70   : > { %5161 = vmatpush3.bf16.msra.mxu0 %v5597_v56  ;;  %5183 = vmatpush3.bf16.msra.mxu1 %v5598_v59 }
0x1a71   : > { %5162 = vmatprep.subr.bf16.mxu0 %v5599_v60  ;;  %5184 = vmatprep.subr.bf16.mxu1 %v5600_v61 }
0x1a74   : > { %5163 = vmatpush3.bf16.msra.mxu0 %v5601_v62  ;;  %5185 = vmatpush3.bf16.msra.mxu1 %v5602_v58  ;;  %v4943_v62 = vld [vmem:[%s619_s5] ss:$0 sm:$0xff] }
0x1a75   : > { %5164 = vmatprep.subr.bf16.mxu0 %v5603_v63  ;;  %5186 = vmatprep.subr.bf16.mxu1 %v5604_v0 }
0x1a78   : > { %5165 = vmatpush3.bf16.msra.mxu0 %v5605_v1  ;;  %5187 = vmatpush3.bf16.msra.mxu1 %v5606_v2 }
0x1a79   : > { %5166 = vmatprep.subr.bf16.mxu0 %v5607_v3  ;;  %5188 = vmatprep.subr.bf16.mxu1 %v5608_v35 }
0x1a7c   : > { %5167 = vmatpush3.bf16.msra.mxu0 %v5609_v5  ;;  %5189 = vmatpush3.bf16.msra.mxu1 %v5610_v6 }
0x1a7d   : > { %5168 = vmatprep.subr.bf16.mxu0 %v5611_v7  ;;  %5190 = vmatprep.subr.bf16.mxu1 %v5612_v8 }
0x1a80   : > { %5169 = vmatpush3.bf16.msra.mxu0 %v5613_v9  ;;  %5191 = vmatpush3.bf16.msra.mxu1 %v5614_v11 }
0x1b2e   : > { %v5126_v12 = vpop.f32.mrb[80].mxu0  ;;  %v5148_v41 = vpop.f32.mrb[80].mxu1 }
0x1b2f   : > { %v5127_v13 = vpop.f32.mrb[81].mxu0  ;;  %v5149_v14 = vpop.f32.mrb[81].mxu1 }
0x1b30   : > { %v5128_v15 = vadd.f32 %v5127_v13, %v5126_v12  ;;  %v5150_v19 = vadd.f32 %v5149_v14, %v5148_v41  ;;  %v5129_v21 = vpop.f32.mrb[82].mxu0  ;;  %v5151_v23 = vpop.f32.mrb[82].mxu1 }
0x1b31   : > { %v5130_v25 = vpop.f32.mrb[83].mxu0  ;;  %v5152_v26 = vpop.f32.mrb[83].mxu1 }
0x1b32   : > { %v3900_v28 = vadd.f32 %v5150_v19, %v5128_v15 }
0x1b34   : > { %v3905_v30 = vadd.f32 %v3900_v28, %v6559_v46 }
0x1b36   : > { %v4010_v51 = vpop.f32.mrb[84].mxu0  ;;  %v4051_v33 = vpop.f32.mrb[84].mxu1 }
0x1b37   : > { %v4011_v4 = vadd.f32 %v4010_v51, %v3919_v29  ;;  %v4052_v22 = vadd.f32 %v4051_v33, %v3927_v57  ;;  %v4012_v36 = vpop.f32.mrb[85].mxu0  ;;  %v4053_v37 = vpop.f32.mrb[85].mxu1 }
0x1b38   : > { %v4013_v38 = vadd.f32 %v4012_v36, %v3923_v31  ;;  %v4054_v43 = vadd.f32 %v4053_v37, %v3931_v32  ;;  %v4014_v44 = vpop.f32.mrb[86].mxu0  ;;  %v4055_v45 = vpop.f32.mrb[86].mxu1 }
0x1b39   : > { %v4058_v16 = vmax.f32 %v4011_v4, 0.0  ;;  %v4060_v10 = vmax.f32 %v4052_v22, 0.0  ;;  %v4015_v39 = vpop.f32.mrb[87].mxu0  ;;  %v4056_v40 = vpop.f32.mrb[87].mxu1 }
0x1b3a   : > { %v4059_v17 = vmax.f32 %v4013_v38, 0.0  ;;  %v4061_v46 = vmax.f32 %v4054_v43, 0.0 }
0x1b3b   : > { %v4062_v47 = vpack.c.bf16 %v4058_v16, %v4058_v16  ;;  %v4064_v20 = vpack.c.bf16 %v4060_v10, %v4060_v10 }
0x1b3c   : > { %v4063_v42 = vpack.c.bf16 %v4059_v17, %v4059_v17  ;;  %v4065_v18 = vpack.c.bf16 %v4061_v46, %v4061_v46 }
0x1b3e   : > { %4354 = vmatprep.mubr.bf16.mxu0 %v4063_v42  ;;  %4394 = vmatprep.mubr.bf16.mxu1 %v4065_v18 }
0x1b3f   : > { %4355 = vmatmul.mubr.bf16.vlgmr.msra.gmra.mrb[88].mxu0 %v4062_v47  ;;  %4395 = vmatmul.mubr.bf16.vlgmr.msra.gmra.mrb[88].mxu1 %v4064_v20 }
0x1c12   : > { %v5170_v27 = vpop.f32.mrb[88].mxu0  ;;  %v5192_v48 = vpop.f32.mrb[88].mxu1 }
0x1c13   : > { %v5171_v49 = vpop.f32.mrb[89].mxu0  ;;  %v5193_v50 = vpop.f32.mrb[89].mxu1 }
0x1c14   : > { %v5172_v53 = vadd.f32 %v5171_v49, %v5170_v27  ;;  %v5194_v54 = vadd.f32 %v5193_v50, %v5192_v48  ;;  %v5173_v34 = vpop.f32.mrb[90].mxu0  ;;  %v5195_v55 = vpop.f32.mrb[90].mxu1 }
0x1c15   : > { %v5174_v56 = vpop.f32.mrb[91].mxu0  ;;  %v5196_v59 = vpop.f32.mrb[91].mxu1 }
0x1c16   : > { %v4397_v60 = vadd.f32 %v5194_v54, %v5172_v53  ;;  %4415 = sbr.rel (%p4944_p0) target bundleno = 7199 (0x1c1f), region = 80 }
0x1c18   : > { %v4402_v61 = vadd.f32 %v4397_v60, %v3905_v30 }
0x1c1a   : > { %v4403_v58 = vadd.f32 %v4402_v61, %v6358_v52 }
0x1c1c   : > { %v4411_v63 = vadd.f32 %v4943_v62, %v4403_v58 }
0x1c1e   : > { %4416 = vst.msk [vmem:[%s6058_s6] sm:$0xff] %vm635_vm1, %v4411_v63 }
0x1c1f PF: > { %p4945_p7 = scmp.ne.s32.totalorder %s5776_s24, 1 }
0x1c20   : > { %v4423_v0 = vsel (!%p4945_p7), %vm635_vm1, %v4411_v63, 0.0  ;;  %s6746_s18 = sld [smem:[#allocation25_spill]] (!%p4945_p7) }
0x1c21   : > { %4420 = sbr.rel (%p4945_p7) target bundleno = 7527 (0x1d67), region = 84  ;;  %4424 = vadd.xlane.f32.xlu0 (!%p4945_p7), %v4423_v0 }
0x1c26   : > { %v4946_v13 = vld [vmem:[%s6746_s18] ss:$0 sm:$0xff] (!%p4945_p7)  ;;  %v4947_v19 = vld [vmem:[%s6746_s18 + $0x1] ss:$0 sm:$0xff] (!%p4945_p7) }
0x1cae   : > { %v4425_v1 = vpop.xlane.xlu0 %4424 }
0x1caf   : > { %v4426_v2 = vmul.f32 0.03125, %v4425_v1 }
0x1cb1   : > { %v4427_v3 = vsub.f32 %v4411_v63, %v4426_v2 }
0x1cb3   : > { %v4428_v35 = vmul.f32 %v4427_v3, %v4427_v3  ;;  %v4447_v14 = vmul.f32 %v4946_v13, %v4427_v3 }
0x1cb5   : > { %v4429_v52 = vsel %vm635_vm1, %v4428_v35, 0.0 }
0x1cb6   : > { %4430 = vadd.xlane.f32.xlu0 %v4429_v52 }
0x1d43   : > { %v4431_v5 = vpop.xlane.xlu0 %4430 }
0x1d44   : > { %v4432_v6 = vmul.f32 0.032258064, %v4431_v5 }
0x1d46   : > { %5660 = vrsqrt.f32 %v4432_v6  ;;  %vm4435_vm13 = vcmp.eq.f32.partialorder %v4432_v6, inf  ;;  %v4438_v9 = vand.u32 2147483648, %v4432_v6  ;;  %vm4437_vm14 = vcmp.eq.f32.partialorder %v4432_v6, 0.0 }
0x1d50   : > { %v5661_v7 = vpop.eup %5660 }
0x1d51   : > { %v4434_v8 = vmul.f32 %v5661_v7, %v4432_v6 }
0x1d53   : > { %v4436_v11 = vsel %vm4435_vm13, %v4432_v6, %v4434_v8 }
0x1d54   : > { %v4439_v12 = vsel %vm4437_vm14, %v4438_v9, %v4436_v11 }
0x1d55   : > { %v4440_v41 = vadd.f32 1e-06, %v4439_v12 }
0x1d57   : > { %5662 = vrcp.f32 %v4440_v41 }
0x1d61   : > { %v5663_v15 = vpop.eup %5662 }
0x1d62   : > { %v4448_v21 = vmul.f32 %v5663_v15, %v4447_v14 }
0x1d64   : > { %v4453_v23 = vadd.f32 %v4947_v19, %v4448_v21 }
0x1d66   : > { %4454 = vst.msk [vmem:[%s6058_s6] sm:$0xff] %vm635_vm1, %v4453_v23 }
0x1d67 PF: > { %s6747_s13 = sld [smem:[#allocation11_spill]]  ;;  %s6748_s20 = sld [smem:[#allocation20_spill]] }
0x1d68   : > { %s6749_s28 = sld [smem:[#allocation17_spill]]  ;;  %s6750_s14 = sld [smem:[#allocation26_spill]] }
0x1d69   : > { %s4469_s15 = sshll.u32 %s6058_s6, 4  ;;  %s5801_s22 = smov [#allocation5]   ;;  %s4470_s15 = int_to_ptr.vmem [resolvable:$true] %s4469_s15 }
0x1d6a   : > { %s5694_s27 = scalar_lea.vmem %s4470_s15, 128  ;;  %s5698_s23 = sshll.u32 %s5801_s22, 4  ;;  %s5699_s23 = int_to_ptr.vmem [resolvable:$false] %s5698_s23 }
0x1d6b   : > { %p5695_p13 = scmp.ne.s32.totalorder %s4470_s15, %s5694_s27  ;;  %s5700_s21 = scalar_lea.vmem %s5699_s23, 256 }
0x1d6c   : > { %p5701_p8 = scmp.lt.s32.totalorder %s4470_s15, %s5699_s23  ;;  %p5702_p12 = scmp.lt.s32.totalorder %s5700_s21, %s5694_s27 }
0x1d6d   : > { %s4949_s26 = sshll.u32 %s6747_s13, 7  ;;  %s4456_s0 = scalar_lea.sflag [#allocation4], %s6748_s20 }
0x1d6e   : > { %s6635_s29 = scalar_lea.hbm %s6750_s14, %s4949_s26  ;;  %p6751_p4 = scmp.ne.s32.totalorder %s6749_s28, 0 }
0x1d6f   : > { %p5703_p1 = por %p5702_p12, %p5701_p8 }
0x1d70   : > { %p5696_p6 = pnand %p5695_p13, %p6751_p4 }
0x1d72   : > { %p5697_p3 = pneg %p5696_p6 }
0x1d74   : > { %p5704_p2 = pnand %p5703_p1, %p5697_p3 }
0x1d76   : > { %5707 = shalt.err (!%p5704_p2)
}
0x1d77   : > { %s5708_s6 = scalar_lea.hbm %s6635_s29, 128  ;;  %s5712_s19 = scalar_lea.hbm %s6750_s14, 256 }
0x1d78   : > { %p5709_p5 = scmp.ne.s32.totalorder %s6635_s29, %s5708_s6  ;;  %p5713_p9 = scmp.lt.u32.totalorder %s6635_s29, %s6750_s14 }
0x1d79   : > { %p5714_p0 = scmp.lt.u32.totalorder %s5712_s19, %s5708_s6  ;;  %p5716_p13 = scmp.lt.u32.totalorder %s5708_s6, %s6635_s29 }
0x1d7a   : > { %p5710_p10 = pnand %p5709_p5, %p6751_p4 }
0x1d7b   : > { %p5715_p7 = por %p5714_p0, %p5713_p9 }
0x1d7c   : > { %p5711_p11 = pneg %p5710_p10 }
0x1d7d   : > { %p5717_p6 = por %p5716_p13, %p5715_p7 }
0x1d7f   : > { %p5718_p3 = pnand %p5717_p6, %p5711_p11 }
0x1d81   : > { %5721 = shalt.err (!%p5718_p3)
}
0x1d82   : > { %5392 = dma.vmem_to_hbm [thread:$0]  (%p6751_p4), %s4470_s15, 128, %s6635_s29, %s4456_s0  }
0x1d83 PF: > { %s6752_s24 = sld [smem:[#allocation14_spill]]  ;;  %s6753_s11 = sld [smem:[#allocation8_spill]] }
0x1d84   : > { %s6754_s12 = sld [smem:[#allocation18_spill]] }
0x1d89   : > { %p5403_p8 = scmp.ge.s32.totalorder %s6752_s24, 2  ;;  %s4481_s13 = sand.u32 1, %s6753_s11  }
0x1d8a   : > { %p6755_p12 = scmp.ne.s32.totalorder %s6754_s12, 0  ;;  %s4482_s20 = scalar_lea.sflag [#allocation4], %s4481_s13 }
0x1d8c   : > { %p5399_p1 = pnand %p5403_p8, %p6755_p12 }
0x1d8e   : > { %5759 = dma.done.wait (!%p5399_p1), %s4482_s20, 128  }
0x1d8f   : > { %5761 = vsyncadd (!%p5399_p1), %s4482_s20, 4294967168  ;;  %s28_s28 = sadd.s32 1, %s6752_s24   ;;  %s6756_s21 = sld [smem:[#allocation9_spill]] }
0x1d90   : > { %p25_p2 = scmp.ge.s32.totalorder %s28_s28, 6   ;;  %s6757_s22 = sld [smem:[#allocation10_spill]] }
0x1d91   : > { %s6758_s23 = sld [smem:[#allocation19_spill]]  ;;  %s6759_s24 = sld [smem:[#allocation12_spill]] }
0x1d92   : > { %s6760_s25 = sld [smem:[#allocation13_spill]]  ;;  %s6761_s26 = sld [smem:[#allocation15_spill]] }
0x1d93   : > { %s6762_s27 = sld [smem:[#allocation16_spill]]  ;;  %27 = sbr.rel (!%p25_p2) target bundleno = 14 (0xe), region = 162 }
0x1d9a   :  { %4487 = vsyncpa [#allocation3], 1 }
0x1d9b   :  { %4489 = vsyncpa [#allocation3 + $0x1], 1 }
0x1d9c   :  { %4490 = vsyncpa [#allocation4], 1 }
0x1d9d   :  { %4492 = vsyncpa [#allocation4 + $0x1], 1 }

</bundles_post_ra>
